<compile_context>
chip_gen: v7x
topology: tpu7x:2x2x1
jax: 0.10.0
libtpu: 0.0.40
codegen_flags: <defaults>
</compile_context>

<pallas_src>
import jax
import jax.numpy as jnp
from jax.experimental import pallas as pl
from jax.experimental.pallas import tpu as pltpu

EPS_BN = 1e-5
EPS_L2 = 1e-12

_VMEM_LIMIT = 32 * 1024 * 1024  # comfortable on v5e/v6e (128 MiB) and v7x (64 MiB)


# ----------------------------- in-kernel helpers ----------------------------

def _store_quadrant(pm_ref, q, pr, pc):
    """Scatter one parity quadrant of a source map into its padded parity-merged form.

    pm_ref[a, p, u, v*C + c] == padded_src[2a + p, 2u + v, c], where padded_src has a
    one-pixel zero border; q[a, b, :] == src[2a + pr, 2b + pc, :].
    """
    A, B, C = q.shape
    rows = slice(0, A) if pr == 0 else slice(1, A + 1)
    par = 1 if pr == 0 else 0
    cols = slice(0, B) if pc == 0 else slice(1, B + 1)
    lanes = slice(C, 2 * C) if pc == 0 else slice(0, C)
    pm_ref[rows, par, cols, lanes] = q


def _fill_pm_from_image(xr_ref, pm_ref):
    """Zero-pad + parity-merge one NHWC image into a VMEM scratch (no host pad)."""
    _, H2, _, W2, c2 = xr_ref.shape
    cin = c2 // 2
    pm_ref[...] = jnp.zeros_like(pm_ref)
    for pr in range(2):
        for pc in range(2):
            q = xr_ref[0, :, pr, :, pc * cin:(pc + 1) * cin]   # (H2, W2, cin)
            _store_quadrant(pm_ref, q, pr, pc)


def _conv3x3s2_from_pm(pm_ref, wa_ref, wb_ref, shift_ref):
    """Conv2d(3x3, stride 2, pad 1) + folded BN/bias + ReLU, all output rows at once.

    pm_ref:   (Ho+1, 2, Wo+1, 2*Cin) padded parity-merged input
    wa_ref:   (3, 2*Cin, Cout) bf16 - taps (ki, 0) and (ki, 1) merged along K
    wb_ref:   (3, Cin, Cout)   bf16 - tap (ki, 2) only (no zero block)
    shift_ref:(1, Cout) f32 folded conv-bias + BN shift
    returns   (Ho*Wo, Cout) f32 post-ReLU activation
    """
    Hq, _, Wq, c2 = pm_ref.shape
    Ho, Wo, cin = Hq - 1, Wq - 1, c2 // 2
    cout = wa_ref.shape[-1]
    acc = jnp.zeros((Ho * Wo, cout), jnp.float32)
    for ki in range(3):                                   # kernel row
        hq, hr = ki // 2, ki % 2
        # taps (ki, 0) and (ki, 1): both column parities of pm columns 0..Wo-1
        lhs_a = pm_ref[hq:hq + Ho, hr, 0:Wo, :]
        acc += jnp.dot(lhs_a.reshape(Ho * Wo, 2 * cin).astype(jnp.bfloat16),
                       wa_ref[ki], preferred_element_type=jnp.float32)
        # tap (ki, 2): even column parity of pm columns 1..Wo
        lhs_b = pm_ref[hq:hq + Ho, hr, 1:Wo + 1, 0:cin]
        acc += jnp.dot(lhs_b.reshape(Ho * Wo, cin).astype(jnp.bfloat16),
                       wb_ref[ki], preferred_element_type=jnp.float32)
    return jnp.maximum(acc + shift_ref[...], 0.0)


def _maxpool2_into_pm(y, pm_next_ref, row_ref):
    """2x2 max-pool a conv output and scatter it (padded, parity-merged) into pm_next.

    y:           (Ho*Wo, C) f32 conv output (post-ReLU)
    pm_next_ref: (Ho/4+1, 2, Wo/4+1, 2*C) scratch for the next conv's input
    row_ref:     (Ho/4, Wo, C) scratch holding one row-parity's row-pair max
    """
    A = pm_next_ref.shape[0] - 1          # pooled rows per row-parity
    B = pm_next_ref.shape[2] - 1          # pooled cols per col-parity
    C = pm_next_ref.shape[3] // 2
    Ho, Wo = 4 * A, 4 * B
    assert y.shape == (Ho * Wo, C)
    pm_next_ref[...] = jnp.zeros_like(pm_next_ref)
    y4 = y.reshape(A, 4, Wo, C)                              # free reshape (Wo % 8 == 0)
    for pr in range(2):
        # max over the two conv rows feeding pooled rows of parity pr
        row_ref[...] = jnp.maximum(y4[:, 2 * pr], y4[:, 2 * pr + 1])   # (A, Wo, C)
        for pc in range(2):
            # max over the two conv cols feeding pooled cols of parity pc
            q = jnp.maximum(row_ref[:, pl.ds(2 * pc, B, stride=4), :],
                            row_ref[:, pl.ds(2 * pc + 1, B, stride=4), :])  # (A, B, C)
            _store_quadrant(pm_next_ref, q, pr, pc)


def _fused_forward_kernel(xr_ref,
                          wa1_ref, wb1_ref, s1_ref,
                          wa2_ref, wb2_ref, s2_ref,
                          wa3_ref, wb3_ref, s3_ref,
                          wfc_ref, sfc_ref,
                          o_ref,
                          pm1, pm2, pm3, row1, row2):
    """Whole SimpleFeatureExtractor forward for one image (grid step = one image)."""
    # stage 1: conv(3->32) + BN + ReLU, then 2x2 max-pool straight into pm2
    _fill_pm_from_image(xr_ref, pm1)
    y1 = _conv3x3s2_from_pm(pm1, wa1_ref, wb1_ref, s1_ref)
    _maxpool2_into_pm(y1, pm2, row1)
    # stage 2: conv(32->64) + BN + ReLU, then 2x2 max-pool straight into pm3
    y2 = _conv3x3s2_from_pm(pm2, wa2_ref, wb2_ref, s2_ref)
    _maxpool2_into_pm(y2, pm3, row2)
    # stage 3: conv(64->128) + BN + ReLU
    y3 = _conv3x3s2_from_pm(pm3, wa3_ref, wb3_ref, s3_ref)          # (S, 128)
    # head: AdaptiveAvgPool2d (1/S folded into wfc) + [Dropout->id] + Linear + BN1d + L2
    feat = jnp.sum(y3, axis=0, keepdims=True)                        # (1, 128)
    z = jnp.dot(feat.astype(jnp.bfloat16), wfc_ref[...],
                preferred_element_type=jnp.float32) + sfc_ref[...]   # (1, F)
    ss = jnp.sum(z * z, axis=-1, keepdims=True)
    o_ref[0] = z * jax.lax.rsqrt(jnp.maximum(ss, EPS_L2 * EPS_L2))   # F.normalize(p=2)


# ------------------------------ host-side folding ---------------------------

def _fold_conv_bn(w, b, gamma, beta, mean, var):
    scale = gamma / jnp.sqrt(var + EPS_BN)                           # (Cout,)
    shift = (b - mean) * scale + beta                                # (Cout,)
    wf = (w * scale[:, None, None, None]).transpose(2, 3, 1, 0)      # (3, 3, Cin, Cout)
    wa = jnp.concatenate([wf[:, 0], wf[:, 1]], axis=1)               # (3, 2*Cin, Cout)
    wb = wf[:, 2]                                                    # (3, Cin, Cout)
    return (wa.astype(jnp.bfloat16), wb.astype(jnp.bfloat16),
            shift[None, :].astype(jnp.float32))


def _fold_fc_bn(w, b, gamma, beta, mean, var, spatial):
    scale = gamma / jnp.sqrt(var + EPS_BN)
    shift = (b - mean) * scale + beta
    wfc = (jnp.transpose(w) * scale[None, :]) / float(spatial)       # fold BN scale + 1/S
    return wfc.astype(jnp.bfloat16), shift[None, :].astype(jnp.float32)


def feature_extractor_forward(x_nchw, params):
    x = jnp.transpose(x_nchw, (0, 2, 3, 1)).astype(jnp.float32)      # NCHW -> NHWC once
    N, H, W, Cin = x.shape
    assert H % 32 == 0 and W % 64 == 0, "spatial dims must survive 32x downsampling"

    wa1, wb1, s1 = _fold_conv_bn(*params["conv1"], *params["bn1"])
    wa2, wb2, s2 = _fold_conv_bn(*params["conv2"], *params["bn2"])
    wa3, wb3, s3 = _fold_conv_bn(*params["conv3"], *params["bn3"])
    C1, C2 = wa1.shape[-1], wa2.shape[-1]
    wfc, sfc = _fold_fc_bn(*params["fc"], *params["bnfc"],
                           spatial=(H // 32) * (W // 32))
    F = wfc.shape[-1]

    # Free row-major view: xr[n, a, rp, b, cp*Cin + c] == x[n, 2a+rp, 2b+cp, c]
    xr = x.reshape(N, H // 2, 2, W // 2, 2 * Cin)

    def const_spec(a):
        return pl.BlockSpec(a.shape, lambda n, _r=a.ndim: (0,) * _r)

    scratch = [
        pltpu.VMEM((H // 2 + 1, 2, W // 2 + 1, 2 * Cin), jnp.float32),   # pm1
        pltpu.VMEM((H // 8 + 1, 2, W // 8 + 1, 2 * C1), jnp.float32),    # pm2
        pltpu.VMEM((H // 32 + 1, 2, W // 32 + 1, 2 * C2), jnp.float32),  # pm3
        pltpu.VMEM((H // 8, W // 2, C1), jnp.float32),                   # row-pair max s1
        pltpu.VMEM((H // 32, W // 8, C2), jnp.float32),                  # row-pair max s2
    ]

    out = pl.pallas_call(
        _fused_forward_kernel,
        grid=(N,),
        in_specs=[pl.BlockSpec((1, H // 2, 2, W // 2, 2 * Cin),
                               lambda n: (n, 0, 0, 0, 0))]
                 + [const_spec(a) for a in
                    (wa1, wb1, s1, wa2, wb2, s2, wa3, wb3, s3, wfc, sfc)],
        out_specs=pl.BlockSpec((1, 1, F), lambda n: (n, 0, 0)),
        out_shape=jax.ShapeDtypeStruct((N, 1, F), jnp.float32),
        scratch_shapes=scratch,
        compiler_params=pltpu.CompilerParams(
            dimension_semantics=("parallel",), vmem_limit_bytes=_VMEM_LIMIT),
    )(xr, wa1, wb1, s1, wa2, wb2, s2, wa3, wb3, s3, wfc, sfc)
    # TODO(synk): Dropout(0.5) is identity in inference mode (no Pallas RNG mask emitted).
    return out.reshape(N, F)


# ------------------------------ reference (plain JAX) ------------------------

def _reference_forward(x_nchw, params):
    def conv_ref(x, w, b, gamma, beta, mean, var):
        y = jax.lax.conv_general_dilated(
            x, w, window_strides=(2, 2), padding=((1, 1), (1, 1)),
            dimension_numbers=("NCHW", "OIHW", "NCHW"),
            precision=jax.lax.Precision.HIGHEST)
        y = y + b[None, :, None, None]
        s = gamma / jnp.sqrt(var + EPS_BN)
        y = (y - mean[None, :, None, None]) * s[None, :, None, None] + beta[None, :, None, None]
        return jnp.maximum(y, 0.0)

    def pool_ref(x):
        N, C, H, W = x.shape
        return jnp.max(x.reshape(N, C, H // 2, 2, W // 2, 2), axis=(3, 5))

    x = conv_ref(x_nchw, *params["conv1"], *params["bn1"])
    x = pool_ref(x)
    x = conv_ref(x, *params["conv2"], *params["bn2"])
    x = pool_ref(x)
    x = conv_ref(x, *params["conv3"], *params["bn3"])
    feat = jnp.mean(x, axis=(2, 3))
    wl, bl = params["fc"]
    g, be, mu, va = params["bnfc"]
    z = feat @ wl.T + bl
    z = (z - mu) * (g / jnp.sqrt(va + EPS_BN)) + be
    n = jnp.sqrt(jnp.sum(z * z, axis=1, keepdims=True))
    return z / jnp.maximum(n, EPS_L2)


# ------------------------------ parameter init ------------------------------

def init_params(key, feature_dim=128):
    keys = iter(jax.random.split(key, 32))

    def conv_p(cout, cin, k=3):
        fan_in = cin * k * k
        w = jax.random.normal(next(keys), (cout, cin, k, k), jnp.float32) / jnp.sqrt(fan_in)
        b = 0.01 * jax.random.normal(next(keys), (cout,), jnp.float32)
        return (w, b)

    def bn_p(c):
        gamma = 1.0 + 0.1 * jax.random.normal(next(keys), (c,), jnp.float32)
        beta = 0.1 * jax.random.normal(next(keys), (c,), jnp.float32)
        mean = 0.1 * jax.random.normal(next(keys), (c,), jnp.float32)
        var = 1.0 + 0.1 * jax.random.uniform(next(keys), (c,), jnp.float32)
        return (gamma, beta, mean, var)

    def linear_p(cout, cin):
        w = jax.random.normal(next(keys), (cout, cin), jnp.float32) / jnp.sqrt(cin)
        b = 0.01 * jax.random.normal(next(keys), (cout,), jnp.float32)
        return (w, b)

    return {
        "conv1": conv_p(32, 3),   "bn1": bn_p(32),
        "conv2": conv_p(64, 32),  "bn2": bn_p(64),
        "conv3": conv_p(128, 64), "bn3": bn_p(128),
        "fc": linear_p(feature_dim, 128), "bnfc": bn_p(feature_dim),
    }


if __name__ == "__main__":
    key = jax.random.PRNGKey(0)
    kx, kp = jax.random.split(key)

    # Small NCHW input consistent with the module (3 channels, 1:2 aspect like the
    # nominal 128x256 crop).  32x64 survives the 32x total downsampling.
    x = jax.random.normal(kx, (2, 3, 32, 64), jnp.float32)
    params = init_params(kp, feature_dim=128)

    fwd = jax.jit(feature_extractor_forward)
    feats = jax.block_until_ready(fwd(x, params))

    assert feats.shape == (2, 128) and feats.dtype == jnp.float32
    # Rows are L2-normalized.
    norms = jnp.sqrt(jnp.sum(feats * feats, axis=1))
    assert bool(jnp.all(jnp.abs(norms - 1.0) < 1e-3))
    # Semantics check against a plain-JAX f32 reference (tolerance absorbs the
    # bf16 MXU operands; only meant to catch structural/indexing bugs).
    ref = jax.block_until_ready(jax.jit(_reference_forward)(x, params))
    max_err = float(jnp.max(jnp.abs(feats - ref)))
    assert max_err < 5e-2, f"mismatch vs reference: {max_err}"

    print("KERNEL_OK")
</pallas_src>

<mosaic_0001>
module attributes {stable_mosaic.version = 11 : i64} {
  func.func @_fused_forward_kernel(%arg0: i32, %arg1: memref<1x16x2x32x6xf32, #tpu.memory_space<vmem>>, %arg2: memref<3x6x32xbf16, #tpu.memory_space<vmem>>, %arg3: memref<3x3x32xbf16, #tpu.memory_space<vmem>>, %arg4: memref<1x32xf32, #tpu.memory_space<vmem>>, %arg5: memref<3x64x64xbf16, #tpu.memory_space<vmem>>, %arg6: memref<3x32x64xbf16, #tpu.memory_space<vmem>>, %arg7: memref<1x64xf32, #tpu.memory_space<vmem>>, %arg8: memref<3x128x128xbf16, #tpu.memory_space<vmem>>, %arg9: memref<3x64x128xbf16, #tpu.memory_space<vmem>>, %arg10: memref<1x128xf32, #tpu.memory_space<vmem>>, %arg11: memref<128x128xbf16, #tpu.memory_space<vmem>>, %arg12: memref<1x128xf32, #tpu.memory_space<vmem>>, %arg13: memref<1x1x128xf32, #tpu.memory_space<vmem>>, %arg14: memref<17x2x33x6xf32, #tpu.memory_space<vmem>>, %arg15: memref<5x2x9x64xf32, #tpu.memory_space<vmem>>, %arg16: memref<2x2x3x128xf32, #tpu.memory_space<vmem>>, %arg17: memref<4x32x32xf32, #tpu.memory_space<vmem>>, %arg18: memref<1x8x64xf32, #tpu.memory_space<vmem>>) attributes {dimension_semantics = [#tpu.dimension_semantics<parallel>], iteration_bounds = array<i64: 2>, scalar_prefetch = 0 : i64, scratch_operands = 5 : i64, tpu.core_type = #tpu.core_type<tc>, window_params = [{transform_indices = @transform_0, window_bounds = array<i64: 1, 16, 2, 32, 6>}, {pipeline_mode = #tpu.pipeline_mode<synchronous>, transform_indices = @transform_1, window_bounds = array<i64: 3, 6, 32>}, {pipeline_mode = #tpu.pipeline_mode<synchronous>, transform_indices = @transform_2, window_bounds = array<i64: 3, 3, 32>}, {pipeline_mode = #tpu.pipeline_mode<synchronous>, transform_indices = @transform_3, window_bounds = array<i64: 1, 32>}, {pipeline_mode = #tpu.pipeline_mode<synchronous>, transform_indices = @transform_4, window_bounds = array<i64: 3, 64, 64>}, {pipeline_mode = #tpu.pipeline_mode<synchronous>, transform_indices = @transform_5, window_bounds = array<i64: 3, 32, 64>}, {pipeline_mode = #tpu.pipeline_mode<synchronous>, transform_indices = @transform_6, window_bounds = array<i64: 1, 64>}, {pipeline_mode = #tpu.pipeline_mode<synchronous>, transform_indices = @transform_7, window_bounds = array<i64: 3, 128, 128>}, {pipeline_mode = #tpu.pipeline_mode<synchronous>, transform_indices = @transform_8, window_bounds = array<i64: 3, 64, 128>}, {pipeline_mode = #tpu.pipeline_mode<synchronous>, transform_indices = @transform_9, window_bounds = array<i64: 1, 128>}, {pipeline_mode = #tpu.pipeline_mode<synchronous>, transform_indices = @transform_10, window_bounds = array<i64: 128, 128>}, {pipeline_mode = #tpu.pipeline_mode<synchronous>, transform_indices = @transform_11, window_bounds = array<i64: 1, 128>}, {transform_indices = @transform_12, window_bounds = array<i64: 1, 1, 128>}]} {
    %cst = arith.constant 0.000000e+00 : f32
    %0 = vector.broadcast %cst : f32 to vector<17x2x33x6xf32>
    %c0 = arith.constant 0 : index
    %c0_0 = arith.constant 0 : index
    %c0_1 = arith.constant 0 : index
    %c0_2 = arith.constant 0 : index
    %1 = vector.load %arg14[%c0, %c0_0, %c0_1, %c0_2] : memref<17x2x33x6xf32, #tpu.memory_space<vmem>>, vector<17x2x33x6xf32>
    tpu.vector_store %arg14[%c0, %c0_0, %c0_1, %c0_2], %0 {strides = array<i32>} : memref<17x2x33x6xf32, #tpu.memory_space<vmem>>, vector<17x2x33x6xf32>,
    %c0_3 = arith.constant 0 : index
    %c0_4 = arith.constant 0 : index
    %c0_5 = arith.constant 0 : index
    %c0_6 = arith.constant 0 : index
    %c0_7 = arith.constant 0 : index
    %2 = vector.load %arg1[%c0_3, %c0_4, %c0_5, %c0_6, %c0_7] : memref<1x16x2x32x6xf32, #tpu.memory_space<vmem>>, vector<1x16x1x32x3xf32>
    %3 = vector.shape_cast %2 : vector<1x16x1x32x3xf32> to vector<16x32x3xf32>
    %c0_8 = arith.constant 0 : index
    %c1 = arith.constant 1 : index
    %c0_9 = arith.constant 0 : index
    %c3 = arith.constant 3 : index
    %4 = vector.load %arg14[%c0_8, %c1, %c0_9, %c3] : memref<17x2x33x6xf32, #tpu.memory_space<vmem>>, vector<16x1x32x3xf32>
    %5 = vector.shape_cast %4 : vector<16x1x32x3xf32> to vector<16x32x3xf32>
    %6 = vector.shape_cast %3 : vector<16x32x3xf32> to vector<16x1x32x3xf32>
    tpu.vector_store %arg14[%c0_8, %c1, %c0_9, %c3], %6 {strides = array<i32>} : memref<17x2x33x6xf32, #tpu.memory_space<vmem>>, vector<16x1x32x3xf32>,
    %c0_10 = arith.constant 0 : index
    %c0_11 = arith.constant 0 : index
    %c0_12 = arith.constant 0 : index
    %c0_13 = arith.constant 0 : index
    %c3_14 = arith.constant 3 : index
    %7 = vector.load %arg1[%c0_10, %c0_11, %c0_12, %c0_13, %c3_14] : memref<1x16x2x32x6xf32, #tpu.memory_space<vmem>>, vector<1x16x1x32x3xf32>
    %8 = vector.shape_cast %7 : vector<1x16x1x32x3xf32> to vector<16x32x3xf32>
    %c0_15 = arith.constant 0 : index
    %c1_16 = arith.constant 1 : index
    %c1_17 = arith.constant 1 : index
    %c0_18 = arith.constant 0 : index
    %9 = vector.load %arg14[%c0_15, %c1_16, %c1_17, %c0_18] : memref<17x2x33x6xf32, #tpu.memory_space<vmem>>, vector<16x1x32x3xf32>
    %10 = vector.shape_cast %9 : vector<16x1x32x3xf32> to vector<16x32x3xf32>
    %11 = vector.shape_cast %8 : vector<16x32x3xf32> to vector<16x1x32x3xf32>
    tpu.vector_store %arg14[%c0_15, %c1_16, %c1_17, %c0_18], %11 {strides = array<i32>} : memref<17x2x33x6xf32, #tpu.memory_space<vmem>>, vector<16x1x32x3xf32>,
    %c0_19 = arith.constant 0 : index
    %c0_20 = arith.constant 0 : index
    %c1_21 = arith.constant 1 : index
    %c0_22 = arith.constant 0 : index
    %c0_23 = arith.constant 0 : index
    %12 = vector.load %arg1[%c0_19, %c0_20, %c1_21, %c0_22, %c0_23] : memref<1x16x2x32x6xf32, #tpu.memory_space<vmem>>, vector<1x16x1x32x3xf32>
    %13 = vector.shape_cast %12 : vector<1x16x1x32x3xf32> to vector<16x32x3xf32>
    %c1_24 = arith.constant 1 : index
    %c0_25 = arith.constant 0 : index
    %c0_26 = arith.constant 0 : index
    %c3_27 = arith.constant 3 : index
    %14 = vector.load %arg14[%c1_24, %c0_25, %c0_26, %c3_27] : memref<17x2x33x6xf32, #tpu.memory_space<vmem>>, vector<16x1x32x3xf32>
    %15 = vector.shape_cast %14 : vector<16x1x32x3xf32> to vector<16x32x3xf32>
    %16 = vector.shape_cast %13 : vector<16x32x3xf32> to vector<16x1x32x3xf32>
    tpu.vector_store %arg14[%c1_24, %c0_25, %c0_26, %c3_27], %16 {strides = array<i32>} : memref<17x2x33x6xf32, #tpu.memory_space<vmem>>, vector<16x1x32x3xf32>,
    %c0_28 = arith.constant 0 : index
    %c0_29 = arith.constant 0 : index
    %c1_30 = arith.constant 1 : index
    %c0_31 = arith.constant 0 : index
    %c3_32 = arith.constant 3 : index
    %17 = vector.load %arg1[%c0_28, %c0_29, %c1_30, %c0_31, %c3_32] : memref<1x16x2x32x6xf32, #tpu.memory_space<vmem>>, vector<1x16x1x32x3xf32>
    %18 = vector.shape_cast %17 : vector<1x16x1x32x3xf32> to vector<16x32x3xf32>
    %c1_33 = arith.constant 1 : index
    %c0_34 = arith.constant 0 : index
    %c1_35 = arith.constant 1 : index
    %c0_36 = arith.constant 0 : index
    %19 = vector.load %arg14[%c1_33, %c0_34, %c1_35, %c0_36] : memref<17x2x33x6xf32, #tpu.memory_space<vmem>>, vector<16x1x32x3xf32>
    %20 = vector.shape_cast %19 : vector<16x1x32x3xf32> to vector<16x32x3xf32>
    %21 = vector.shape_cast %18 : vector<16x32x3xf32> to vector<16x1x32x3xf32>
    tpu.vector_store %arg14[%c1_33, %c0_34, %c1_35, %c0_36], %21 {strides = array<i32>} : memref<17x2x33x6xf32, #tpu.memory_space<vmem>>, vector<16x1x32x3xf32>,
    %cst_37 = arith.constant 0.000000e+00 : f32
    %22 = vector.broadcast %cst_37 : f32 to vector<512x32xf32>
    %c0_38 = arith.constant 0 : index
    %c0_39 = arith.constant 0 : index
    %c0_40 = arith.constant 0 : index
    %c0_41 = arith.constant 0 : index
    %23 = vector.load %arg14[%c0_38, %c0_39, %c0_40, %c0_41] : memref<17x2x33x6xf32, #tpu.memory_space<vmem>>, vector<16x1x32x6xf32>
    %24 = vector.shape_cast %23 : vector<16x1x32x6xf32> to vector<16x32x6xf32>
    %25 = vector.shape_cast %24 : vector<16x32x6xf32> to vector<512x6xf32>
    %26 = arith.truncf %25 : vector<512x6xf32> to vector<512x6xbf16>
    %c0_42 = arith.constant 0 : index
    %c0_43 = arith.constant 0 : index
    %c0_44 = arith.constant 0 : index
    %27 = vector.load %arg2[%c0_42, %c0_43, %c0_44] : memref<3x6x32xbf16, #tpu.memory_space<vmem>>, vector<1x6x32xbf16>
    %28 = vector.shape_cast %27 : vector<1x6x32xbf16> to vector<6x32xbf16>
    %cst_45 = arith.constant dense<0.000000e+00> : vector<512x32xf32>
    %29 = tpu.matmul %26, %28, %cst_45 {dimension_numbers = #tpu.dot_dimension_numbers<[1], [0], [0], [1], [0, 0, 1, 1], [], []>} : vector<512x6xbf16>, vector<6x32xbf16>, vector<512x32xf32> -> vector<512x32xf32>
    %30 = arith.addf %22, %29 : vector<512x32xf32>
    %c0_46 = arith.constant 0 : index
    %c0_47 = arith.constant 0 : index
    %c1_48 = arith.constant 1 : index
    %c0_49 = arith.constant 0 : index
    %31 = vector.load %arg14[%c0_46, %c0_47, %c1_48, %c0_49] : memref<17x2x33x6xf32, #tpu.memory_space<vmem>>, vector<16x1x32x3xf32>
    %32 = vector.shape_cast %31 : vector<16x1x32x3xf32> to vector<16x32x3xf32>
    %33 = vector.shape_cast %32 : vector<16x32x3xf32> to vector<512x3xf32>
    %34 = arith.truncf %33 : vector<512x3xf32> to vector<512x3xbf16>
    %c0_50 = arith.constant 0 : index
    %c0_51 = arith.constant 0 : index
    %c0_52 = arith.constant 0 : index
    %35 = vector.load %arg3[%c0_50, %c0_51, %c0_52] : memref<3x3x32xbf16, #tpu.memory_space<vmem>>, vector<1x3x32xbf16>
    %36 = vector.shape_cast %35 : vector<1x3x32xbf16> to vector<3x32xbf16>
    %cst_53 = arith.constant dense<0.000000e+00> : vector<512x32xf32>
    %37 = tpu.matmul %34, %36, %cst_53 {dimension_numbers = #tpu.dot_dimension_numbers<[1], [0], [0], [1], [0, 0, 1, 1], [], []>} : vector<512x3xbf16>, vector<3x32xbf16>, vector<512x32xf32> -> vector<512x32xf32>
    %38 = arith.addf %30, %37 : vector<512x32xf32>
    %c0_54 = arith.constant 0 : index
    %c1_55 = arith.constant 1 : index
    %c0_56 = arith.constant 0 : index
    %c0_57 = arith.constant 0 : index
    %39 = vector.load %arg14[%c0_54, %c1_55, %c0_56, %c0_57] : memref<17x2x33x6xf32, #tpu.memory_space<vmem>>, vector<16x1x32x6xf32>
    %40 = vector.shape_cast %39 : vector<16x1x32x6xf32> to vector<16x32x6xf32>
    %41 = vector.shape_cast %40 : vector<16x32x6xf32> to vector<512x6xf32>
    %42 = arith.truncf %41 : vector<512x6xf32> to vector<512x6xbf16>
    %c1_58 = arith.constant 1 : index
    %c0_59 = arith.constant 0 : index
    %c0_60 = arith.constant 0 : index
    %43 = vector.load %arg2[%c1_58, %c0_59, %c0_60] : memref<3x6x32xbf16, #tpu.memory_space<vmem>>, vector<1x6x32xbf16>
    %44 = vector.shape_cast %43 : vector<1x6x32xbf16> to vector<6x32xbf16>
    %cst_61 = arith.constant dense<0.000000e+00> : vector<512x32xf32>
    %45 = tpu.matmul %42, %44, %cst_61 {dimension_numbers = #tpu.dot_dimension_numbers<[1], [0], [0], [1], [0, 0, 1, 1], [], []>} : vector<512x6xbf16>, vector<6x32xbf16>, vector<512x32xf32> -> vector<512x32xf32>
    %46 = arith.addf %38, %45 : vector<512x32xf32>
    %c0_62 = arith.constant 0 : index
    %c1_63 = arith.constant 1 : index
    %c1_64 = arith.constant 1 : index
    %c0_65 = arith.constant 0 : index
    %47 = vector.load %arg14[%c0_62, %c1_63, %c1_64, %c0_65] : memref<17x2x33x6xf32, #tpu.memory_space<vmem>>, vector<16x1x32x3xf32>
    %48 = vector.shape_cast %47 : vector<16x1x32x3xf32> to vector<16x32x3xf32>
    %49 = vector.shape_cast %48 : vector<16x32x3xf32> to vector<512x3xf32>
    %50 = arith.truncf %49 : vector<512x3xf32> to vector<512x3xbf16>
    %c1_66 = arith.constant 1 : index
    %c0_67 = arith.constant 0 : index
    %c0_68 = arith.constant 0 : index
    %51 = vector.load %arg3[%c1_66, %c0_67, %c0_68] : memref<3x3x32xbf16, #tpu.memory_space<vmem>>, vector<1x3x32xbf16>
    %52 = vector.shape_cast %51 : vector<1x3x32xbf16> to vector<3x32xbf16>
    %cst_69 = arith.constant dense<0.000000e+00> : vector<512x32xf32>
    %53 = tpu.matmul %50, %52, %cst_69 {dimension_numbers = #tpu.dot_dimension_numbers<[1], [0], [0], [1], [0, 0, 1, 1], [], []>} : vector<512x3xbf16>, vector<3x32xbf16>, vector<512x32xf32> -> vector<512x32xf32>
    %54 = arith.addf %46, %53 : vector<512x32xf32>
    %c1_70 = arith.constant 1 : index
    %c0_71 = arith.constant 0 : index
    %c0_72 = arith.constant 0 : index
    %c0_73 = arith.constant 0 : index
    %55 = vector.load %arg14[%c1_70, %c0_71, %c0_72, %c0_73] : memref<17x2x33x6xf32, #tpu.memory_space<vmem>>, vector<16x1x32x6xf32>
    %56 = vector.shape_cast %55 : vector<16x1x32x6xf32> to vector<16x32x6xf32>
    %57 = vector.shape_cast %56 : vector<16x32x6xf32> to vector<512x6xf32>
    %58 = arith.truncf %57 : vector<512x6xf32> to vector<512x6xbf16>
    %c2 = arith.constant 2 : index
    %c0_74 = arith.constant 0 : index
    %c0_75 = arith.constant 0 : index
    %59 = vector.load %arg2[%c2, %c0_74, %c0_75] : memref<3x6x32xbf16, #tpu.memory_space<vmem>>, vector<1x6x32xbf16>
    %60 = vector.shape_cast %59 : vector<1x6x32xbf16> to vector<6x32xbf16>
    %cst_76 = arith.constant dense<0.000000e+00> : vector<512x32xf32>
    %61 = tpu.matmul %58, %60, %cst_76 {dimension_numbers = #tpu.dot_dimension_numbers<[1], [0], [0], [1], [0, 0, 1, 1], [], []>} : vector<512x6xbf16>, vector<6x32xbf16>, vector<512x32xf32> -> vector<512x32xf32>
    %62 = arith.addf %54, %61 : vector<512x32xf32>
    %c1_77 = arith.constant 1 : index
    %c0_78 = arith.constant 0 : index
    %c1_79 = arith.constant 1 : index
    %c0_80 = arith.constant 0 : index
    %63 = vector.load %arg14[%c1_77, %c0_78, %c1_79, %c0_80] : memref<17x2x33x6xf32, #tpu.memory_space<vmem>>, vector<16x1x32x3xf32>
    %64 = vector.shape_cast %63 : vector<16x1x32x3xf32> to vector<16x32x3xf32>
    %65 = vector.shape_cast %64 : vector<16x32x3xf32> to vector<512x3xf32>
    %66 = arith.truncf %65 : vector<512x3xf32> to vector<512x3xbf16>
    %c2_81 = arith.constant 2 : index
    %c0_82 = arith.constant 0 : index
    %c0_83 = arith.constant 0 : index
    %67 = vector.load %arg3[%c2_81, %c0_82, %c0_83] : memref<3x3x32xbf16, #tpu.memory_space<vmem>>, vector<1x3x32xbf16>
    %68 = vector.shape_cast %67 : vector<1x3x32xbf16> to vector<3x32xbf16>
    %cst_84 = arith.constant dense<0.000000e+00> : vector<512x32xf32>
    %69 = tpu.matmul %66, %68, %cst_84 {dimension_numbers = #tpu.dot_dimension_numbers<[1], [0], [0], [1], [0, 0, 1, 1], [], []>} : vector<512x3xbf16>, vector<3x32xbf16>, vector<512x32xf32> -> vector<512x32xf32>
    %70 = arith.addf %62, %69 : vector<512x32xf32>
    %c0_85 = arith.constant 0 : index
    %c0_86 = arith.constant 0 : index
    %71 = vector.load %arg4[%c0_85, %c0_86] : memref<1x32xf32, #tpu.memory_space<vmem>>, vector<1x32xf32>
    %72 = vector.broadcast %71 : vector<1x32xf32> to vector<512x32xf32>
    %73 = arith.addf %70, %72 : vector<512x32xf32>
    %cst_87 = arith.constant 0.000000e+00 : f32
    %74 = vector.broadcast %cst_87 : f32 to vector<512x32xf32>
    %75 = arith.maximumf %73, %74 : vector<512x32xf32>
    %cst_88 = arith.constant 0.000000e+00 : f32
    %76 = vector.broadcast %cst_88 : f32 to vector<5x2x9x64xf32>
    %c0_89 = arith.constant 0 : index
    %c0_90 = arith.constant 0 : index
    %c0_91 = arith.constant 0 : index
    %c0_92 = arith.constant 0 : index
    %77 = vector.load %arg15[%c0_89, %c0_90, %c0_91, %c0_92] : memref<5x2x9x64xf32, #tpu.memory_space<vmem>>, vector<5x2x9x64xf32>
    tpu.vector_store %arg15[%c0_89, %c0_90, %c0_91, %c0_92], %76 {strides = array<i32>} : memref<5x2x9x64xf32, #tpu.memory_space<vmem>>, vector<5x2x9x64xf32>,
    %78 = vector.shape_cast %75 : vector<512x32xf32> to vector<4x4x32x32xf32>
    %79 = vector.extract_strided_slice %78 {offsets = [0, 0, 0, 0], sizes = [4, 1, 32, 32], strides = [1, 1, 1, 1]} : vector<4x4x32x32xf32> to vector<4x1x32x32xf32>
    %80 = vector.shape_cast %79 : vector<4x1x32x32xf32> to vector<4x32x32xf32>
    %81 = vector.extract_strided_slice %78 {offsets = [0, 1, 0, 0], sizes = [4, 1, 32, 32], strides = [1, 1, 1, 1]} : vector<4x4x32x32xf32> to vector<4x1x32x32xf32>
    %82 = vector.shape_cast %81 : vector<4x1x32x32xf32> to vector<4x32x32xf32>
    %83 = arith.maximumf %80, %82 : vector<4x32x32xf32>
    %c0_93 = arith.constant 0 : index
    %c0_94 = arith.constant 0 : index
    %c0_95 = arith.constant 0 : index
    %84 = vector.load %arg17[%c0_93, %c0_94, %c0_95] : memref<4x32x32xf32, #tpu.memory_space<vmem>>, vector<4x32x32xf32>
    tpu.vector_store %arg17[%c0_93, %c0_94, %c0_95], %83 {strides = array<i32>} : memref<4x32x32xf32, #tpu.memory_space<vmem>>, vector<4x32x32xf32>,
    %c0_96 = arith.constant 0 : index
    %c0_97 = arith.constant 0 : index
    %c0_98 = arith.constant 0 : index
    %85 = tpu.strided_load %arg17[%c0_96, %c0_97, %c0_98] {strides = array<i32: 1, 4, 1>} : memref<4x32x32xf32, #tpu.memory_space<vmem>>, vector<4x8x32xf32>
    %c0_99 = arith.constant 0 : index
    %c1_100 = arith.constant 1 : index
    %c0_101 = arith.constant 0 : index
    %86 = tpu.strided_load %arg17[%c0_99, %c1_100, %c0_101] {strides = array<i32: 1, 4, 1>} : memref<4x32x32xf32, #tpu.memory_space<vmem>>, vector<4x8x32xf32>
    %87 = arith.maximumf %85, %86 : vector<4x8x32xf32>
    %c0_102 = arith.constant 0 : index
    %c1_103 = arith.constant 1 : index
    %c0_104 = arith.constant 0 : index
    %c32 = arith.constant 32 : index
    %88 = vector.load %arg15[%c0_102, %c1_103, %c0_104, %c32] : memref<5x2x9x64xf32, #tpu.memory_space<vmem>>, vector<4x1x8x32xf32>
    %89 = vector.shape_cast %88 : vector<4x1x8x32xf32> to vector<4x8x32xf32>
    %90 = vector.shape_cast %87 : vector<4x8x32xf32> to vector<4x1x8x32xf32>
    tpu.vector_store %arg15[%c0_102, %c1_103, %c0_104, %c32], %90 {strides = array<i32>} : memref<5x2x9x64xf32, #tpu.memory_space<vmem>>, vector<4x1x8x32xf32>,
    %c0_105 = arith.constant 0 : index
    %c2_106 = arith.constant 2 : index
    %c0_107 = arith.constant 0 : index
    %91 = tpu.strided_load %arg17[%c0_105, %c2_106, %c0_107] {strides = array<i32: 1, 4, 1>} : memref<4x32x32xf32, #tpu.memory_space<vmem>>, vector<4x8x32xf32>
    %c0_108 = arith.constant 0 : index
    %c3_109 = arith.constant 3 : index
    %c0_110 = arith.constant 0 : index
    %92 = tpu.strided_load %arg17[%c0_108, %c3_109, %c0_110] {strides = array<i32: 1, 4, 1>} : memref<4x32x32xf32, #tpu.memory_space<vmem>>, vector<4x8x32xf32>
    %93 = arith.maximumf %91, %92 : vector<4x8x32xf32>
    %c0_111 = arith.constant 0 : index
    %c1_112 = arith.constant 1 : index
    %c1_113 = arith.constant 1 : index
    %c0_114 = arith.constant 0 : index
    %94 = vector.load %arg15[%c0_111, %c1_112, %c1_113, %c0_114] : memref<5x2x9x64xf32, #tpu.memory_space<vmem>>, vector<4x1x8x32xf32>
    %95 = vector.shape_cast %94 : vector<4x1x8x32xf32> to vector<4x8x32xf32>
    %96 = vector.shape_cast %93 : vector<4x8x32xf32> to vector<4x1x8x32xf32>
    tpu.vector_store %arg15[%c0_111, %c1_112, %c1_113, %c0_114], %96 {strides = array<i32>} : memref<5x2x9x64xf32, #tpu.memory_space<vmem>>, vector<4x1x8x32xf32>,
    %97 = vector.extract_strided_slice %78 {offsets = [0, 2, 0, 0], sizes = [4, 1, 32, 32], strides = [1, 1, 1, 1]} : vector<4x4x32x32xf32> to vector<4x1x32x32xf32>
    %98 = vector.shape_cast %97 : vector<4x1x32x32xf32> to vector<4x32x32xf32>
    %99 = vector.extract_strided_slice %78 {offsets = [0, 3, 0, 0], sizes = [4, 1, 32, 32], strides = [1, 1, 1, 1]} : vector<4x4x32x32xf32> to vector<4x1x32x32xf32>
    %100 = vector.shape_cast %99 : vector<4x1x32x32xf32> to vector<4x32x32xf32>
    %101 = arith.maximumf %98, %100 : vector<4x32x32xf32>
    %c0_115 = arith.constant 0 : index
    %c0_116 = arith.constant 0 : index
    %c0_117 = arith.constant 0 : index
    %102 = vector.load %arg17[%c0_115, %c0_116, %c0_117] : memref<4x32x32xf32, #tpu.memory_space<vmem>>, vector<4x32x32xf32>
    tpu.vector_store %arg17[%c0_115, %c0_116, %c0_117], %101 {strides = array<i32>} : memref<4x32x32xf32, #tpu.memory_space<vmem>>, vector<4x32x32xf32>,
    %c0_118 = arith.constant 0 : index
    %c0_119 = arith.constant 0 : index
    %c0_120 = arith.constant 0 : index
    %103 = tpu.strided_load %arg17[%c0_118, %c0_119, %c0_120] {strides = array<i32: 1, 4, 1>} : memref<4x32x32xf32, #tpu.memory_space<vmem>>, vector<4x8x32xf32>
    %c0_121 = arith.constant 0 : index
    %c1_122 = arith.constant 1 : index
    %c0_123 = arith.constant 0 : index
    %104 = tpu.strided_load %arg17[%c0_121, %c1_122, %c0_123] {strides = array<i32: 1, 4, 1>} : memref<4x32x32xf32, #tpu.memory_space<vmem>>, vector<4x8x32xf32>
    %105 = arith.maximumf %103, %104 : vector<4x8x32xf32>
    %c1_124 = arith.constant 1 : index
    %c0_125 = arith.constant 0 : index
    %c0_126 = arith.constant 0 : index
    %c32_127 = arith.constant 32 : index
    %106 = vector.load %arg15[%c1_124, %c0_125, %c0_126, %c32_127] : memref<5x2x9x64xf32, #tpu.memory_space<vmem>>, vector<4x1x8x32xf32>
    %107 = vector.shape_cast %106 : vector<4x1x8x32xf32> to vector<4x8x32xf32>
    %108 = vector.shape_cast %105 : vector<4x8x32xf32> to vector<4x1x8x32xf32>
    tpu.vector_store %arg15[%c1_124, %c0_125, %c0_126, %c32_127], %108 {strides = array<i32>} : memref<5x2x9x64xf32, #tpu.memory_space<vmem>>, vector<4x1x8x32xf32>,
    %c0_128 = arith.constant 0 : index
    %c2_129 = arith.constant 2 : index
    %c0_130 = arith.constant 0 : index
    %109 = tpu.strided_load %arg17[%c0_128, %c2_129, %c0_130] {strides = array<i32: 1, 4, 1>} : memref<4x32x32xf32, #tpu.memory_space<vmem>>, vector<4x8x32xf32>
    %c0_131 = arith.constant 0 : index
    %c3_132 = arith.constant 3 : index
    %c0_133 = arith.constant 0 : index
    %110 = tpu.strided_load %arg17[%c0_131, %c3_132, %c0_133] {strides = array<i32: 1, 4, 1>} : memref<4x32x32xf32, #tpu.memory_space<vmem>>, vector<4x8x32xf32>
    %111 = arith.maximumf %109, %110 : vector<4x8x32xf32>
    %c1_134 = arith.constant 1 : index
    %c0_135 = arith.constant 0 : index
    %c1_136 = arith.constant 1 : index
    %c0_137 = arith.constant 0 : index
    %112 = vector.load %arg15[%c1_134, %c0_135, %c1_136, %c0_137] : memref<5x2x9x64xf32, #tpu.memory_space<vmem>>, vector<4x1x8x32xf32>
    %113 = vector.shape_cast %112 : vector<4x1x8x32xf32> to vector<4x8x32xf32>
    %114 = vector.shape_cast %111 : vector<4x8x32xf32> to vector<4x1x8x32xf32>
    tpu.vector_store %arg15[%c1_134, %c0_135, %c1_136, %c0_137], %114 {strides = array<i32>} : memref<5x2x9x64xf32, #tpu.memory_space<vmem>>, vector<4x1x8x32xf32>,
    %cst_138 = arith.constant 0.000000e+00 : f32
    %115 = vector.broadcast %cst_138 : f32 to vector<32x64xf32>
    %c0_139 = arith.constant 0 : index
    %c0_140 = arith.constant 0 : index
    %c0_141 = arith.constant 0 : index
    %c0_142 = arith.constant 0 : index
    %116 = vector.load %arg15[%c0_139, %c0_140, %c0_141, %c0_142] : memref<5x2x9x64xf32, #tpu.memory_space<vmem>>, vector<4x1x8x64xf32>
    %117 = vector.shape_cast %116 : vector<4x1x8x64xf32> to vector<4x8x64xf32>
    %118 = vector.shape_cast %117 : vector<4x8x64xf32> to vector<32x64xf32>
    %119 = arith.truncf %118 : vector<32x64xf32> to vector<32x64xbf16>
    %c0_143 = arith.constant 0 : index
    %c0_144 = arith.constant 0 : index
    %c0_145 = arith.constant 0 : index
    %120 = vector.load %arg5[%c0_143, %c0_144, %c0_145] : memref<3x64x64xbf16, #tpu.memory_space<vmem>>, vector<1x64x64xbf16>
    %121 = vector.shape_cast %120 : vector<1x64x64xbf16> to vector<64x64xbf16>
    %cst_146 = arith.constant dense<0.000000e+00> : vector<32x64xf32>
    %122 = tpu.matmul %119, %121, %cst_146 {dimension_numbers = #tpu.dot_dimension_numbers<[1], [0], [0], [1], [0, 0, 1, 1], [], []>} : vector<32x64xbf16>, vector<64x64xbf16>, vector<32x64xf32> -> vector<32x64xf32>
    %123 = arith.addf %115, %122 : vector<32x64xf32>
    %c0_147 = arith.constant 0 : index
    %c0_148 = arith.constant 0 : index
    %c1_149 = arith.constant 1 : index
    %c0_150 = arith.constant 0 : index
    %124 = vector.load %arg15[%c0_147, %c0_148, %c1_149, %c0_150] : memref<5x2x9x64xf32, #tpu.memory_space<vmem>>, vector<4x1x8x32xf32>
    %125 = vector.shape_cast %124 : vector<4x1x8x32xf32> to vector<4x8x32xf32>
    %126 = vector.shape_cast %125 : vector<4x8x32xf32> to vector<32x32xf32>
    %127 = arith.truncf %126 : vector<32x32xf32> to vector<32x32xbf16>
    %c0_151 = arith.constant 0 : index
    %c0_152 = arith.constant 0 : index
    %c0_153 = arith.constant 0 : index
    %128 = vector.load %arg6[%c0_151, %c0_152, %c0_153] : memref<3x32x64xbf16, #tpu.memory_space<vmem>>, vector<1x32x64xbf16>
    %129 = vector.shape_cast %128 : vector<1x32x64xbf16> to vector<32x64xbf16>
    %cst_154 = arith.constant dense<0.000000e+00> : vector<32x64xf32>
    %130 = tpu.matmul %127, %129, %cst_154 {dimension_numbers = #tpu.dot_dimension_numbers<[1], [0], [0], [1], [0, 0, 1, 1], [], []>} : vector<32x32xbf16>, vector<32x64xbf16>, vector<32x64xf32> -> vector<32x64xf32>
    %131 = arith.addf %123, %130 : vector<32x64xf32>
    %c0_155 = arith.constant 0 : index
    %c1_156 = arith.constant 1 : index
    %c0_157 = arith.constant 0 : index
    %c0_158 = arith.constant 0 : index
    %132 = vector.load %arg15[%c0_155, %c1_156, %c0_157, %c0_158] : memref<5x2x9x64xf32, #tpu.memory_space<vmem>>, vector<4x1x8x64xf32>
    %133 = vector.shape_cast %132 : vector<4x1x8x64xf32> to vector<4x8x64xf32>
    %134 = vector.shape_cast %133 : vector<4x8x64xf32> to vector<32x64xf32>
    %135 = arith.truncf %134 : vector<32x64xf32> to vector<32x64xbf16>
    %c1_159 = arith.constant 1 : index
    %c0_160 = arith.constant 0 : index
    %c0_161 = arith.constant 0 : index
    %136 = vector.load %arg5[%c1_159, %c0_160, %c0_161] : memref<3x64x64xbf16, #tpu.memory_space<vmem>>, vector<1x64x64xbf16>
    %137 = vector.shape_cast %136 : vector<1x64x64xbf16> to vector<64x64xbf16>
    %cst_162 = arith.constant dense<0.000000e+00> : vector<32x64xf32>
    %138 = tpu.matmul %135, %137, %cst_162 {dimension_numbers = #tpu.dot_dimension_numbers<[1], [0], [0], [1], [0, 0, 1, 1], [], []>} : vector<32x64xbf16>, vector<64x64xbf16>, vector<32x64xf32> -> vector<32x64xf32>
    %139 = arith.addf %131, %138 : vector<32x64xf32>
    %c0_163 = arith.constant 0 : index
    %c1_164 = arith.constant 1 : index
    %c1_165 = arith.constant 1 : index
    %c0_166 = arith.constant 0 : index
    %140 = vector.load %arg15[%c0_163, %c1_164, %c1_165, %c0_166] : memref<5x2x9x64xf32, #tpu.memory_space<vmem>>, vector<4x1x8x32xf32>
    %141 = vector.shape_cast %140 : vector<4x1x8x32xf32> to vector<4x8x32xf32>
    %142 = vector.shape_cast %141 : vector<4x8x32xf32> to vector<32x32xf32>
    %143 = arith.truncf %142 : vector<32x32xf32> to vector<32x32xbf16>
    %c1_167 = arith.constant 1 : index
    %c0_168 = arith.constant 0 : index
    %c0_169 = arith.constant 0 : index
    %144 = vector.load %arg6[%c1_167, %c0_168, %c0_169] : memref<3x32x64xbf16, #tpu.memory_space<vmem>>, vector<1x32x64xbf16>
    %145 = vector.shape_cast %144 : vector<1x32x64xbf16> to vector<32x64xbf16>
    %cst_170 = arith.constant dense<0.000000e+00> : vector<32x64xf32>
    %146 = tpu.matmul %143, %145, %cst_170 {dimension_numbers = #tpu.dot_dimension_numbers<[1], [0], [0], [1], [0, 0, 1, 1], [], []>} : vector<32x32xbf16>, vector<32x64xbf16>, vector<32x64xf32> -> vector<32x64xf32>
    %147 = arith.addf %139, %146 : vector<32x64xf32>
    %c1_171 = arith.constant 1 : index
    %c0_172 = arith.constant 0 : index
    %c0_173 = arith.constant 0 : index
    %c0_174 = arith.constant 0 : index
    %148 = vector.load %arg15[%c1_171, %c0_172, %c0_173, %c0_174] : memref<5x2x9x64xf32, #tpu.memory_space<vmem>>, vector<4x1x8x64xf32>
    %149 = vector.shape_cast %148 : vector<4x1x8x64xf32> to vector<4x8x64xf32>
    %150 = vector.shape_cast %149 : vector<4x8x64xf32> to vector<32x64xf32>
    %151 = arith.truncf %150 : vector<32x64xf32> to vector<32x64xbf16>
    %c2_175 = arith.constant 2 : index
    %c0_176 = arith.constant 0 : index
    %c0_177 = arith.constant 0 : index
    %152 = vector.load %arg5[%c2_175, %c0_176, %c0_177] : memref<3x64x64xbf16, #tpu.memory_space<vmem>>, vector<1x64x64xbf16>
    %153 = vector.shape_cast %152 : vector<1x64x64xbf16> to vector<64x64xbf16>
    %cst_178 = arith.constant dense<0.000000e+00> : vector<32x64xf32>
    %154 = tpu.matmul %151, %153, %cst_178 {dimension_numbers = #tpu.dot_dimension_numbers<[1], [0], [0], [1], [0, 0, 1, 1], [], []>} : vector<32x64xbf16>, vector<64x64xbf16>, vector<32x64xf32> -> vector<32x64xf32>
    %155 = arith.addf %147, %154 : vector<32x64xf32>
    %c1_179 = arith.constant 1 : index
    %c0_180 = arith.constant 0 : index
    %c1_181 = arith.constant 1 : index
    %c0_182 = arith.constant 0 : index
    %156 = vector.load %arg15[%c1_179, %c0_180, %c1_181, %c0_182] : memref<5x2x9x64xf32, #tpu.memory_space<vmem>>, vector<4x1x8x32xf32>
    %157 = vector.shape_cast %156 : vector<4x1x8x32xf32> to vector<4x8x32xf32>
    %158 = vector.shape_cast %157 : vector<4x8x32xf32> to vector<32x32xf32>
    %159 = arith.truncf %158 : vector<32x32xf32> to vector<32x32xbf16>
    %c2_183 = arith.constant 2 : index
    %c0_184 = arith.constant 0 : index
    %c0_185 = arith.constant 0 : index
    %160 = vector.load %arg6[%c2_183, %c0_184, %c0_185] : memref<3x32x64xbf16, #tpu.memory_space<vmem>>, vector<1x32x64xbf16>
    %161 = vector.shape_cast %160 : vector<1x32x64xbf16> to vector<32x64xbf16>
    %cst_186 = arith.constant dense<0.000000e+00> : vector<32x64xf32>
    %162 = tpu.matmul %159, %161, %cst_186 {dimension_numbers = #tpu.dot_dimension_numbers<[1], [0], [0], [1], [0, 0, 1, 1], [], []>} : vector<32x32xbf16>, vector<32x64xbf16>, vector<32x64xf32> -> vector<32x64xf32>
    %163 = arith.addf %155, %162 : vector<32x64xf32>
    %c0_187 = arith.constant 0 : index
    %c0_188 = arith.constant 0 : index
    %164 = vector.load %arg7[%c0_187, %c0_188] : memref<1x64xf32, #tpu.memory_space<vmem>>, vector<1x64xf32>
    %165 = vector.broadcast %164 : vector<1x64xf32> to vector<32x64xf32>
    %166 = arith.addf %163, %165 : vector<32x64xf32>
    %cst_189 = arith.constant 0.000000e+00 : f32
    %167 = vector.broadcast %cst_189 : f32 to vector<32x64xf32>
    %168 = arith.maximumf %166, %167 : vector<32x64xf32>
    %cst_190 = arith.constant 0.000000e+00 : f32
    %169 = vector.broadcast %cst_190 : f32 to vector<2x2x3x128xf32>
    %c0_191 = arith.constant 0 : index
    %c0_192 = arith.constant 0 : index
    %c0_193 = arith.constant 0 : index
    %c0_194 = arith.constant 0 : index
    %170 = vector.load %arg16[%c0_191, %c0_192, %c0_193, %c0_194] : memref<2x2x3x128xf32, #tpu.memory_space<vmem>>, vector<2x2x3x128xf32>
    tpu.vector_store %arg16[%c0_191, %c0_192, %c0_193, %c0_194], %169 {strides = array<i32>} : memref<2x2x3x128xf32, #tpu.memory_space<vmem>>, vector<2x2x3x128xf32>,
    %171 = vector.shape_cast %168 : vector<32x64xf32> to vector<1x4x8x64xf32>
    %172 = vector.extract_strided_slice %171 {offsets = [0, 0, 0, 0], sizes = [1, 1, 8, 64], strides = [1, 1, 1, 1]} : vector<1x4x8x64xf32> to vector<1x1x8x64xf32>
    %173 = vector.shape_cast %172 : vector<1x1x8x64xf32> to vector<1x8x64xf32>
    %174 = vector.extract_strided_slice %171 {offsets = [0, 1, 0, 0], sizes = [1, 1, 8, 64], strides = [1, 1, 1, 1]} : vector<1x4x8x64xf32> to vector<1x1x8x64xf32>
    %175 = vector.shape_cast %174 : vector<1x1x8x64xf32> to vector<1x8x64xf32>
    %176 = arith.maximumf %173, %175 : vector<1x8x64xf32>
    %c0_195 = arith.constant 0 : index
    %c0_196 = arith.constant 0 : index
    %c0_197 = arith.constant 0 : index
    %177 = vector.load %arg18[%c0_195, %c0_196, %c0_197] : memref<1x8x64xf32, #tpu.memory_space<vmem>>, vector<1x8x64xf32>
    tpu.vector_store %arg18[%c0_195, %c0_196, %c0_197], %176 {strides = array<i32>} : memref<1x8x64xf32, #tpu.memory_space<vmem>>, vector<1x8x64xf32>,
    %c0_198 = arith.constant 0 : index
    %c0_199 = arith.constant 0 : index
    %c0_200 = arith.constant 0 : index
    %178 = tpu.strided_load %arg18[%c0_198, %c0_199, %c0_200] {strides = array<i32: 1, 4, 1>} : memref<1x8x64xf32, #tpu.memory_space<vmem>>, vector<1x2x64xf32>
    %c0_201 = arith.constant 0 : index
    %c1_202 = arith.constant 1 : index
    %c0_203 = arith.constant 0 : index
    %179 = tpu.strided_load %arg18[%c0_201, %c1_202, %c0_203] {strides = array<i32: 1, 4, 1>} : memref<1x8x64xf32, #tpu.memory_space<vmem>>, vector<1x2x64xf32>
    %180 = arith.maximumf %178, %179 : vector<1x2x64xf32>
    %c0_204 = arith.constant 0 : index
    %c1_205 = arith.constant 1 : index
    %c0_206 = arith.constant 0 : index
    %c64 = arith.constant 64 : index
    %181 = vector.load %arg16[%c0_204, %c1_205, %c0_206, %c64] : memref<2x2x3x128xf32, #tpu.memory_space<vmem>>, vector<1x1x2x64xf32>
    %182 = vector.shape_cast %181 : vector<1x1x2x64xf32> to vector<1x2x64xf32>
    %183 = vector.shape_cast %180 : vector<1x2x64xf32> to vector<1x1x2x64xf32>
    tpu.vector_store %arg16[%c0_204, %c1_205, %c0_206, %c64], %183 {strides = array<i32>} : memref<2x2x3x128xf32, #tpu.memory_space<vmem>>, vector<1x1x2x64xf32>,
    %c0_207 = arith.constant 0 : index
    %c2_208 = arith.constant 2 : index
    %c0_209 = arith.constant 0 : index
    %184 = tpu.strided_load %arg18[%c0_207, %c2_208, %c0_209] {strides = array<i32: 1, 4, 1>} : memref<1x8x64xf32, #tpu.memory_space<vmem>>, vector<1x2x64xf32>
    %c0_210 = arith.constant 0 : index
    %c3_211 = arith.constant 3 : index
    %c0_212 = arith.constant 0 : index
    %185 = tpu.strided_load %arg18[%c0_210, %c3_211, %c0_212] {strides = array<i32: 1, 4, 1>} : memref<1x8x64xf32, #tpu.memory_space<vmem>>, vector<1x2x64xf32>
    %186 = arith.maximumf %184, %185 : vector<1x2x64xf32>
    %c0_213 = arith.constant 0 : index
    %c1_214 = arith.constant 1 : index
    %c1_215 = arith.constant 1 : index
    %c0_216 = arith.constant 0 : index
    %187 = vector.load %arg16[%c0_213, %c1_214, %c1_215, %c0_216] : memref<2x2x3x128xf32, #tpu.memory_space<vmem>>, vector<1x1x2x64xf32>
    %188 = vector.shape_cast %187 : vector<1x1x2x64xf32> to vector<1x2x64xf32>
    %189 = vector.shape_cast %186 : vector<1x2x64xf32> to vector<1x1x2x64xf32>
    tpu.vector_store %arg16[%c0_213, %c1_214, %c1_215, %c0_216], %189 {strides = array<i32>} : memref<2x2x3x128xf32, #tpu.memory_space<vmem>>, vector<1x1x2x64xf32>,
    %190 = vector.extract_strided_slice %171 {offsets = [0, 2, 0, 0], sizes = [1, 1, 8, 64], strides = [1, 1, 1, 1]} : vector<1x4x8x64xf32> to vector<1x1x8x64xf32>
    %191 = vector.shape_cast %190 : vector<1x1x8x64xf32> to vector<1x8x64xf32>
    %192 = vector.extract_strided_slice %171 {offsets = [0, 3, 0, 0], sizes = [1, 1, 8, 64], strides = [1, 1, 1, 1]} : vector<1x4x8x64xf32> to vector<1x1x8x64xf32>
    %193 = vector.shape_cast %192 : vector<1x1x8x64xf32> to vector<1x8x64xf32>
    %194 = arith.maximumf %191, %193 : vector<1x8x64xf32>
    %c0_217 = arith.constant 0 : index
    %c0_218 = arith.constant 0 : index
    %c0_219 = arith.constant 0 : index
    %195 = vector.load %arg18[%c0_217, %c0_218, %c0_219] : memref<1x8x64xf32, #tpu.memory_space<vmem>>, vector<1x8x64xf32>
    tpu.vector_store %arg18[%c0_217, %c0_218, %c0_219], %194 {strides = array<i32>} : memref<1x8x64xf32, #tpu.memory_space<vmem>>, vector<1x8x64xf32>,
    %c0_220 = arith.constant 0 : index
    %c0_221 = arith.constant 0 : index
    %c0_222 = arith.constant 0 : index
    %196 = tpu.strided_load %arg18[%c0_220, %c0_221, %c0_222] {strides = array<i32: 1, 4, 1>} : memref<1x8x64xf32, #tpu.memory_space<vmem>>, vector<1x2x64xf32>
    %c0_223 = arith.constant 0 : index
    %c1_224 = arith.constant 1 : index
    %c0_225 = arith.constant 0 : index
    %197 = tpu.strided_load %arg18[%c0_223, %c1_224, %c0_225] {strides = array<i32: 1, 4, 1>} : memref<1x8x64xf32, #tpu.memory_space<vmem>>, vector<1x2x64xf32>
    %198 = arith.maximumf %196, %197 : vector<1x2x64xf32>
    %c1_226 = arith.constant 1 : index
    %c0_227 = arith.constant 0 : index
    %c0_228 = arith.constant 0 : index
    %c64_229 = arith.constant 64 : index
    %199 = vector.load %arg16[%c1_226, %c0_227, %c0_228, %c64_229] : memref<2x2x3x128xf32, #tpu.memory_space<vmem>>, vector<1x1x2x64xf32>
    %200 = vector.shape_cast %199 : vector<1x1x2x64xf32> to vector<1x2x64xf32>
    %201 = vector.shape_cast %198 : vector<1x2x64xf32> to vector<1x1x2x64xf32>
    tpu.vector_store %arg16[%c1_226, %c0_227, %c0_228, %c64_229], %201 {strides = array<i32>} : memref<2x2x3x128xf32, #tpu.memory_space<vmem>>, vector<1x1x2x64xf32>,
    %c0_230 = arith.constant 0 : index
    %c2_231 = arith.constant 2 : index
    %c0_232 = arith.constant 0 : index
    %202 = tpu.strided_load %arg18[%c0_230, %c2_231, %c0_232] {strides = array<i32: 1, 4, 1>} : memref<1x8x64xf32, #tpu.memory_space<vmem>>, vector<1x2x64xf32>
    %c0_233 = arith.constant 0 : index
    %c3_234 = arith.constant 3 : index
    %c0_235 = arith.constant 0 : index
    %203 = tpu.strided_load %arg18[%c0_233, %c3_234, %c0_235] {strides = array<i32: 1, 4, 1>} : memref<1x8x64xf32, #tpu.memory_space<vmem>>, vector<1x2x64xf32>
    %204 = arith.maximumf %202, %203 : vector<1x2x64xf32>
    %c1_236 = arith.constant 1 : index
    %c0_237 = arith.constant 0 : index
    %c1_238 = arith.constant 1 : index
    %c0_239 = arith.constant 0 : index
    %205 = vector.load %arg16[%c1_236, %c0_237, %c1_238, %c0_239] : memref<2x2x3x128xf32, #tpu.memory_space<vmem>>, vector<1x1x2x64xf32>
    %206 = vector.shape_cast %205 : vector<1x1x2x64xf32> to vector<1x2x64xf32>
    %207 = vector.shape_cast %204 : vector<1x2x64xf32> to vector<1x1x2x64xf32>
    tpu.vector_store %arg16[%c1_236, %c0_237, %c1_238, %c0_239], %207 {strides = array<i32>} : memref<2x2x3x128xf32, #tpu.memory_space<vmem>>, vector<1x1x2x64xf32>,
    %cst_240 = arith.constant 0.000000e+00 : f32
    %208 = vector.broadcast %cst_240 : f32 to vector<2x128xf32>
    %c0_241 = arith.constant 0 : index
    %c0_242 = arith.constant 0 : index
    %c0_243 = arith.constant 0 : index
    %c0_244 = arith.constant 0 : index
    %209 = vector.load %arg16[%c0_241, %c0_242, %c0_243, %c0_244] : memref<2x2x3x128xf32, #tpu.memory_space<vmem>>, vector<1x1x2x128xf32>
    %210 = vector.shape_cast %209 : vector<1x1x2x128xf32> to vector<1x2x128xf32>
    %211 = vector.shape_cast %210 : vector<1x2x128xf32> to vector<2x128xf32>
    %212 = arith.truncf %211 : vector<2x128xf32> to vector<2x128xbf16>
    %c0_245 = arith.constant 0 : index
    %c0_246 = arith.constant 0 : index
    %c0_247 = arith.constant 0 : index
    %213 = vector.load %arg8[%c0_245, %c0_246, %c0_247] : memref<3x128x128xbf16, #tpu.memory_space<vmem>>, vector<1x128x128xbf16>
    %214 = vector.shape_cast %213 : vector<1x128x128xbf16> to vector<128x128xbf16>
    %cst_248 = arith.constant dense<0.000000e+00> : vector<2x128xf32>
    %215 = tpu.matmul %212, %214, %cst_248 {dimension_numbers = #tpu.dot_dimension_numbers<[1], [0], [0], [1], [0, 0, 1, 1], [], []>} : vector<2x128xbf16>, vector<128x128xbf16>, vector<2x128xf32> -> vector<2x128xf32>
    %216 = arith.addf %208, %215 : vector<2x128xf32>
    %c0_249 = arith.constant 0 : index
    %c0_250 = arith.constant 0 : index
    %c1_251 = arith.constant 1 : index
    %c0_252 = arith.constant 0 : index
    %217 = vector.load %arg16[%c0_249, %c0_250, %c1_251, %c0_252] : memref<2x2x3x128xf32, #tpu.memory_space<vmem>>, vector<1x1x2x64xf32>
    %218 = vector.shape_cast %217 : vector<1x1x2x64xf32> to vector<1x2x64xf32>
    %219 = vector.shape_cast %218 : vector<1x2x64xf32> to vector<2x64xf32>
    %220 = arith.truncf %219 : vector<2x64xf32> to vector<2x64xbf16>
    %c0_253 = arith.constant 0 : index
    %c0_254 = arith.constant 0 : index
    %c0_255 = arith.constant 0 : index
    %221 = vector.load %arg9[%c0_253, %c0_254, %c0_255] : memref<3x64x128xbf16, #tpu.memory_space<vmem>>, vector<1x64x128xbf16>
    %222 = vector.shape_cast %221 : vector<1x64x128xbf16> to vector<64x128xbf16>
    %cst_256 = arith.constant dense<0.000000e+00> : vector<2x128xf32>
    %223 = tpu.matmul %220, %222, %cst_256 {dimension_numbers = #tpu.dot_dimension_numbers<[1], [0], [0], [1], [0, 0, 1, 1], [], []>} : vector<2x64xbf16>, vector<64x128xbf16>, vector<2x128xf32> -> vector<2x128xf32>
    %224 = arith.addf %216, %223 : vector<2x128xf32>
    %c0_257 = arith.constant 0 : index
    %c1_258 = arith.constant 1 : index
    %c0_259 = arith.constant 0 : index
    %c0_260 = arith.constant 0 : index
    %225 = vector.load %arg16[%c0_257, %c1_258, %c0_259, %c0_260] : memref<2x2x3x128xf32, #tpu.memory_space<vmem>>, vector<1x1x2x128xf32>
    %226 = vector.shape_cast %225 : vector<1x1x2x128xf32> to vector<1x2x128xf32>
    %227 = vector.shape_cast %226 : vector<1x2x128xf32> to vector<2x128xf32>
    %228 = arith.truncf %227 : vector<2x128xf32> to vector<2x128xbf16>
    %c1_261 = arith.constant 1 : index
    %c0_262 = arith.constant 0 : index
    %c0_263 = arith.constant 0 : index
    %229 = vector.load %arg8[%c1_261, %c0_262, %c0_263] : memref<3x128x128xbf16, #tpu.memory_space<vmem>>, vector<1x128x128xbf16>
    %230 = vector.shape_cast %229 : vector<1x128x128xbf16> to vector<128x128xbf16>
    %cst_264 = arith.constant dense<0.000000e+00> : vector<2x128xf32>
    %231 = tpu.matmul %228, %230, %cst_264 {dimension_numbers = #tpu.dot_dimension_numbers<[1], [0], [0], [1], [0, 0, 1, 1], [], []>} : vector<2x128xbf16>, vector<128x128xbf16>, vector<2x128xf32> -> vector<2x128xf32>
    %232 = arith.addf %224, %231 : vector<2x128xf32>
    %c0_265 = arith.constant 0 : index
    %c1_266 = arith.constant 1 : index
    %c1_267 = arith.constant 1 : index
    %c0_268 = arith.constant 0 : index
    %233 = vector.load %arg16[%c0_265, %c1_266, %c1_267, %c0_268] : memref<2x2x3x128xf32, #tpu.memory_space<vmem>>, vector<1x1x2x64xf32>
    %234 = vector.shape_cast %233 : vector<1x1x2x64xf32> to vector<1x2x64xf32>
    %235 = vector.shape_cast %234 : vector<1x2x64xf32> to vector<2x64xf32>
    %236 = arith.truncf %235 : vector<2x64xf32> to vector<2x64xbf16>
    %c1_269 = arith.constant 1 : index
    %c0_270 = arith.constant 0 : index
    %c0_271 = arith.constant 0 : index
    %237 = vector.load %arg9[%c1_269, %c0_270, %c0_271] : memref<3x64x128xbf16, #tpu.memory_space<vmem>>, vector<1x64x128xbf16>
    %238 = vector.shape_cast %237 : vector<1x64x128xbf16> to vector<64x128xbf16>
    %cst_272 = arith.constant dense<0.000000e+00> : vector<2x128xf32>
    %239 = tpu.matmul %236, %238, %cst_272 {dimension_numbers = #tpu.dot_dimension_numbers<[1], [0], [0], [1], [0, 0, 1, 1], [], []>} : vector<2x64xbf16>, vector<64x128xbf16>, vector<2x128xf32> -> vector<2x128xf32>
    %240 = arith.addf %232, %239 : vector<2x128xf32>
    %c1_273 = arith.constant 1 : index
    %c0_274 = arith.constant 0 : index
    %c0_275 = arith.constant 0 : index
    %c0_276 = arith.constant 0 : index
    %241 = vector.load %arg16[%c1_273, %c0_274, %c0_275, %c0_276] : memref<2x2x3x128xf32, #tpu.memory_space<vmem>>, vector<1x1x2x128xf32>
    %242 = vector.shape_cast %241 : vector<1x1x2x128xf32> to vector<1x2x128xf32>
    %243 = vector.shape_cast %242 : vector<1x2x128xf32> to vector<2x128xf32>
    %244 = arith.truncf %243 : vector<2x128xf32> to vector<2x128xbf16>
    %c2_277 = arith.constant 2 : index
    %c0_278 = arith.constant 0 : index
    %c0_279 = arith.constant 0 : index
    %245 = vector.load %arg8[%c2_277, %c0_278, %c0_279] : memref<3x128x128xbf16, #tpu.memory_space<vmem>>, vector<1x128x128xbf16>
    %246 = vector.shape_cast %245 : vector<1x128x128xbf16> to vector<128x128xbf16>
    %cst_280 = arith.constant dense<0.000000e+00> : vector<2x128xf32>
    %247 = tpu.matmul %244, %246, %cst_280 {dimension_numbers = #tpu.dot_dimension_numbers<[1], [0], [0], [1], [0, 0, 1, 1], [], []>} : vector<2x128xbf16>, vector<128x128xbf16>, vector<2x128xf32> -> vector<2x128xf32>
    %248 = arith.addf %240, %247 : vector<2x128xf32>
    %c1_281 = arith.constant 1 : index
    %c0_282 = arith.constant 0 : index
    %c1_283 = arith.constant 1 : index
    %c0_284 = arith.constant 0 : index
    %249 = vector.load %arg16[%c1_281, %c0_282, %c1_283, %c0_284] : memref<2x2x3x128xf32, #tpu.memory_space<vmem>>, vector<1x1x2x64xf32>
    %250 = vector.shape_cast %249 : vector<1x1x2x64xf32> to vector<1x2x64xf32>
    %251 = vector.shape_cast %250 : vector<1x2x64xf32> to vector<2x64xf32>
    %252 = arith.truncf %251 : vector<2x64xf32> to vector<2x64xbf16>
    %c2_285 = arith.constant 2 : index
    %c0_286 = arith.constant 0 : index
    %c0_287 = arith.constant 0 : index
    %253 = vector.load %arg9[%c2_285, %c0_286, %c0_287] : memref<3x64x128xbf16, #tpu.memory_space<vmem>>, vector<1x64x128xbf16>
    %254 = vector.shape_cast %253 : vector<1x64x128xbf16> to vector<64x128xbf16>
    %cst_288 = arith.constant dense<0.000000e+00> : vector<2x128xf32>
    %255 = tpu.matmul %252, %254, %cst_288 {dimension_numbers = #tpu.dot_dimension_numbers<[1], [0], [0], [1], [0, 0, 1, 1], [], []>} : vector<2x64xbf16>, vector<64x128xbf16>, vector<2x128xf32> -> vector<2x128xf32>
    %256 = arith.addf %248, %255 : vector<2x128xf32>
    %c0_289 = arith.constant 0 : index
    %c0_290 = arith.constant 0 : index
    %257 = vector.load %arg10[%c0_289, %c0_290] : memref<1x128xf32, #tpu.memory_space<vmem>>, vector<1x128xf32>
    %258 = vector.broadcast %257 : vector<1x128xf32> to vector<2x128xf32>
    %259 = arith.addf %256, %258 : vector<2x128xf32>
    %cst_291 = arith.constant 0.000000e+00 : f32
    %260 = vector.broadcast %cst_291 : f32 to vector<2x128xf32>
    %261 = arith.maximumf %259, %260 : vector<2x128xf32>
    %cst_292 = arith.constant dense<0.000000e+00> : vector<128xf32>
    %262 = vector.multi_reduction <add>, %261, %cst_292 [0] : vector<2x128xf32> to vector<128xf32>
    %263 = vector.shape_cast %262 : vector<128xf32> to vector<1x128xf32>
    %264 = arith.truncf %263 : vector<1x128xf32> to vector<1x128xbf16>
    %c0_293 = arith.constant 0 : index
    %c0_294 = arith.constant 0 : index
    %265 = vector.load %arg11[%c0_293, %c0_294] : memref<128x128xbf16, #tpu.memory_space<vmem>>, vector<128x128xbf16>
    %cst_295 = arith.constant dense<0.000000e+00> : vector<1x128xf32>
    %266 = tpu.matmul %264, %265, %cst_295 {dimension_numbers = #tpu.dot_dimension_numbers<[1], [0], [0], [1], [0, 0, 1, 1], [], []>} : vector<1x128xbf16>, vector<128x128xbf16>, vector<1x128xf32> -> vector<1x128xf32>
    %c0_296 = arith.constant 0 : index
    %c0_297 = arith.constant 0 : index
    %267 = vector.load %arg12[%c0_296, %c0_297] : memref<1x128xf32, #tpu.memory_space<vmem>>, vector<1x128xf32>
    %268 = arith.addf %266, %267 : vector<1x128xf32>
    %269 = arith.mulf %268, %268 : vector<1x128xf32>
    %cst_298 = arith.constant dense<0.000000e+00> : vector<1xf32>
    %270 = vector.multi_reduction <add>, %269, %cst_298 [1] : vector<1x128xf32> to vector<1xf32>
    %271 = vector.shape_cast %270 : vector<1xf32> to vector<1x1xf32>
    %cst_299 = arith.constant 1.000000e-24 : f32
    %272 = vector.broadcast %cst_299 : f32 to vector<1x1xf32>
    %273 = arith.maximumf %271, %272 : vector<1x1xf32>
    %274 = math.rsqrt %273 : vector<1x1xf32>
    %275 = vector.broadcast %274 : vector<1x1xf32> to vector<1x128xf32>
    %276 = arith.mulf %268, %275 : vector<1x128xf32>
    %c0_300 = arith.constant 0 : index
    %c0_301 = arith.constant 0 : index
    %c0_302 = arith.constant 0 : index
    %277 = vector.load %arg13[%c0_300, %c0_301, %c0_302] : memref<1x1x128xf32, #tpu.memory_space<vmem>>, vector<1x1x128xf32>
    %278 = vector.shape_cast %277 : vector<1x1x128xf32> to vector<1x128xf32>
    %279 = vector.shape_cast %276 : vector<1x128xf32> to vector<1x1x128xf32>
    tpu.vector_store %arg13[%c0_300, %c0_301, %c0_302], %279 {strides = array<i32>} : memref<1x1x128xf32, #tpu.memory_space<vmem>>, vector<1x1x128xf32>,
    return
  }
  func.func @transform_0(%arg0: i32) -> (i32, i32, i32, i32, i32) {
    %c0_i32 = arith.constant 0 : i32
    %c0_i32_0 = arith.constant 0 : i32
    %c0_i32_1 = arith.constant 0 : i32
    %c0_i32_2 = arith.constant 0 : i32
    %c0_i32_3 = arith.constant 0 : i32
    return %arg0, %c0_i32, %c0_i32_0, %c0_i32_1, %c0_i32_2 : i32, i32, i32, i32, i32
  }
  func.func @transform_1(%arg0: i32) -> (i32, i32, i32) {
    %c0_i32 = arith.constant 0 : i32
    %c0_i32_0 = arith.constant 0 : i32
    %c0_i32_1 = arith.constant 0 : i32
    %c0_i32_2 = arith.constant 0 : i32
    return %c0_i32, %c0_i32_0, %c0_i32_1 : i32, i32, i32
  }
  func.func @transform_2(%arg0: i32) -> (i32, i32, i32) {
    %c0_i32 = arith.constant 0 : i32
    %c0_i32_0 = arith.constant 0 : i32
    %c0_i32_1 = arith.constant 0 : i32
    %c0_i32_2 = arith.constant 0 : i32
    return %c0_i32, %c0_i32_0, %c0_i32_1 : i32, i32, i32
  }
  func.func @transform_3(%arg0: i32) -> (i32, i32) {
    %c0_i32 = arith.constant 0 : i32
    %c0_i32_0 = arith.constant 0 : i32
    %c0_i32_1 = arith.constant 0 : i32
    return %c0_i32, %c0_i32_0 : i32, i32
  }
  func.func @transform_4(%arg0: i32) -> (i32, i32, i32) {
    %c0_i32 = arith.constant 0 : i32
    %c0_i32_0 = arith.constant 0 : i32
    %c0_i32_1 = arith.constant 0 : i32
    %c0_i32_2 = arith.constant 0 : i32
    return %c0_i32, %c0_i32_0, %c0_i32_1 : i32, i32, i32
  }
  func.func @transform_5(%arg0: i32) -> (i32, i32, i32) {
    %c0_i32 = arith.constant 0 : i32
    %c0_i32_0 = arith.constant 0 : i32
    %c0_i32_1 = arith.constant 0 : i32
    %c0_i32_2 = arith.constant 0 : i32
    return %c0_i32, %c0_i32_0, %c0_i32_1 : i32, i32, i32
  }
  func.func @transform_6(%arg0: i32) -> (i32, i32) {
    %c0_i32 = arith.constant 0 : i32
    %c0_i32_0 = arith.constant 0 : i32
    %c0_i32_1 = arith.constant 0 : i32
    return %c0_i32, %c0_i32_0 : i32, i32
  }
  func.func @transform_7(%arg0: i32) -> (i32, i32, i32) {
    %c0_i32 = arith.constant 0 : i32
    %c0_i32_0 = arith.constant 0 : i32
    %c0_i32_1 = arith.constant 0 : i32
    %c0_i32_2 = arith.constant 0 : i32
    return %c0_i32, %c0_i32_0, %c0_i32_1 : i32, i32, i32
  }
  func.func @transform_8(%arg0: i32) -> (i32, i32, i32) {
    %c0_i32 = arith.constant 0 : i32
    %c0_i32_0 = arith.constant 0 : i32
    %c0_i32_1 = arith.constant 0 : i32
    %c0_i32_2 = arith.constant 0 : i32
    return %c0_i32, %c0_i32_0, %c0_i32_1 : i32, i32, i32
  }
  func.func @transform_9(%arg0: i32) -> (i32, i32) {
    %c0_i32 = arith.constant 0 : i32
    %c0_i32_0 = arith.constant 0 : i32
    %c0_i32_1 = arith.constant 0 : i32
    return %c0_i32, %c0_i32_0 : i32, i32
  }
  func.func @transform_10(%arg0: i32) -> (i32, i32) {
    %c0_i32 = arith.constant 0 : i32
    %c0_i32_0 = arith.constant 0 : i32
    %c0_i32_1 = arith.constant 0 : i32
    return %c0_i32, %c0_i32_0 : i32, i32
  }
  func.func @transform_11(%arg0: i32) -> (i32, i32) {
    %c0_i32 = arith.constant 0 : i32
    %c0_i32_0 = arith.constant 0 : i32
    %c0_i32_1 = arith.constant 0 : i32
    return %c0_i32, %c0_i32_0 : i32, i32
  }
  func.func @transform_12(%arg0: i32) -> (i32, i32, i32) {
    %c0_i32 = arith.constant 0 : i32
    %c0_i32_0 = arith.constant 0 : i32
    %c0_i32_1 = arith.constant 0 : i32
    return %arg0, %c0_i32, %c0_i32_0 : i32, i32, i32
  }
}

</mosaic_0001>

<bundles_post_ra>
// kernel: feature_extractor_forward.1
= control target key start
LH: loop header
LB: loop body
LE: loop exit
PB: predicated region body
PF: predicated region fallthrough
CT: control target
= control target key end

     0   :  { %s10942_s0 = inlined_call_operand.vmem [shape: f32[2,16,2,32,6], index: 0, kind: input, shape index: {}]   ;;  %s10943_s1 = inlined_call_operand.vmem [shape: bf16[3,6,32], index: 1, kind: input, shape index: {}]   ;;  %s10944_s2 = inlined_call_operand.vmem [shape: bf16[3,3,32], index: 2, kind: input, shape index: {}]   ;;  %s10945_s3 = inlined_call_operand.vmem [shape: f32[1,32], index: 3, kind: input, shape index: {}]   ;;  %s10946_s4 = inlined_call_operand.vmem [shape: bf16[3,64,64], index: 4, kind: input, shape index: {}]   ;;  %s10947_s5 = inlined_call_operand.vmem [shape: bf16[3,32,64], index: 5, kind: input, shape index: {}]   ;;  %s10948_s6 = inlined_call_operand.vmem [shape: f32[1,64], index: 6, kind: input, shape index: {}]   ;;  %s10949_s7 = inlined_call_operand.vmem [shape: bf16[3,128,128], index: 7, kind: input, shape index: {}]   ;;  %s10950_s8 = inlined_call_operand.vmem [shape: bf16[3,64,128], index: 8, kind: input, shape index: {}]   ;;  %s10951_s9 = inlined_call_operand.vmem [shape: f32[1,128], index: 9, kind: input, shape index: {}]   ;;  %s10952_s10 = inlined_call_operand.vmem [shape: bf16[128,128], index: 10, kind: input, shape index: {}]   ;;  %s10953_s11 = inlined_call_operand.vmem [shape: f32[1,128], index: 11, kind: input, shape index: {}]   ;;  %s10954_s12 = inlined_call_operand.hbm [shape: f32[2,1,128], index: 12, kind: output, shape index: {}]  }
   0x1   :  { %10955 = sst [smem:[#allocation10_spill]] %s10942_s0 }
   0x2   :  { %10956 = sst [smem:[#allocation11_spill]] %s10943_s1 }
   0x3   :  { %17 = vsyncpa [#allocation8], 0 }
   0x4   :  { %19 = vsyncpa [#allocation8 + $0x1], 0  ;;  %s8902_s21 = smov 0   ;;  %s8904_s22 = smov 0  }
   0x5   :  { %s8906_s23 = smov 0   ;;  %s8908_s24 = smov 0  }
   0x6 LB: > { %s8923_s25 = sadd.s32 4294967295, %s8827_s24   ;;  %s6975_s26 = sadd.s32 4294967294, %s8827_s24   ;;  %s8827_s24 = sphi %s8908_s24, %s10964_s24   ;;  %s8823_s23 = sphi %s8906_s23, %s10963_s23   ;;  %s8819_s22 = sphi %s8904_s22, %s10962_s22   ;;  %s8815_s21 = sphi %s8902_s21, %s10961_s21  }
   0x7   : > { %s8927_s27 = sadd.s32 1, %s8827_s24   ;;  %s289_s28 = sadd.s32 1, %s8823_s23 }
   0x8   : > { %s286_s29 = ssub.s32 %s8827_s24, %s8927_s27  ;;  %p299_p0 = scmp.ne.s32.totalorder %s8823_s23, %s8819_s22 }
   0x9   : > { %p287_p1 = scmp.eq.s32.totalorder %s286_s29, 0  ;;  %p300_p2 = scmp.eq.s32.totalorder %s8923_s25, 1 }
   0xa   : > { %p305_p3 = scmp.ne.s32.totalorder %s8819_s22, %s8815_s21  ;;  %p306_p4 = scmp.eq.s32.totalorder %s6975_s26, 1 }
   0xb   : > { %s8938_s30 = scalar_select %p287_p1, %s8823_s23, %s289_s28  }
   0xc   : > { %p8940_p5 = por %p300_p2, %p299_p0  ;;  %p8944_p6 = por %p306_p4, %p305_p3 }
   0xd   : > { %p6978_p7 = scmp.ge.s32.totalorder %s8827_s24, 1  ;;  %p365_p8 = scmp.lt.s32.totalorder %s8827_s24, 3 }
   0xf   : > { %p366_p9 = pnand %p6978_p7, %p365_p8 }
  0x10   : > { %p406_p10 = scmp.lt.s32.totalorder (!%p366_p9), %s8923_s25, 1  ;;  %vm412_vm0 = vcmask (!%p366_p9), 48128   ;;  %v8829_v0 = vmov (!%p366_p9), 0.0   ;;  %vm417_vm1 = vcmask (!%p366_p9), 40960   ;;  %s10959_s0 = sld [smem:[#allocation10_spill]] (!%p366_p9)  ;;  %vm2807_vm2 = vcmask (!%p366_p9), 1042432  }
  0x11   : > { %369 = sbr.rel (%p366_p9) target bundleno = 2231 (0x8b7), region = 68  ;;  %421 = vst.msk [vmem:[#allocation2 + $0x38] sm:$0xff] (!%p366_p9), %vm412_vm0, %v8829_v0  ;;  %413 = vst.msk [vmem:[#allocation2] sm:$0xff] (!%p366_p9), %vm412_vm0, %v8829_v0  ;;  %s8830_s20 = smov (!%p366_p9), 3   ;;  %vm905_vm3 = vcmask (!%p366_p9), 48152   ;;  %vm1290_vm4 = vcmask (!%p366_p9), 23552  }
  0x12   : > { %414 = vst.msk [vmem:[#allocation2 + $0x8] sm:$0xff] (!%p366_p9), %vm412_vm0, %v8829_v0  ;;  %415 = vst.msk [vmem:[#allocation2 + $0x10] sm:$0xff] (!%p366_p9), %vm412_vm0, %v8829_v0  ;;  %s8831_s26 = smov (!%p366_p9), 125   ;;  %s10960_s1 = sld [smem:[#allocation11_spill]] (!%p366_p9)  ;;  %vm2415_vm5 = vcmask (!%p366_p9), 1040384   ;;  %vm2416_vm6 = vcmask (!%p366_p9), 1041408  }
  0x13   : > { %416 = vst.msk [vmem:[#allocation2 + $0x18] sm:$0xff] (!%p366_p9), %vm412_vm0, %v8829_v0  ;;  %419 = vst.msk [vmem:[#allocation2 + $0x28] sm:$0xff] (!%p366_p9), %vm412_vm0, %v8829_v0  ;;  %v7206_v45 = vld [vmem:[%s10944_s2 + $0x2] sm:$0x3] (!%p366_p9)  ;;  %v8832_v48 = vmov (!%p366_p9), 65535   ;;  %vm5473_vm7 = vcmask (!%p366_p9), 261120  }
  0x14   : > { %420 = vst.msk [vmem:[#allocation2 + $0x30] sm:$0xff] (!%p366_p9), %vm412_vm0, %v8829_v0  ;;  %422 = vst.msk [vmem:[#allocation2 + $0x40] sm:$0xff] (!%p366_p9), %vm412_vm0, %v8829_v0  ;;  %v2417_v49 = vsel (!%p366_p9), %vm2415_vm5, 4294967295, %v8832_v48  ;;  %vm5435_vm8 = vcmask (!%p366_p9), 523264   ;;  %vm5437_vm9 = vcmask (!%p366_p9), 516096   ;;  %vm5526_vm10 = vcmask (!%p366_p9), 523520  }
  0x15   : > { %424 = vst.msk [vmem:[#allocation2 + $0x50] sm:$0xff] (!%p366_p9), %vm412_vm0, %v8829_v0  ;;  %425 = vst.msk [vmem:[#allocation2 + $0x58] sm:$0xff] (!%p366_p9), %vm412_vm0, %v8829_v0  ;;  %v9417_v54 = vsel (!%p366_p9), %vm2416_vm6, %v2417_v49, 0  ;;  %vm8834_vm11 = vmmov (!%p366_p9), 0   ;;  %vm6196_vm12 = vcmask (!%p366_p9), 1041920   ;;  %vm6203_vm13 = vcmask (!%p366_p9), 517120  }
  0x16   : > { %426 = vst.msk [vmem:[#allocation2 + $0x60] sm:$0xff] (!%p366_p9), %vm412_vm0, %v8829_v0  ;;  %427 = vst.msk [vmem:[#allocation2 + $0x68] sm:$0xff] (!%p366_p9), %vm412_vm0, %v8829_v0  ;;  %v3845_v56 = vand.u32 (!%p366_p9), %v7206_v45, %v9417_v54  ;;  %s404_s18 = sand.u32 (!%p366_p9), 1, %s8819_s22  }
  0x17   : > { %429 = vst.msk [vmem:[#allocation2 + $0x78] sm:$0xff] (!%p366_p9), %vm412_vm0, %v8829_v0  ;;  %430 = vst.msk [vmem:[#allocation2 + $0x80] sm:$0xff] (!%p366_p9), %vm412_vm0, %v8829_v0 }
  0x18   : > { %431 = vst.msk [vmem:[#allocation2 + $0x88] sm:$0xff] %vm412_vm0, %v8829_v0  ;;  %432 = vst.msk [vmem:[#allocation2 + $0x90] sm:$0xff] %vm412_vm0, %v8829_v0  ;;  %s9221_s15 = scalar_select %p406_p10, %s8923_s25, 1  ;;  %v7173_v6 = vld [vmem:[%s10960_s1 + $0x4] sm:$0x7] }
  0x19   : > { %434 = vst.msk [vmem:[#allocation2 + $0xa0] sm:$0xff] %vm412_vm0, %v8829_v0  ;;  %435 = vst.msk [vmem:[#allocation2 + $0xa8] sm:$0xff] %vm412_vm0, %v8829_v0  ;;  %8653 = vmatprep.subr.msk.bf16.mxu0 %vm2807_vm2, %v7173_v6  ;;  %v3295_v8 = vsel %vm2807_vm2, %v7173_v6, 0 }
  0x1a   : > { %436 = vst.msk [vmem:[#allocation2 + $0xb0] sm:$0xff] %vm412_vm0, %v8829_v0  ;;  %437 = vst.msk [vmem:[#allocation2 + $0xb8] sm:$0xff] %vm412_vm0, %v8829_v0  ;;  %s7460_s16 = sshll.u32 %s9221_s15, 10  ;;  %7873 = vmatpush3.bf16.msra.mxu0 %v3295_v8 }
  0x1b   : > { %439 = vst.msk [vmem:[#allocation2 + $0xc8] sm:$0xff] %vm412_vm0, %v8829_v0  ;;  %440 = vst.msk [vmem:[#allocation2 + $0xd0] sm:$0xff] %vm412_vm0, %v8829_v0  ;;  %s9295_s19 = scalar_lea.vmem %s10959_s0, %s7460_s16  ;;  %7938 = vmatprep.subr.bf16.mxu0 %v3845_v56  ;;  %s8833_s16 = smov 32  }
  0x1c   : > { %441 = vst.msk [vmem:[#allocation2 + $0xd8] sm:$0xff] %vm412_vm0, %v8829_v0  ;;  %442 = vst.msk [vmem:[#allocation2 + $0xe0] sm:$0xff] %vm412_vm0, %v8829_v0  ;;  %v586_v1 = vld [vmem:[%s9295_s19 + $0x10] sm:$0xff]  ;;  %v584_v2 = vld [vmem:[%s9295_s19] sm:$0xff] }
  0x1d   : > { %444 = vst.msk [vmem:[#allocation2 + $0xf0] sm:$0xff] %vm412_vm0, %v8829_v0  ;;  %445 = vst.msk [vmem:[#allocation2 + $0xf8] sm:$0xff] %vm412_vm0, %v8829_v0  ;;  %716 = vrot.lane.b32.xlu1 %v586_v1, %s8830_s20  ;;  %712 = vrot.lane.b32.xlu0 %v584_v2, %s8830_s20  ;;  %v587_v3 = vld [vmem:[%s9295_s19 + $0x18] sm:$0xff]  ;;  %v585_v4 = vld [vmem:[%s9295_s19 + $0x8] sm:$0xff] }
  0x1e   : > { %446 = vst.msk [vmem:[#allocation2 + $0x100] sm:$0xff] %vm412_vm0, %v8829_v0  ;;  %447 = vst.msk [vmem:[#allocation2 + $0x108] sm:$0xff] %vm412_vm0, %v8829_v0  ;;  %v589_v5 = vld [vmem:[%s9295_s19 + $0x48] sm:$0xff]  ;;  %v588_v7 = vld [vmem:[%s9295_s19 + $0x40] sm:$0xff] }
  0x1f   : > { %449 = vst.msk [vmem:[#allocation2 + $0x118] sm:$0xff] %vm412_vm0, %v8829_v0  ;;  %450 = vst.msk [vmem:[#allocation2 + $0x120] sm:$0xff] %vm412_vm0, %v8829_v0  ;;  %v591_v9 = vld [vmem:[%s9295_s19 + $0x58] sm:$0xff]  ;;  %v590_v10 = vld [vmem:[%s9295_s19 + $0x50] sm:$0xff] }
  0x20   : > { %451 = vst.msk [vmem:[#allocation2 + $0x128] sm:$0xff] %vm412_vm0, %v8829_v0  ;;  %452 = vst.msk [vmem:[#allocation2 + $0x130] sm:$0xff] %vm412_vm0, %v8829_v0  ;;  %v593_v11 = vld [vmem:[%s9295_s19 + $0x88] sm:$0xff]  ;;  %v592_v12 = vld [vmem:[%s9295_s19 + $0x80] sm:$0xff] }
  0x21   : > { %454 = vst.msk [vmem:[#allocation2 + $0x140] sm:$0xff] %vm412_vm0, %v8829_v0  ;;  %455 = vst.msk [vmem:[#allocation2 + $0x148] sm:$0xff] %vm412_vm0, %v8829_v0  ;;  %718 = vrot.lane.b32.xlu1 %v587_v3, %s8830_s20  ;;  %714 = vrot.lane.b32.xlu0 %v585_v4, %s8830_s20  ;;  %v595_v13 = vld [vmem:[%s9295_s19 + $0x98] sm:$0xff]  ;;  %v594_v14 = vld [vmem:[%s9295_s19 + $0x90] sm:$0xff] }
  0x22   : > { %456 = vst.msk [vmem:[#allocation2 + $0x150] sm:$0xff] %vm412_vm0, %v8829_v0  ;;  %457 = vst.msk [vmem:[#allocation2 + $0x158] sm:$0xff] %vm412_vm0, %v8829_v0  ;;  %v597_v15 = vld [vmem:[%s9295_s19 + $0xc8] sm:$0xff]  ;;  %v596_v16 = vld [vmem:[%s9295_s19 + $0xc0] sm:$0xff] }
  0x23   : > { %459 = vst.msk [vmem:[#allocation2 + $0x168] sm:$0xff] %vm412_vm0, %v8829_v0  ;;  %460 = vst.msk [vmem:[#allocation2 + $0x170] sm:$0xff] %vm412_vm0, %v8829_v0  ;;  %v599_v17 = vld [vmem:[%s9295_s19 + $0xd8] sm:$0xff]  ;;  %v598_v18 = vld [vmem:[%s9295_s19 + $0xd0] sm:$0xff] }
  0x24   : > { %461 = vst.msk [vmem:[#allocation2 + $0x178] sm:$0xff] %vm412_vm0, %v8829_v0  ;;  %462 = vst.msk [vmem:[#allocation2 + $0x180] sm:$0xff] %vm412_vm0, %v8829_v0  ;;  %v601_v19 = vld [vmem:[%s9295_s19 + $0x108] sm:$0xff]  ;;  %v600_v20 = vld [vmem:[%s9295_s19 + $0x100] sm:$0xff] }
  0x25   : > { %464 = vst.msk [vmem:[#allocation2 + $0x190] sm:$0xff] %vm412_vm0, %v8829_v0  ;;  %465 = vst.msk [vmem:[#allocation2 + $0x198] sm:$0xff] %vm412_vm0, %v8829_v0  ;;  %1100 = vrot.lane.b32.xlu1 %v585_v4, %s8831_s26  ;;  %1098 = vrot.lane.b32.xlu0 %v584_v2, %s8831_s26  ;;  %v603_v21 = vld [vmem:[%s9295_s19 + $0x118] sm:$0xff]  ;;  %v602_v22 = vld [vmem:[%s9295_s19 + $0x110] sm:$0xff] }
  0x26   : > { %466 = vst.msk [vmem:[#allocation2 + $0x1a0] sm:$0xff] %vm412_vm0, %v8829_v0  ;;  %467 = vst.msk [vmem:[#allocation2 + $0x1a8] sm:$0xff] %vm412_vm0, %v8829_v0  ;;  %v605_v23 = vld [vmem:[%s9295_s19 + $0x148] sm:$0xff]  ;;  %v604_v24 = vld [vmem:[%s9295_s19 + $0x140] sm:$0xff] }
  0x27   : > { %469 = vst.msk [vmem:[#allocation2 + $0x1b8] sm:$0xff] %vm412_vm0, %v8829_v0  ;;  %470 = vst.msk [vmem:[#allocation2 + $0x1c0] sm:$0xff] %vm412_vm0, %v8829_v0  ;;  %v607_v25 = vld [vmem:[%s9295_s19 + $0x158] sm:$0xff]  ;;  %v606_v26 = vld [vmem:[%s9295_s19 + $0x150] sm:$0xff] }
  0x28   : > { %471 = vst.msk [vmem:[#allocation2 + $0x1c8] sm:$0xff] %vm412_vm0, %v8829_v0  ;;  %472 = vst.msk [vmem:[#allocation2 + $0x1d0] sm:$0xff] %vm412_vm0, %v8829_v0  ;;  %v609_v27 = vld [vmem:[%s9295_s19 + $0x188] sm:$0xff]  ;;  %v608_v28 = vld [vmem:[%s9295_s19 + $0x180] sm:$0xff] }
  0x29   : > { %474 = vst.msk [vmem:[#allocation2 + $0x1e0] sm:$0xff] %vm412_vm0, %v8829_v0  ;;  %475 = vst.msk [vmem:[#allocation2 + $0x1e8] sm:$0xff] %vm412_vm0, %v8829_v0  ;;  %1104 = vrot.lane.b32.xlu1 %v587_v3, %s8831_s26  ;;  %1102 = vrot.lane.b32.xlu0 %v586_v1, %s8831_s26  ;;  %v611_v29 = vld [vmem:[%s9295_s19 + $0x198] sm:$0xff]  ;;  %v610_v30 = vld [vmem:[%s9295_s19 + $0x190] sm:$0xff] }
  0x2a   : > { %476 = vst.msk [vmem:[#allocation2 + $0x1f0] sm:$0xff] %vm412_vm0, %v8829_v0  ;;  %477 = vst.msk [vmem:[#allocation2 + $0x1f8] sm:$0xff] %vm412_vm0, %v8829_v0  ;;  %v613_v31 = vld [vmem:[%s9295_s19 + $0x1c8] sm:$0xff]  ;;  %v612_v32 = vld [vmem:[%s9295_s19 + $0x1c0] sm:$0xff] }
  0x2b   : > { %479 = vst.msk [vmem:[#allocation2 + $0x208] sm:$0xff] %vm412_vm0, %v8829_v0  ;;  %480 = vst.msk [vmem:[#allocation2 + $0x210] sm:$0xff] %vm412_vm0, %v8829_v0  ;;  %v615_v33 = vld [vmem:[%s9295_s19 + $0x1d8] sm:$0xff]  ;;  %v614_v34 = vld [vmem:[%s9295_s19 + $0x1d0] sm:$0xff] }
  0x2c   : > { %481 = vst.msk [vmem:[#allocation2 + $0x218] sm:$0xff] %vm412_vm0, %v8829_v0  ;;  %482 = vst.msk [vmem:[#allocation2 + $0x220] sm:$0xff] %vm412_vm0, %v8829_v0  ;;  %v617_v41 = vld [vmem:[%s9295_s19 + $0x208] sm:$0xff]  ;;  %v616_v42 = vld [vmem:[%s9295_s19 + $0x200] sm:$0xff] }
  0x2d   : > { %484 = vst.msk [vmem:[#allocation2 + $0x230] sm:$0xff] %vm412_vm0, %v8829_v0  ;;  %485 = vst.msk [vmem:[#allocation2 + $0x238] sm:$0xff] %vm412_vm0, %v8829_v0  ;;  %722 = vrot.lane.b32.xlu1 %v589_v5, %s8830_s20  ;;  %720 = vrot.lane.b32.xlu0 %v588_v7, %s8830_s20  ;;  %v619_v46 = vld [vmem:[%s9295_s19 + $0x218] sm:$0xff]  ;;  %v618_v47 = vld [vmem:[%s9295_s19 + $0x210] sm:$0xff] }
  0x2e   : > { %486 = vst.msk [vmem:[#allocation2 + $0x240] sm:$0xff] %vm412_vm0, %v8829_v0  ;;  %487 = vst.msk [vmem:[#allocation2 + $0x248] sm:$0xff] %vm412_vm0, %v8829_v0  ;;  %v621_v1 = vld [vmem:[%s9295_s19 + $0x248] sm:$0xff]  ;;  %v620_v2 = vld [vmem:[%s9295_s19 + $0x240] sm:$0xff] }
  0x2f   : > { %489 = vst.msk [vmem:[#allocation2 + $0x258] sm:$0xff] %vm412_vm0, %v8829_v0  ;;  %490 = vst.msk [vmem:[#allocation2 + $0x260] sm:$0xff] %vm412_vm0, %v8829_v0  ;;  %v622_v6 = vld [vmem:[%s9295_s19 + $0x250] sm:$0xff] }
  0x30   : > { %491 = vst.msk [vmem:[#allocation2 + $0x268] sm:$0xff] %vm412_vm0, %v8829_v0  ;;  %492 = vst.msk [vmem:[#allocation2 + $0x270] sm:$0xff] %vm412_vm0, %v8829_v0 }
  0x31   : > { %494 = vst.msk [vmem:[#allocation2 + $0x280] sm:$0xff] %vm412_vm0, %v8829_v0  ;;  %495 = vst.msk [vmem:[#allocation2 + $0x288] sm:$0xff] %vm412_vm0, %v8829_v0  ;;  %726 = vrot.lane.b32.xlu1 %v591_v9, %s8830_s20  ;;  %724 = vrot.lane.b32.xlu0 %v590_v10, %s8830_s20 }
  0x32   : > { %496 = vst.msk [vmem:[#allocation2 + $0x290] sm:$0xff] %vm412_vm0, %v8829_v0  ;;  %497 = vst.msk [vmem:[#allocation2 + $0x298] sm:$0xff] %vm412_vm0, %v8829_v0 }
  0x33   : > { %499 = vst.msk [vmem:[#allocation2 + $0x2a8] sm:$0xff] %vm412_vm0, %v8829_v0  ;;  %500 = vst.msk [vmem:[#allocation2 + $0x2b0] sm:$0xff] %vm412_vm0, %v8829_v0 }
  0x34   : > { %501 = vst.msk [vmem:[#allocation2 + $0x2b8] sm:$0xff] %vm412_vm0, %v8829_v0  ;;  %502 = vst.msk [vmem:[#allocation2 + $0x2c0] sm:$0xff] %vm412_vm0, %v8829_v0 }
  0x35   : > { %504 = vst.msk [vmem:[#allocation2 + $0x2d0] sm:$0xff] %vm412_vm0, %v8829_v0  ;;  %505 = vst.msk [vmem:[#allocation2 + $0x2d8] sm:$0xff] %vm412_vm0, %v8829_v0  ;;  %1108 = vrot.lane.b32.xlu1 %v589_v5, %s8831_s26  ;;  %1106 = vrot.lane.b32.xlu0 %v588_v7, %s8831_s26  ;;  %v623_v5 = vld [vmem:[%s9295_s19 + $0x258] sm:$0xff] }
  0x36   : > { %506 = vst.msk [vmem:[#allocation2 + $0x2e0] sm:$0xff] %vm412_vm0, %v8829_v0  ;;  %507 = vst.msk [vmem:[#allocation2 + $0x2e8] sm:$0xff] %vm412_vm0, %v8829_v0 }
  0x37   : > { %509 = vst.msk [vmem:[#allocation2 + $0x2f8] sm:$0xff] %vm412_vm0, %v8829_v0  ;;  %510 = vst.msk [vmem:[#allocation2 + $0x300] sm:$0xff] %vm412_vm0, %v8829_v0 }
  0x38   : > { %511 = vst.msk [vmem:[#allocation2 + $0x308] sm:$0xff] %vm412_vm0, %v8829_v0  ;;  %512 = vst.msk [vmem:[#allocation2 + $0x310] sm:$0xff] %vm412_vm0, %v8829_v0 }
  0x39   : > { %514 = vst.msk [vmem:[#allocation2 + $0x320] sm:$0xff] %vm412_vm0, %v8829_v0  ;;  %515 = vst.msk [vmem:[#allocation2 + $0x328] sm:$0xff] %vm412_vm0, %v8829_v0  ;;  %1112 = vrot.lane.b32.xlu1 %v591_v9, %s8831_s26  ;;  %1110 = vrot.lane.b32.xlu0 %v590_v10, %s8831_s26 }
  0x3a   : > { %516 = vst.msk [vmem:[#allocation2 + $0x330] sm:$0xff] %vm412_vm0, %v8829_v0  ;;  %517 = vst.msk [vmem:[#allocation2 + $0x338] sm:$0xff] %vm412_vm0, %v8829_v0 }
  0x3b   : > { %519 = vst.msk [vmem:[#allocation2 + $0x348] sm:$0xff] %vm412_vm0, %v8829_v0  ;;  %520 = vst.msk [vmem:[#allocation2 + $0x350] sm:$0xff] %vm412_vm0, %v8829_v0 }
  0x3c   : > { %521 = vst.msk [vmem:[#allocation2 + $0x358] sm:$0xff] %vm412_vm0, %v8829_v0  ;;  %522 = vst.msk [vmem:[#allocation2 + $0x360] sm:$0xff] %vm412_vm0, %v8829_v0 }
  0x3d   : > { %524 = vst.msk [vmem:[#allocation2 + $0x370] sm:$0xff] %vm412_vm0, %v8829_v0  ;;  %525 = vst.msk [vmem:[#allocation2 + $0x378] sm:$0xff] %vm412_vm0, %v8829_v0  ;;  %730 = vrot.lane.b32.xlu1 %v593_v11, %s8830_s20  ;;  %728 = vrot.lane.b32.xlu0 %v592_v12, %s8830_s20 }
  0x3e   : > { %526 = vst.msk [vmem:[#allocation2 + $0x380] sm:$0xff] %vm412_vm0, %v8829_v0  ;;  %527 = vst.msk [vmem:[#allocation2 + $0x388] sm:$0xff] %vm412_vm0, %v8829_v0 }
  0x3f   : > { %529 = vst.msk [vmem:[#allocation2 + $0x398] sm:$0xff] %vm412_vm0, %v8829_v0  ;;  %530 = vst.msk [vmem:[#allocation2 + $0x3a0] sm:$0xff] %vm412_vm0, %v8829_v0 }
  0x40   : > { %531 = vst.msk [vmem:[#allocation2 + $0x3a8] sm:$0xff] %vm412_vm0, %v8829_v0  ;;  %532 = vst.msk [vmem:[#allocation2 + $0x3b0] sm:$0xff] %vm412_vm0, %v8829_v0 }
  0x41   : > { %534 = vst.msk [vmem:[#allocation2 + $0x3c0] sm:$0xff] %vm412_vm0, %v8829_v0  ;;  %535 = vst.msk [vmem:[#allocation2 + $0x3c8] sm:$0xff] %vm412_vm0, %v8829_v0  ;;  %734 = vrot.lane.b32.xlu1 %v595_v13, %s8830_s20  ;;  %732 = vrot.lane.b32.xlu0 %v594_v14, %s8830_s20 }
  0x42   : > { %536 = vst.msk [vmem:[#allocation2 + $0x3d0] sm:$0xff] %vm412_vm0, %v8829_v0  ;;  %537 = vst.msk [vmem:[#allocation2 + $0x3d8] sm:$0xff] %vm412_vm0, %v8829_v0 }
  0x43   : > { %539 = vst.msk [vmem:[#allocation2 + $0x3e8] sm:$0xff] %vm412_vm0, %v8829_v0  ;;  %540 = vst.msk [vmem:[#allocation2 + $0x3f0] sm:$0xff] %vm412_vm0, %v8829_v0 }
  0x44   : > { %541 = vst.msk [vmem:[#allocation2 + $0x3f8] sm:$0xff] %vm412_vm0, %v8829_v0  ;;  %542 = vst.msk [vmem:[#allocation2 + $0x400] sm:$0xff] %vm412_vm0, %v8829_v0 }
  0x45   : > { %544 = vst.msk [vmem:[#allocation2 + $0x410] sm:$0xff] %vm412_vm0, %v8829_v0  ;;  %545 = vst.msk [vmem:[#allocation2 + $0x418] sm:$0xff] %vm412_vm0, %v8829_v0  ;;  %1116 = vrot.lane.b32.xlu1 %v593_v11, %s8831_s26  ;;  %1114 = vrot.lane.b32.xlu0 %v592_v12, %s8831_s26 }
  0x46   : > { %546 = vst.msk [vmem:[#allocation2 + $0x420] sm:$0xff] %vm412_vm0, %v8829_v0  ;;  %547 = vst.msk [vmem:[#allocation2 + $0x428] sm:$0xff] %vm412_vm0, %v8829_v0 }
  0x47   : > { %549 = vst.msk [vmem:[#allocation2 + $0x438] sm:$0xff] %vm412_vm0, %v8829_v0  ;;  %550 = vst.msk [vmem:[#allocation2 + $0x440] sm:$0xff] %vm412_vm0, %v8829_v0 }
  0x48   : > { %551 = vst.msk [vmem:[#allocation2 + $0x448] sm:$0xff] %vm412_vm0, %v8829_v0  ;;  %552 = vst.msk [vmem:[#allocation2 + $0x450] sm:$0xff] %vm412_vm0, %v8829_v0 }
  0x49   : > { %554 = vst.msk [vmem:[#allocation2 + $0x460] sm:$0xff] %vm412_vm0, %v8829_v0  ;;  %555 = vst.msk [vmem:[#allocation2 + $0x468] sm:$0xff] %vm412_vm0, %v8829_v0  ;;  %1120 = vrot.lane.b32.xlu1 %v595_v13, %s8831_s26  ;;  %1118 = vrot.lane.b32.xlu0 %v594_v14, %s8831_s26 }
  0x4a   : > { %556 = vst.msk [vmem:[#allocation2 + $0x470] sm:$0xff] %vm412_vm0, %v8829_v0  ;;  %557 = vst.msk [vmem:[#allocation2 + $0x478] sm:$0xff] %vm412_vm0, %v8829_v0 }
  0x4b   : > { %559 = vst.msk [vmem:[#allocation2 + $0x488] sm:$0xff] %vm412_vm0, %v8829_v0  ;;  %560 = vst.msk [vmem:[#allocation2 + $0x490] sm:$0xff] %vm412_vm0, %v8829_v0 }
  0x4c   : > { %561 = vst.msk [vmem:[#allocation2 + $0x498] sm:$0xff] %vm412_vm0, %v8829_v0  ;;  %562 = vst.msk [vmem:[#allocation2 + $0x4a0] sm:$0xff] %vm412_vm0, %v8829_v0 }
  0x4d   : > { %564 = vst.msk [vmem:[#allocation2 + $0x4b0] sm:$0xff] %vm412_vm0, %v8829_v0  ;;  %565 = vst.msk [vmem:[#allocation2 + $0x4b8] sm:$0xff] %vm412_vm0, %v8829_v0  ;;  %738 = vrot.lane.b32.xlu1 %v597_v15, %s8830_s20  ;;  %736 = vrot.lane.b32.xlu0 %v596_v16, %s8830_s20 }
  0x4e   : > { %566 = vst.msk [vmem:[#allocation2 + $0x4c0] sm:$0xff] %vm412_vm0, %v8829_v0  ;;  %567 = vst.msk [vmem:[#allocation2 + $0x4c8] sm:$0xff] %vm412_vm0, %v8829_v0 }
  0x4f   : > { %569 = vst.msk [vmem:[#allocation2 + $0x4d8] sm:$0xff] %vm412_vm0, %v8829_v0  ;;  %570 = vst.msk [vmem:[#allocation2 + $0x4e0] sm:$0xff] %vm412_vm0, %v8829_v0 }
  0x50   : > { %571 = vst.msk [vmem:[#allocation2 + $0x4e8] sm:$0xff] %vm412_vm0, %v8829_v0  ;;  %572 = vst.msk [vmem:[#allocation2 + $0x4f0] sm:$0xff] %vm412_vm0, %v8829_v0 }
  0x51   : > { %574 = vst.msk [vmem:[#allocation2 + $0x500] sm:$0xff] %vm412_vm0, %v8829_v0  ;;  %575 = vst.msk [vmem:[#allocation2 + $0x508] sm:$0xff] %vm412_vm0, %v8829_v0  ;;  %742 = vrot.lane.b32.xlu1 %v599_v17, %s8830_s20  ;;  %740 = vrot.lane.b32.xlu0 %v598_v18, %s8830_s20 }
  0x52   : > { %576 = vst.msk [vmem:[#allocation2 + $0x510] sm:$0xff] %vm412_vm0, %v8829_v0  ;;  %577 = vst.msk [vmem:[#allocation2 + $0x518] sm:$0xff] %vm412_vm0, %v8829_v0 }
  0x53   : > { %6181 = vst [vmem:[#allocation4] sm:$0x7] %v8829_v0  ;;  %6182 = vst [vmem:[#allocation4 + $0x4] sm:$0x7] %v8829_v0 }
  0x54   : > { %6183 = vst [vmem:[#allocation4 + $0x8] sm:$0x7] %v8829_v0  ;;  %423 = vst.msk [vmem:[#allocation2 + $0x48] sm:$0x1] %vm417_vm1, %v8829_v0 }
  0x55   : > { %418 = vst.msk [vmem:[#allocation2 + $0x20] sm:$0x1] %vm417_vm1, %v8829_v0  ;;  %428 = vst.msk [vmem:[#allocation2 + $0x70] sm:$0x1] %vm417_vm1, %v8829_v0  ;;  %1124 = vrot.lane.b32.xlu1 %v597_v15, %s8831_s26  ;;  %1122 = vrot.lane.b32.xlu0 %v596_v16, %s8831_s26 }
  0x56   : > { %433 = vst.msk [vmem:[#allocation2 + $0x98] sm:$0x1] %vm417_vm1, %v8829_v0  ;;  %438 = vst.msk [vmem:[#allocation2 + $0xc0] sm:$0x1] %vm417_vm1, %v8829_v0 }
  0x57   : > { %443 = vst.msk [vmem:[#allocation2 + $0xe8] sm:$0x1] %vm417_vm1, %v8829_v0  ;;  %448 = vst.msk [vmem:[#allocation2 + $0x110] sm:$0x1] %vm417_vm1, %v8829_v0 }
  0x58   : > { %453 = vst.msk [vmem:[#allocation2 + $0x138] sm:$0x1] %vm417_vm1, %v8829_v0  ;;  %458 = vst.msk [vmem:[#allocation2 + $0x160] sm:$0x1] %vm417_vm1, %v8829_v0 }
  0x59   : > { %463 = vst.msk [vmem:[#allocation2 + $0x188] sm:$0x1] %vm417_vm1, %v8829_v0  ;;  %468 = vst.msk [vmem:[#allocation2 + $0x1b0] sm:$0x1] %vm417_vm1, %v8829_v0  ;;  %1128 = vrot.lane.b32.xlu1 %v599_v17, %s8831_s26  ;;  %1126 = vrot.lane.b32.xlu0 %v598_v18, %s8831_s26 }
  0x5a   : > { %473 = vst.msk [vmem:[#allocation2 + $0x1d8] sm:$0x1] %vm417_vm1, %v8829_v0  ;;  %478 = vst.msk [vmem:[#allocation2 + $0x200] sm:$0x1] %vm417_vm1, %v8829_v0 }
  0x5b   : > { %483 = vst.msk [vmem:[#allocation2 + $0x228] sm:$0x1] %vm417_vm1, %v8829_v0  ;;  %488 = vst.msk [vmem:[#allocation2 + $0x250] sm:$0x1] %vm417_vm1, %v8829_v0 }
  0x5c   : > { %493 = vst.msk [vmem:[#allocation2 + $0x278] sm:$0x1] %vm417_vm1, %v8829_v0  ;;  %498 = vst.msk [vmem:[#allocation2 + $0x2a0] sm:$0x1] %vm417_vm1, %v8829_v0 }
  0x5d   : > { %503 = vst.msk [vmem:[#allocation2 + $0x2c8] sm:$0x1] %vm417_vm1, %v8829_v0  ;;  %508 = vst.msk [vmem:[#allocation2 + $0x2f0] sm:$0x1] %vm417_vm1, %v8829_v0  ;;  %746 = vrot.lane.b32.xlu1 %v601_v19, %s8830_s20  ;;  %744 = vrot.lane.b32.xlu0 %v600_v20, %s8830_s20 }
  0x5e   : > { %513 = vst.msk [vmem:[#allocation2 + $0x318] sm:$0x1] %vm417_vm1, %v8829_v0  ;;  %518 = vst.msk [vmem:[#allocation2 + $0x340] sm:$0x1] %vm417_vm1, %v8829_v0 }
  0x5f   : > { %523 = vst.msk [vmem:[#allocation2 + $0x368] sm:$0x1] %vm417_vm1, %v8829_v0  ;;  %528 = vst.msk [vmem:[#allocation2 + $0x390] sm:$0x1] %vm417_vm1, %v8829_v0 }
  0x60   : > { %533 = vst.msk [vmem:[#allocation2 + $0x3b8] sm:$0x1] %vm417_vm1, %v8829_v0  ;;  %538 = vst.msk [vmem:[#allocation2 + $0x3e0] sm:$0x1] %vm417_vm1, %v8829_v0 }
  0x61   : > { %543 = vst.msk [vmem:[#allocation2 + $0x408] sm:$0x1] %vm417_vm1, %v8829_v0  ;;  %548 = vst.msk [vmem:[#allocation2 + $0x430] sm:$0x1] %vm417_vm1, %v8829_v0  ;;  %750 = vrot.lane.b32.xlu1 %v603_v21, %s8830_s20  ;;  %748 = vrot.lane.b32.xlu0 %v602_v22, %s8830_s20 }
  0x62   : > { %553 = vst.msk [vmem:[#allocation2 + $0x458] sm:$0x1] %vm417_vm1, %v8829_v0  ;;  %558 = vst.msk [vmem:[#allocation2 + $0x480] sm:$0x1] %vm417_vm1, %v8829_v0 }
  0x63   : > { %563 = vst.msk [vmem:[#allocation2 + $0x4a8] sm:$0x1] %vm417_vm1, %v8829_v0  ;;  %568 = vst.msk [vmem:[#allocation2 + $0x4d0] sm:$0x1] %vm417_vm1, %v8829_v0 }
  0x64   : > { %573 = vst.msk [vmem:[#allocation2 + $0x4f8] sm:$0x1] %vm417_vm1, %v8829_v0  ;;  %578 = vst.msk [vmem:[#allocation2 + $0x520] sm:$0x1] %vm417_vm1, %v8829_v0 }
  0x65   : > { %1132 = vrot.lane.b32.xlu1 %v601_v19, %s8831_s26  ;;  %1130 = vrot.lane.b32.xlu0 %v600_v20, %s8831_s26  ;;  %v625_v19 = vld [vmem:[%s9295_s19 + $0x288] sm:$0xff]  ;;  %v624_v20 = vld [vmem:[%s9295_s19 + $0x280] sm:$0xff]  ;;  %5441 = vst.msk [vmem:[#allocation3 + $0x20] sm:$0xff] %vm5435_vm8, %v8829_v0  ;;  %5436 = vst.msk [vmem:[#allocation3] sm:$0xff] %vm5435_vm8, %v8829_v0 }
  0x66   : > { %5442 = vst.msk [vmem:[#allocation3 + $0x28] sm:$0x1] %vm5437_vm9, %v8829_v0  ;;  %5438 = vst.msk [vmem:[#allocation3 + $0x8] sm:$0x1] %vm5437_vm9, %v8829_v0 }
  0x67   : > { %5439 = vst.msk [vmem:[#allocation3 + $0x10] sm:$0xff] %vm5435_vm8, %v8829_v0  ;;  %5443 = vst.msk [vmem:[#allocation3 + $0x30] sm:$0xff] %vm5435_vm8, %v8829_v0 }
  0x68   : > { %5440 = vst.msk [vmem:[#allocation3 + $0x18] sm:$0x1] %vm5437_vm9, %v8829_v0  ;;  %5444 = vst.msk [vmem:[#allocation3 + $0x38] sm:$0x1] %vm5437_vm9, %v8829_v0 }
  0x69   : > { %1136 = vrot.lane.b32.xlu1 %v603_v21, %s8831_s26  ;;  %1134 = vrot.lane.b32.xlu0 %v602_v22, %s8831_s26  ;;  %5445 = vst.msk [vmem:[#allocation3 + $0x40] sm:$0xff] %vm5435_vm8, %v8829_v0  ;;  %5447 = vst.msk [vmem:[#allocation3 + $0x50] sm:$0xff] %vm5435_vm8, %v8829_v0 }
  0x6a   : > { %5446 = vst.msk [vmem:[#allocation3 + $0x48] sm:$0x1] %vm5437_vm9, %v8829_v0  ;;  %5448 = vst.msk [vmem:[#allocation3 + $0x58] sm:$0x1] %vm5437_vm9, %v8829_v0 }
  0x6b   : > { %5449 = vst.msk [vmem:[#allocation3 + $0x60] sm:$0xff] %vm5435_vm8, %v8829_v0  ;;  %5451 = vst.msk [vmem:[#allocation3 + $0x70] sm:$0xff] %vm5435_vm8, %v8829_v0 }
  0x6c   : > { %5450 = vst.msk [vmem:[#allocation3 + $0x68] sm:$0x1] %vm5437_vm9, %v8829_v0  ;;  %5452 = vst.msk [vmem:[#allocation3 + $0x78] sm:$0x1] %vm5437_vm9, %v8829_v0 }
  0x6d   : > { %754 = vrot.lane.b32.xlu1 %v605_v23, %s8830_s20  ;;  %752 = vrot.lane.b32.xlu0 %v604_v24, %s8830_s20  ;;  %5453 = vst.msk [vmem:[#allocation3 + $0x80] sm:$0xff] %vm5435_vm8, %v8829_v0 }
  0x6e   : > { %5454 = vst.msk [vmem:[#allocation3 + $0x88] sm:$0x1] %vm5437_vm9, %v8829_v0 }
  0x71   : > { %758 = vrot.lane.b32.xlu1 %v607_v25, %s8830_s20  ;;  %756 = vrot.lane.b32.xlu0 %v606_v26, %s8830_s20 }
  0x75   : > { %1140 = vrot.lane.b32.xlu1 %v605_v23, %s8831_s26  ;;  %1138 = vrot.lane.b32.xlu0 %v604_v24, %s8831_s26  ;;  %v627_v23 = vld [vmem:[%s9295_s19 + $0x298] sm:$0xff]  ;;  %v626_v24 = vld [vmem:[%s9295_s19 + $0x290] sm:$0xff] }
  0x79   : > { %1144 = vrot.lane.b32.xlu1 %v607_v25, %s8831_s26  ;;  %1142 = vrot.lane.b32.xlu0 %v606_v26, %s8831_s26 }
  0x7d   : > { %762 = vrot.lane.b32.xlu1 %v609_v27, %s8830_s20  ;;  %760 = vrot.lane.b32.xlu0 %v608_v28, %s8830_s20 }
  0x81   : > { %766 = vrot.lane.b32.xlu1 %v611_v29, %s8830_s20  ;;  %764 = vrot.lane.b32.xlu0 %v610_v30, %s8830_s20 }
  0x85   : > { %1148 = vrot.lane.b32.xlu1 %v609_v27, %s8831_s26  ;;  %1146 = vrot.lane.b32.xlu0 %v608_v28, %s8831_s26 }
  0x89   : > { %1152 = vrot.lane.b32.xlu1 %v611_v29, %s8831_s26  ;;  %1150 = vrot.lane.b32.xlu0 %v610_v30, %s8831_s26 }
  0x8d   : > { %770 = vrot.lane.b32.xlu1 %v613_v31, %s8830_s20  ;;  %768 = vrot.lane.b32.xlu0 %v612_v32, %s8830_s20 }
  0x8f   : > { %v717_v35 = vpop.permute.xlu1 %716  ;;  %v713_v36 = vpop.permute.xlu0 %712 }
  0x90   : > { %908 = vst.msk [vmem:[#allocation2 + $0x38] sm:$0xff] %vm905_vm3, %v717_v35  ;;  %906 = vst.msk [vmem:[#allocation2 + $0x28] sm:$0xff] %vm905_vm3, %v713_v36 }
  0x91   : > { %774 = vrot.lane.b32.xlu1 %v615_v33, %s8830_s20  ;;  %772 = vrot.lane.b32.xlu0 %v614_v34, %s8830_s20 }
  0x93   : > { %v719_v37 = vpop.permute.xlu1 %718  ;;  %v715_v38 = vpop.permute.xlu0 %714 }
  0x94   : > { %909 = vst.msk [vmem:[#allocation2 + $0x40] sm:$0xff] %vm905_vm3, %v719_v37  ;;  %907 = vst.msk [vmem:[#allocation2 + $0x30] sm:$0xff] %vm905_vm3, %v715_v38  ;;  %v629_v37 = vld [vmem:[%s9295_s19 + $0x2c8] sm:$0xff]  ;;  %v628_v38 = vld [vmem:[%s9295_s19 + $0x2c0] sm:$0xff] }
  0x95   : > { %1156 = vrot.lane.b32.xlu1 %v613_v31, %s8831_s26  ;;  %1154 = vrot.lane.b32.xlu0 %v612_v32, %s8831_s26 }
  0x97   : > { %v1101_v39 = vpop.permute.xlu1 %1100  ;;  %v1099_v40 = vpop.permute.xlu0 %1098 }
  0x98   : > { %1292 = vst.msk [vmem:[#allocation2 + $0x31] sm:$0xff] %vm1290_vm4, %v1101_v39  ;;  %1291 = vst.msk [vmem:[#allocation2 + $0x29] sm:$0xff] %vm1290_vm4, %v1099_v40 }
  0x99   : > { %1160 = vrot.lane.b32.xlu1 %v615_v33, %s8831_s26  ;;  %1158 = vrot.lane.b32.xlu0 %v614_v34, %s8831_s26 }
  0x9b   : > { %v1105_v43 = vpop.permute.xlu1 %1104  ;;  %v1103_v44 = vpop.permute.xlu0 %1102 }
  0x9c   : > { %1294 = vst.msk [vmem:[#allocation2 + $0x41] sm:$0xff] %vm1290_vm4, %v1105_v43  ;;  %1293 = vst.msk [vmem:[#allocation2 + $0x39] sm:$0xff] %vm1290_vm4, %v1103_v44 }
  0x9d   : > { %778 = vrot.lane.b32.xlu1 %v617_v41, %s8830_s20  ;;  %776 = vrot.lane.b32.xlu0 %v616_v42, %s8830_s20 }
  0x9f   : > { %v723_v50 = vpop.permute.xlu1 %722  ;;  %v721_v51 = vpop.permute.xlu0 %720  ;;  %v3100_v52 = vld [vmem:[#allocation2 + $0x28] sm:$0xff]  ;;  %v3101_v53 = vld [vmem:[#allocation2 + $0x30] sm:$0xff] }
  0xa0   : > { %911 = vst.msk [vmem:[#allocation2 + $0x80] sm:$0xff] %vm905_vm3, %v723_v50  ;;  %910 = vst.msk [vmem:[#allocation2 + $0x78] sm:$0xff] %vm905_vm3, %v721_v51  ;;  %v3164_v55 = vpack.c.bf16 %v3101_v53, %v3100_v52 }
  0xa1   : > { %782 = vrot.lane.b32.xlu1 %v619_v46, %s8830_s20  ;;  %780 = vrot.lane.b32.xlu0 %v618_v47, %s8830_s20 }
  0xa2   : > { %7874 = vmatprep.mubr.msk.bf16.mxu0 %vm412_vm0, %v3164_v55 }
  0xa3   : > { %v727_v57 = vpop.permute.xlu1 %726  ;;  %v725_v58 = vpop.permute.xlu0 %724  ;;  %v3102_v59 = vld [vmem:[#allocation2 + $0x38] sm:$0xff]  ;;  %v3103_v60 = vld [vmem:[#allocation2 + $0x40] sm:$0xff] }
  0xa4   : > { %913 = vst.msk [vmem:[#allocation2 + $0x90] sm:$0xff] %vm905_vm3, %v727_v57  ;;  %912 = vst.msk [vmem:[#allocation2 + $0x88] sm:$0xff] %vm905_vm3, %v725_v58  ;;  %v3165_v61 = vpack.c.bf16 %v3103_v60, %v3102_v59  ;;  %v632_v57 = vld [vmem:[%s9295_s19 + $0x300] sm:$0xff]  ;;  %v635_v60 = vld [vmem:[%s9295_s19 + $0x318] sm:$0xff] }
  0xa5   : > { %1164 = vrot.lane.b32.xlu1 %v617_v41, %s8831_s26  ;;  %1162 = vrot.lane.b32.xlu0 %v616_v42, %s8831_s26  ;;  %v631_v41 = vld [vmem:[%s9295_s19 + $0x2d8] sm:$0xff]  ;;  %v630_v42 = vld [vmem:[%s9295_s19 + $0x2d0] sm:$0xff] }
  0xa6   : > { %7875 = vmatmul.mubr.msk.bf16.vlgmr.msra.gmra.mrb[0].mxu0 %vm412_vm0, %v3165_v61  ;;  %v634_v61 = vld [vmem:[%s9295_s19 + $0x310] sm:$0xff] }
  0xa7   : > { %v1109_v62 = vpop.permute.xlu1 %1108  ;;  %v1107_v63 = vpop.permute.xlu0 %1106  ;;  %7939 = vmatpush3.bf16.msra.mxu0 %v3845_v56  ;;  %v633_v56 = vld [vmem:[%s9295_s19 + $0x308] sm:$0xff] }
  0xa8   : > { %1296 = vst.msk [vmem:[#allocation2 + $0x81] sm:$0xff] %vm1290_vm4, %v1109_v62  ;;  %1295 = vst.msk [vmem:[#allocation2 + $0x79] sm:$0xff] %vm1290_vm4, %v1107_v63 }
  0xa9   : > { %1168 = vrot.lane.b32.xlu1 %v619_v46, %s8831_s26  ;;  %1166 = vrot.lane.b32.xlu0 %v618_v47, %s8831_s26 }
  0xab   : > { %v1113_v3 = vpop.permute.xlu1 %1112  ;;  %v1111_v4 = vpop.permute.xlu0 %1110 }
  0xac   : > { %1298 = vst.msk [vmem:[#allocation2 + $0x91] sm:$0xff] %vm1290_vm4, %v1113_v3  ;;  %1297 = vst.msk [vmem:[#allocation2 + $0x89] sm:$0xff] %vm1290_vm4, %v1111_v4 }
  0xad   : > { %786 = vrot.lane.b32.xlu1 %v621_v1, %s8830_s20  ;;  %784 = vrot.lane.b32.xlu0 %v620_v2, %s8830_s20 }
  0xaf   : > { %v731_v7 = vpop.permute.xlu1 %730  ;;  %v729_v8 = vpop.permute.xlu0 %728  ;;  %v3104_v9 = vld [vmem:[#allocation2 + $0x78] sm:$0xff]  ;;  %v3105_v10 = vld [vmem:[#allocation2 + $0x80] sm:$0xff] }
  0xb0   : > { %915 = vst.msk [vmem:[#allocation2 + $0xd0] sm:$0xff] %vm905_vm3, %v731_v7  ;;  %914 = vst.msk [vmem:[#allocation2 + $0xc8] sm:$0xff] %vm905_vm3, %v729_v8  ;;  %v3166_v11 = vpack.c.bf16 %v3105_v10, %v3104_v9 }
  0xb1   : > { %790 = vrot.lane.b32.xlu1 %v623_v5, %s8830_s20  ;;  %788 = vrot.lane.b32.xlu0 %v622_v6, %s8830_s20 }
  0xb2   : > { %7878 = vmatprep.mubr.msk.bf16.mxu0 %vm412_vm0, %v3166_v11  ;;  %v637_v11 = vld [vmem:[%s9295_s19 + $0x348] sm:$0xff] }
  0xb3   : > { %v735_v12 = vpop.permute.xlu1 %734  ;;  %v733_v13 = vpop.permute.xlu0 %732  ;;  %v3106_v14 = vld [vmem:[#allocation2 + $0x88] sm:$0xff]  ;;  %v3107_v15 = vld [vmem:[#allocation2 + $0x90] sm:$0xff] }
  0xb4   : > { %917 = vst.msk [vmem:[#allocation2 + $0xe0] sm:$0xff] %vm905_vm3, %v735_v12  ;;  %916 = vst.msk [vmem:[#allocation2 + $0xd8] sm:$0xff] %vm905_vm3, %v733_v13  ;;  %v3167_v16 = vpack.c.bf16 %v3107_v15, %v3106_v14  ;;  %v636_v12 = vld [vmem:[%s9295_s19 + $0x340] sm:$0xff]  ;;  %v639_v15 = vld [vmem:[%s9295_s19 + $0x358] sm:$0xff] }
  0xb5   : > { %1172 = vrot.lane.b32.xlu1 %v621_v1, %s8831_s26  ;;  %1170 = vrot.lane.b32.xlu0 %v620_v2, %s8831_s26 }
  0xb6   : > { %7879 = vmatmul.mubr.msk.bf16.gmra.mrb[4].mxu0 %vm412_vm0, %v3167_v16  ;;  %v638_v16 = vld [vmem:[%s9295_s19 + $0x350] sm:$0xff] }
  0xb7   : > { %v1117_v17 = vpop.permute.xlu1 %1116  ;;  %v1115_v18 = vpop.permute.xlu0 %1114 }
  0xb8   : > { %1300 = vst.msk [vmem:[#allocation2 + $0xd1] sm:$0xff] %vm1290_vm4, %v1117_v17  ;;  %1299 = vst.msk [vmem:[#allocation2 + $0xc9] sm:$0xff] %vm1290_vm4, %v1115_v18 }
  0xb9   : > { %1176 = vrot.lane.b32.xlu1 %v623_v5, %s8831_s26  ;;  %1174 = vrot.lane.b32.xlu0 %v622_v6, %s8831_s26 }
  0xbb   : > { %v1121_v21 = vpop.permute.xlu1 %1120  ;;  %v1119_v22 = vpop.permute.xlu0 %1118 }
  0xbc   : > { %1302 = vst.msk [vmem:[#allocation2 + $0xe1] sm:$0xff] %vm1290_vm4, %v1121_v21  ;;  %1301 = vst.msk [vmem:[#allocation2 + $0xd9] sm:$0xff] %vm1290_vm4, %v1119_v22 }
  0xbd   : > { %794 = vrot.lane.b32.xlu1 %v625_v19, %s8830_s20  ;;  %792 = vrot.lane.b32.xlu0 %v624_v20, %s8830_s20 }
  0xbf   : > { %v739_v25 = vpop.permute.xlu1 %738  ;;  %v737_v26 = vpop.permute.xlu0 %736  ;;  %v3108_v27 = vld [vmem:[#allocation2 + $0xc8] sm:$0xff]  ;;  %v3109_v28 = vld [vmem:[#allocation2 + $0xd0] sm:$0xff] }
  0xc0   : > { %919 = vst.msk [vmem:[#allocation2 + $0x120] sm:$0xff] %vm905_vm3, %v739_v25  ;;  %918 = vst.msk [vmem:[#allocation2 + $0x118] sm:$0xff] %vm905_vm3, %v737_v26  ;;  %v3168_v29 = vpack.c.bf16 %v3109_v28, %v3108_v27 }
  0xc1   : > { %798 = vrot.lane.b32.xlu1 %v627_v23, %s8830_s20  ;;  %796 = vrot.lane.b32.xlu0 %v626_v24, %s8830_s20 }
  0xc2   : > { %7882 = vmatprep.mubr.msk.bf16.mxu0 %vm412_vm0, %v3168_v29  ;;  %v641_v29 = vld [vmem:[%s9295_s19 + $0x388] sm:$0xff] }
  0xc3   : > { %v743_v30 = vpop.permute.xlu1 %742  ;;  %v741_v31 = vpop.permute.xlu0 %740  ;;  %v3110_v32 = vld [vmem:[#allocation2 + $0xd8] sm:$0xff]  ;;  %v3111_v33 = vld [vmem:[#allocation2 + $0xe0] sm:$0xff] }
  0xc4   : > { %921 = vst.msk [vmem:[#allocation2 + $0x130] sm:$0xff] %vm905_vm3, %v743_v30  ;;  %920 = vst.msk [vmem:[#allocation2 + $0x128] sm:$0xff] %vm905_vm3, %v741_v31  ;;  %v3169_v34 = vpack.c.bf16 %v3111_v33, %v3110_v32  ;;  %v640_v30 = vld [vmem:[%s9295_s19 + $0x380] sm:$0xff]  ;;  %v643_v33 = vld [vmem:[%s9295_s19 + $0x398] sm:$0xff] }
  0xc5   : > { %1180 = vrot.lane.b32.xlu1 %v625_v19, %s8831_s26  ;;  %1178 = vrot.lane.b32.xlu0 %v624_v20, %s8831_s26 }
  0xc6   : > { %7883 = vmatmul.mubr.msk.bf16.gmra.mrb[8].mxu0 %vm412_vm0, %v3169_v34  ;;  %v642_v34 = vld [vmem:[%s9295_s19 + $0x390] sm:$0xff] }
  0xc7   : > { %v1125_v35 = vpop.permute.xlu1 %1124  ;;  %v1123_v36 = vpop.permute.xlu0 %1122 }
  0xc8   : > { %1304 = vst.msk [vmem:[#allocation2 + $0x121] sm:$0xff] %vm1290_vm4, %v1125_v35  ;;  %1303 = vst.msk [vmem:[#allocation2 + $0x119] sm:$0xff] %vm1290_vm4, %v1123_v36 }
  0xc9   : > { %1184 = vrot.lane.b32.xlu1 %v627_v23, %s8831_s26  ;;  %1182 = vrot.lane.b32.xlu0 %v626_v24, %s8831_s26 }
  0xcb   : > { %v1129_v39 = vpop.permute.xlu1 %1128  ;;  %v1127_v40 = vpop.permute.xlu0 %1126 }
  0xcc   : > { %1306 = vst.msk [vmem:[#allocation2 + $0x131] sm:$0xff] %vm1290_vm4, %v1129_v39  ;;  %1305 = vst.msk [vmem:[#allocation2 + $0x129] sm:$0xff] %vm1290_vm4, %v1127_v40 }
  0xcd   : > { %802 = vrot.lane.b32.xlu1 %v629_v37, %s8830_s20  ;;  %800 = vrot.lane.b32.xlu0 %v628_v38, %s8830_s20 }
  0xcf   : > { %v747_v43 = vpop.permute.xlu1 %746  ;;  %v745_v44 = vpop.permute.xlu0 %744  ;;  %v3112_v45 = vld [vmem:[#allocation2 + $0x118] sm:$0xff]  ;;  %v3113_v46 = vld [vmem:[#allocation2 + $0x120] sm:$0xff] }
  0xd0   : > { %923 = vst.msk [vmem:[#allocation2 + $0x170] sm:$0xff] %vm905_vm3, %v747_v43  ;;  %922 = vst.msk [vmem:[#allocation2 + $0x168] sm:$0xff] %vm905_vm3, %v745_v44  ;;  %v3170_v47 = vpack.c.bf16 %v3113_v46, %v3112_v45 }
  0xd1   : > { %806 = vrot.lane.b32.xlu1 %v631_v41, %s8830_s20  ;;  %804 = vrot.lane.b32.xlu0 %v630_v42, %s8830_s20 }
  0xd2   : > { %7886 = vmatprep.mubr.msk.bf16.mxu0 %vm412_vm0, %v3170_v47  ;;  %v645_v47 = vld [vmem:[%s9295_s19 + $0x3c8] sm:$0xff] }
  0xd3   : > { %v751_v48 = vpop.permute.xlu1 %750  ;;  %v749_v49 = vpop.permute.xlu0 %748  ;;  %v3114_v50 = vld [vmem:[#allocation2 + $0x128] sm:$0xff]  ;;  %v3115_v51 = vld [vmem:[#allocation2 + $0x130] sm:$0xff] }
  0xd4   : > { %925 = vst.msk [vmem:[#allocation2 + $0x180] sm:$0xff] %vm905_vm3, %v751_v48  ;;  %924 = vst.msk [vmem:[#allocation2 + $0x178] sm:$0xff] %vm905_vm3, %v749_v49  ;;  %v3171_v52 = vpack.c.bf16 %v3115_v51, %v3114_v50  ;;  %v644_v48 = vld [vmem:[%s9295_s19 + $0x3c0] sm:$0xff]  ;;  %v647_v51 = vld [vmem:[%s9295_s19 + $0x3d8] sm:$0xff] }
  0xd5   : > { %1188 = vrot.lane.b32.xlu1 %v629_v37, %s8831_s26  ;;  %1186 = vrot.lane.b32.xlu0 %v628_v38, %s8831_s26 }
  0xd6   : > { %7887 = vmatmul.mubr.msk.bf16.gmra.mrb[12].mxu0 %vm412_vm0, %v3171_v52  ;;  %v646_v52 = vld [vmem:[%s9295_s19 + $0x3d0] sm:$0xff] }
  0xd7   : > { %v1133_v53 = vpop.permute.xlu1 %1132  ;;  %v1131_v55 = vpop.permute.xlu0 %1130 }
  0xd8   : > { %1308 = vst.msk [vmem:[#allocation2 + $0x171] sm:$0xff] %vm1290_vm4, %v1133_v53  ;;  %1307 = vst.msk [vmem:[#allocation2 + $0x169] sm:$0xff] %vm1290_vm4, %v1131_v55 }
  0xd9   : > { %1192 = vrot.lane.b32.xlu1 %v631_v41, %s8831_s26  ;;  %1190 = vrot.lane.b32.xlu0 %v630_v42, %s8831_s26 }
  0xdb   : > { %v1137_v58 = vpop.permute.xlu1 %1136  ;;  %v1135_v59 = vpop.permute.xlu0 %1134 }
  0xdc   : > { %1310 = vst.msk [vmem:[#allocation2 + $0x181] sm:$0xff] %vm1290_vm4, %v1137_v58  ;;  %1309 = vst.msk [vmem:[#allocation2 + $0x179] sm:$0xff] %vm1290_vm4, %v1135_v59 }
  0xdd   : > { %810 = vrot.lane.b32.xlu1 %v633_v56, %s8830_s20  ;;  %808 = vrot.lane.b32.xlu0 %v632_v57, %s8830_s20 }
  0xdf   : > { %v755_v62 = vpop.permute.xlu1 %754  ;;  %v753_v63 = vpop.permute.xlu0 %752  ;;  %v3116_v1 = vld [vmem:[#allocation2 + $0x168] sm:$0xff]  ;;  %v3117_v2 = vld [vmem:[#allocation2 + $0x170] sm:$0xff] }
  0xe0   : > { %927 = vst.msk [vmem:[#allocation2 + $0x1c0] sm:$0xff] %vm905_vm3, %v755_v62  ;;  %926 = vst.msk [vmem:[#allocation2 + $0x1b8] sm:$0xff] %vm905_vm3, %v753_v63  ;;  %v3172_v3 = vpack.c.bf16 %v3117_v2, %v3116_v1 }
  0xe1   : > { %814 = vrot.lane.b32.xlu1 %v635_v60, %s8830_s20  ;;  %812 = vrot.lane.b32.xlu0 %v634_v61, %s8830_s20 }
  0xe2   : > { %7890 = vmatprep.mubr.msk.bf16.mxu0 %vm412_vm0, %v3172_v3  ;;  %v2318_v3 = vld [vmem:[%s10944_s2] sm:$0x3] }
  0xe3   : > { %v759_v4 = vpop.permute.xlu1 %758  ;;  %v757_v5 = vpop.permute.xlu0 %756  ;;  %v3118_v6 = vld [vmem:[#allocation2 + $0x178] sm:$0xff]  ;;  %v3119_v7 = vld [vmem:[#allocation2 + $0x180] sm:$0xff] }
  0xe4   : > { %929 = vst.msk [vmem:[#allocation2 + $0x1d0] sm:$0xff] %vm905_vm3, %v759_v4  ;;  %928 = vst.msk [vmem:[#allocation2 + $0x1c8] sm:$0xff] %vm905_vm3, %v757_v5  ;;  %v3173_v8 = vpack.c.bf16 %v3119_v7, %v3118_v6  ;;  %v2420_v4 = vand.u32 %v9417_v54, %v2318_v3  ;;  %v6982_v5 = vld [vmem:[%s9295_s19 + $0x28] sm:$0xff]  ;;  %v6981_v6 = vld [vmem:[%s9295_s19 + $0x20] sm:$0xff] }
  0xe5   : > { %1196 = vrot.lane.b32.xlu1 %v633_v56, %s8831_s26  ;;  %1194 = vrot.lane.b32.xlu0 %v632_v57, %s8831_s26 }
  0xe6   : > { %7891 = vmatmul.mubr.msk.bf16.gmra.mrb[16].mxu0 %vm412_vm0, %v3173_v8  ;;  %7740 = vmatprep.subr.bf16.mxu1 %v2420_v4 }
  0xe7   : > { %v1141_v9 = vpop.permute.xlu1 %1140  ;;  %v1139_v10 = vpop.permute.xlu0 %1138  ;;  %7741 = vmatpush3.bf16.msra.mxu1 %v2420_v4  ;;  %v6994_v4 = vld [vmem:[%s9295_s19 + $0xe8] sm:$0xff] }
  0xe8   : > { %1312 = vst.msk [vmem:[#allocation2 + $0x1c1] sm:$0xff] %vm1290_vm4, %v1141_v9  ;;  %1311 = vst.msk [vmem:[#allocation2 + $0x1b9] sm:$0xff] %vm1290_vm4, %v1139_v10  ;;  %v2222_v9 = vld [vmem:[#allocation2 + $0x1] sm:$0xff]  ;;  %v2223_v10 = vld [vmem:[#allocation2 + $0x9] sm:$0xff] }
  0xe9   : > { %1200 = vrot.lane.b32.xlu1 %v635_v60, %s8831_s26  ;;  %1198 = vrot.lane.b32.xlu0 %v634_v61, %s8831_s26 }
  0xeb   : > { %v1145_v13 = vpop.permute.xlu1 %1144  ;;  %v1143_v14 = vpop.permute.xlu0 %1142 }
  0xec   : > { %1314 = vst.msk [vmem:[#allocation2 + $0x1d1] sm:$0xff] %vm1290_vm4, %v1145_v13  ;;  %1313 = vst.msk [vmem:[#allocation2 + $0x1c9] sm:$0xff] %vm1290_vm4, %v1143_v14  ;;  %v2225_v13 = vld [vmem:[#allocation2 + $0x19] sm:$0xff] }
  0xed   : > { %818 = vrot.lane.b32.xlu1 %v637_v11, %s8830_s20  ;;  %816 = vrot.lane.b32.xlu0 %v636_v12, %s8830_s20 }
  0xef   : > { %v763_v17 = vpop.permute.xlu1 %762  ;;  %v761_v18 = vpop.permute.xlu0 %760  ;;  %v3120_v19 = vld [vmem:[#allocation2 + $0x1b8] sm:$0xff]  ;;  %v3121_v20 = vld [vmem:[#allocation2 + $0x1c0] sm:$0xff] }
  0xf0   : > { %931 = vst.msk [vmem:[#allocation2 + $0x210] sm:$0xff] %vm905_vm3, %v763_v17  ;;  %930 = vst.msk [vmem:[#allocation2 + $0x208] sm:$0xff] %vm905_vm3, %v761_v18  ;;  %v3174_v21 = vpack.c.bf16 %v3121_v20, %v3120_v19  ;;  %v9604_v17 = vld [vmem:[%s10960_s1 + $0x8] sm:$0x7] }
  0xf1   : > { %822 = vrot.lane.b32.xlu1 %v639_v15, %s8830_s20  ;;  %820 = vrot.lane.b32.xlu0 %v638_v16, %s8830_s20 }
  0xf2   : > { %7894 = vmatprep.mubr.msk.bf16.mxu0 %vm412_vm0, %v3174_v21  ;;  %8654 = vmatprep.subr.msk.bf16.mxu0 %vm2807_vm2, %v9604_v17 }
  0xf3   : > { %v767_v22 = vpop.permute.xlu1 %766  ;;  %v765_v23 = vpop.permute.xlu0 %764  ;;  %v3122_v24 = vld [vmem:[#allocation2 + $0x1c8] sm:$0xff]  ;;  %v3123_v25 = vld [vmem:[#allocation2 + $0x1d0] sm:$0xff] }
  0xf4   : > { %933 = vst.msk [vmem:[#allocation2 + $0x220] sm:$0xff] %vm905_vm3, %v767_v22  ;;  %932 = vst.msk [vmem:[#allocation2 + $0x218] sm:$0xff] %vm905_vm3, %v765_v23  ;;  %v3175_v26 = vpack.c.bf16 %v3123_v25, %v3122_v24 }
  0xf5   : > { %1204 = vrot.lane.b32.xlu1 %v637_v11, %s8831_s26  ;;  %1202 = vrot.lane.b32.xlu0 %v636_v12, %s8831_s26  ;;  %v2286_v11 = vpack.c.bf16 %v2223_v10, %v2222_v9  ;;  %v2224_v12 = vld [vmem:[#allocation2 + $0x11] sm:$0xff] }
  0xf6   : > { %7895 = vmatmul.mubr.msk.bf16.gmra.mrb[20].mxu0 %vm412_vm0, %v3175_v26  ;;  %v2287_v14 = vpack.c.bf16 %v2225_v13, %v2224_v12  ;;  %v6995_v9 = vld [vmem:[%s9295_s19 + $0xf0] sm:$0xff] }
  0xf7   : > { %v1149_v27 = vpop.permute.xlu1 %1148  ;;  %v1147_v28 = vpop.permute.xlu0 %1146  ;;  %7742 = vmatprep.mubr.msk.bf16.mxu1 %vm1290_vm4, %v2286_v11 }
  0xf8   : > { %1316 = vst.msk [vmem:[#allocation2 + $0x211] sm:$0xff] %vm1290_vm4, %v1149_v27  ;;  %1315 = vst.msk [vmem:[#allocation2 + $0x209] sm:$0xff] %vm1290_vm4, %v1147_v28  ;;  %7743 = vmatmul.mubr.msk.bf16.vlgmr.msra.gmra.mrb[0].mxu1 %vm1290_vm4, %v2287_v14 }
  0xf9   : > { %1208 = vrot.lane.b32.xlu1 %v639_v15, %s8831_s26  ;;  %1206 = vrot.lane.b32.xlu0 %v638_v16, %s8831_s26  ;;  %v6984_v15 = vld [vmem:[%s9295_s19 + $0x38] sm:$0xff]  ;;  %v6983_v16 = vld [vmem:[%s9295_s19 + $0x30] sm:$0xff] }
  0xfb   : > { %v1153_v31 = vpop.permute.xlu1 %1152  ;;  %v1151_v32 = vpop.permute.xlu0 %1150 }
  0xfc   : > { %1318 = vst.msk [vmem:[#allocation2 + $0x221] sm:$0xff] %vm1290_vm4, %v1153_v31  ;;  %1317 = vst.msk [vmem:[#allocation2 + $0x219] sm:$0xff] %vm1290_vm4, %v1151_v32  ;;  %v6985_v31 = vld [vmem:[%s9295_s19 + $0x60] sm:$0xff] }
  0xfd   : > { %826 = vrot.lane.b32.xlu1 %v641_v29, %s8830_s20  ;;  %824 = vrot.lane.b32.xlu0 %v640_v30, %s8830_s20 }
  0xff   : > { %v771_v35 = vpop.permute.xlu1 %770  ;;  %v769_v36 = vpop.permute.xlu0 %768  ;;  %v3124_v37 = vld [vmem:[#allocation2 + $0x208] sm:$0xff]  ;;  %v3125_v38 = vld [vmem:[#allocation2 + $0x210] sm:$0xff] }
 0x100   : > { %935 = vst.msk [vmem:[#allocation2 + $0x260] sm:$0xff] %vm905_vm3, %v771_v35  ;;  %934 = vst.msk [vmem:[#allocation2 + $0x258] sm:$0xff] %vm905_vm3, %v769_v36  ;;  %v3176_v39 = vpack.c.bf16 %v3125_v38, %v3124_v37  ;;  %v6987_v35 = vld [vmem:[%s9295_s19 + $0x70] sm:$0xff] }
 0x101   : > { %830 = vrot.lane.b32.xlu1 %v643_v33, %s8830_s20  ;;  %828 = vrot.lane.b32.xlu0 %v642_v34, %s8830_s20 }
 0x102   : > { %7898 = vmatprep.mubr.msk.bf16.mxu0 %vm412_vm0, %v3176_v39 }
 0x103   : > { %v775_v40 = vpop.permute.xlu1 %774  ;;  %v773_v41 = vpop.permute.xlu0 %772  ;;  %v3126_v42 = vld [vmem:[#allocation2 + $0x218] sm:$0xff]  ;;  %v3127_v43 = vld [vmem:[#allocation2 + $0x220] sm:$0xff] }
 0x104   : > { %937 = vst.msk [vmem:[#allocation2 + $0x270] sm:$0xff] %vm905_vm3, %v775_v40  ;;  %936 = vst.msk [vmem:[#allocation2 + $0x268] sm:$0xff] %vm905_vm3, %v773_v41  ;;  %v3177_v44 = vpack.c.bf16 %v3127_v43, %v3126_v42 }
 0x105   : > { %1212 = vrot.lane.b32.xlu1 %v641_v29, %s8831_s26  ;;  %1210 = vrot.lane.b32.xlu0 %v640_v30, %s8831_s26  ;;  %v6986_v30 = vld [vmem:[%s9295_s19 + $0x68] sm:$0xff] }
 0x106   : > { %7899 = vmatmul.mubr.msk.bf16.gmra.mrb[24].mxu0 %vm412_vm0, %v3177_v44 }
 0x107   : > { %v1157_v45 = vpop.permute.xlu1 %1156  ;;  %v1155_v46 = vpop.permute.xlu0 %1154 }
 0x108   : > { %1320 = vst.msk [vmem:[#allocation2 + $0x261] sm:$0xff] %vm1290_vm4, %v1157_v45  ;;  %1319 = vst.msk [vmem:[#allocation2 + $0x259] sm:$0xff] %vm1290_vm4, %v1155_v46 }
 0x109   : > { %1216 = vrot.lane.b32.xlu1 %v643_v33, %s8831_s26  ;;  %1214 = vrot.lane.b32.xlu0 %v642_v34, %s8831_s26  ;;  %v6988_v34 = vld [vmem:[%s9295_s19 + $0x78] sm:$0xff] }
 0x10b   : > { %v1161_v49 = vpop.permute.xlu1 %1160  ;;  %v1159_v50 = vpop.permute.xlu0 %1158 }
 0x10c   : > { %1322 = vst.msk [vmem:[#allocation2 + $0x271] sm:$0xff] %vm1290_vm4, %v1161_v49  ;;  %1321 = vst.msk [vmem:[#allocation2 + $0x269] sm:$0xff] %vm1290_vm4, %v1159_v50  ;;  %v6989_v49 = vld [vmem:[%s9295_s19 + $0xa0] sm:$0xff] }
 0x10d   : > { %834 = vrot.lane.b32.xlu1 %v645_v47, %s8830_s20  ;;  %832 = vrot.lane.b32.xlu0 %v644_v48, %s8830_s20 }
 0x10f   : > { %v779_v53 = vpop.permute.xlu1 %778  ;;  %v777_v55 = vpop.permute.xlu0 %776  ;;  %v3128_v56 = vld [vmem:[#allocation2 + $0x258] sm:$0xff]  ;;  %v3129_v57 = vld [vmem:[#allocation2 + $0x260] sm:$0xff] }
 0x110   : > { %939 = vst.msk [vmem:[#allocation2 + $0x2b0] sm:$0xff] %vm905_vm3, %v779_v53  ;;  %938 = vst.msk [vmem:[#allocation2 + $0x2a8] sm:$0xff] %vm905_vm3, %v777_v55  ;;  %v3178_v58 = vpack.c.bf16 %v3129_v57, %v3128_v56  ;;  %v6991_v53 = vld [vmem:[%s9295_s19 + $0xb0] sm:$0xff] }
 0x111   : > { %838 = vrot.lane.b32.xlu1 %v647_v51, %s8830_s20  ;;  %836 = vrot.lane.b32.xlu0 %v646_v52, %s8830_s20 }
 0x112   : > { %7902 = vmatprep.mubr.msk.bf16.mxu0 %vm412_vm0, %v3178_v58 }
 0x113   : > { %v783_v59 = vpop.permute.xlu1 %782  ;;  %v781_v60 = vpop.permute.xlu0 %780  ;;  %v3130_v61 = vld [vmem:[#allocation2 + $0x268] sm:$0xff]  ;;  %v3131_v62 = vld [vmem:[#allocation2 + $0x270] sm:$0xff] }
 0x114   : > { %941 = vst.msk [vmem:[#allocation2 + $0x2c0] sm:$0xff] %vm905_vm3, %v783_v59  ;;  %940 = vst.msk [vmem:[#allocation2 + $0x2b8] sm:$0xff] %vm905_vm3, %v781_v60  ;;  %v3179_v63 = vpack.c.bf16 %v3131_v62, %v3130_v61 }
 0x115   : > { %1220 = vrot.lane.b32.xlu1 %v645_v47, %s8831_s26  ;;  %1218 = vrot.lane.b32.xlu0 %v644_v48, %s8831_s26  ;;  %v6990_v48 = vld [vmem:[%s9295_s19 + $0xa8] sm:$0xff] }
 0x116   : > { %7903 = vmatmul.mubr.msk.bf16.gmra.mrb[28].mxu0 %vm412_vm0, %v3179_v63 }
 0x117   : > { %v1165_v1 = vpop.permute.xlu1 %1164  ;;  %v1163_v2 = vpop.permute.xlu0 %1162 }
 0x118   : > { %1324 = vst.msk [vmem:[#allocation2 + $0x2b1] sm:$0xff] %vm1290_vm4, %v1165_v1  ;;  %1323 = vst.msk [vmem:[#allocation2 + $0x2a9] sm:$0xff] %vm1290_vm4, %v1163_v2 }
 0x119   : > { %1224 = vrot.lane.b32.xlu1 %v647_v51, %s8831_s26  ;;  %1222 = vrot.lane.b32.xlu0 %v646_v52, %s8831_s26  ;;  %v6992_v52 = vld [vmem:[%s9295_s19 + $0xb8] sm:$0xff] }
 0x11b   : > { %v1169_v7 = vpop.permute.xlu1 %1168  ;;  %v1167_v8 = vpop.permute.xlu0 %1166 }
 0x11c   : > { %1326 = vst.msk [vmem:[#allocation2 + $0x2c1] sm:$0xff] %vm1290_vm4, %v1169_v7  ;;  %1325 = vst.msk [vmem:[#allocation2 + $0x2b9] sm:$0xff] %vm1290_vm4, %v1167_v8  ;;  %v6996_v8 = vld [vmem:[%s9295_s19 + $0xf8] sm:$0xff] }
 0x11d   : > { %1486 = vrot.lane.b32.xlu1 %v6982_v5, %s8830_s20  ;;  %1484 = vrot.lane.b32.xlu0 %v6981_v6, %s8830_s20 }
 0x11f   : > { %v787_v18 = vpop.permute.xlu1 %786  ;;  %v785_v19 = vpop.permute.xlu0 %784  ;;  %v3132_v20 = vld [vmem:[#allocation2 + $0x2a8] sm:$0xff]  ;;  %v3133_v21 = vld [vmem:[#allocation2 + $0x2b0] sm:$0xff] }
 0x120   : > { %943 = vst.msk [vmem:[#allocation2 + $0x300] sm:$0xff] %vm905_vm3, %v787_v18  ;;  %942 = vst.msk [vmem:[#allocation2 + $0x2f8] sm:$0xff] %vm905_vm3, %v785_v19  ;;  %v3180_v22 = vpack.c.bf16 %v3133_v21, %v3132_v20 }
 0x121   : > { %1490 = vrot.lane.b32.xlu1 %v6984_v15, %s8830_s20  ;;  %1488 = vrot.lane.b32.xlu0 %v6983_v16, %s8830_s20 }
 0x122   : > { %7906 = vmatprep.mubr.msk.bf16.mxu0 %vm412_vm0, %v3180_v22 }
 0x123   : > { %v791_v23 = vpop.permute.xlu1 %790  ;;  %v789_v24 = vpop.permute.xlu0 %788  ;;  %v3134_v25 = vld [vmem:[#allocation2 + $0x2b8] sm:$0xff]  ;;  %v3135_v26 = vld [vmem:[#allocation2 + $0x2c0] sm:$0xff] }
 0x124   : > { %945 = vst.msk [vmem:[#allocation2 + $0x310] sm:$0xff] %vm905_vm3, %v791_v23  ;;  %944 = vst.msk [vmem:[#allocation2 + $0x308] sm:$0xff] %vm905_vm3, %v789_v24  ;;  %v3181_v27 = vpack.c.bf16 %v3135_v26, %v3134_v25  ;;  %v6998_v23 = vld [vmem:[%s9295_s19 + $0x128] sm:$0xff]  ;;  %v6997_v24 = vld [vmem:[%s9295_s19 + $0x120] sm:$0xff] }
 0x125   : > { %1871 = vrot.lane.b32.xlu1 %v6982_v5, %s8831_s26  ;;  %1869 = vrot.lane.b32.xlu0 %v6981_v6, %s8831_s26  ;;  %v6993_v5 = vld [vmem:[%s9295_s19 + $0xe0] sm:$0xff] }
 0x126   : > { %7907 = vmatmul.mubr.msk.bf16.gmra.mrb[32].mxu0 %vm412_vm0, %v3181_v27  ;;  %v7000_v27 = vld [vmem:[%s9295_s19 + $0x138] sm:$0xff] }
 0x127   : > { %v1173_v28 = vpop.permute.xlu1 %1172  ;;  %v1171_v29 = vpop.permute.xlu0 %1170 }
 0x128   : > { %1328 = vst.msk [vmem:[#allocation2 + $0x301] sm:$0xff] %vm1290_vm4, %v1173_v28  ;;  %1327 = vst.msk [vmem:[#allocation2 + $0x2f9] sm:$0xff] %vm1290_vm4, %v1171_v29  ;;  %v6999_v28 = vld [vmem:[%s9295_s19 + $0x130] sm:$0xff] }
 0x129   : > { %1875 = vrot.lane.b32.xlu1 %v6984_v15, %s8831_s26  ;;  %1873 = vrot.lane.b32.xlu0 %v6983_v16, %s8831_s26 }
 0x12b   : > { %v1177_v32 = vpop.permute.xlu1 %1176  ;;  %v1175_v33 = vpop.permute.xlu0 %1174 }
 0x12c   : > { %1330 = vst.msk [vmem:[#allocation2 + $0x311] sm:$0xff] %vm1290_vm4, %v1177_v32  ;;  %1329 = vst.msk [vmem:[#allocation2 + $0x309] sm:$0xff] %vm1290_vm4, %v1175_v33 }
 0x12d   : > { %1494 = vrot.lane.b32.xlu1 %v6986_v30, %s8830_s20  ;;  %1492 = vrot.lane.b32.xlu0 %v6985_v31, %s8830_s20 }
 0x12f   : > { %v795_v36 = vpop.permute.xlu1 %794  ;;  %v793_v37 = vpop.permute.xlu0 %792  ;;  %v3136_v38 = vld [vmem:[#allocation2 + $0x2f8] sm:$0xff]  ;;  %v3137_v39 = vld [vmem:[#allocation2 + $0x300] sm:$0xff] }
 0x130   : > { %947 = vst.msk [vmem:[#allocation2 + $0x350] sm:$0xff] %vm905_vm3, %v795_v36  ;;  %946 = vst.msk [vmem:[#allocation2 + $0x348] sm:$0xff] %vm905_vm3, %v793_v37  ;;  %v3182_v40 = vpack.c.bf16 %v3137_v39, %v3136_v38 }
 0x131   : > { %1498 = vrot.lane.b32.xlu1 %v6988_v34, %s8830_s20  ;;  %1496 = vrot.lane.b32.xlu0 %v6987_v35, %s8830_s20 }
 0x132   : > { %7910 = vmatprep.mubr.msk.bf16.mxu0 %vm412_vm0, %v3182_v40 }
 0x133   : > { %v799_v41 = vpop.permute.xlu1 %798  ;;  %v797_v42 = vpop.permute.xlu0 %796  ;;  %v3138_v43 = vld [vmem:[#allocation2 + $0x308] sm:$0xff]  ;;  %v3139_v44 = vld [vmem:[#allocation2 + $0x310] sm:$0xff] }
 0x134   : > { %949 = vst.msk [vmem:[#allocation2 + $0x360] sm:$0xff] %vm905_vm3, %v799_v41  ;;  %948 = vst.msk [vmem:[#allocation2 + $0x358] sm:$0xff] %vm905_vm3, %v797_v42  ;;  %v3183_v45 = vpack.c.bf16 %v3139_v44, %v3138_v43  ;;  %v7002_v41 = vld [vmem:[%s9295_s19 + $0x168] sm:$0xff]  ;;  %v7001_v42 = vld [vmem:[%s9295_s19 + $0x160] sm:$0xff] }
 0x135   : > { %1879 = vrot.lane.b32.xlu1 %v6986_v30, %s8831_s26  ;;  %1877 = vrot.lane.b32.xlu0 %v6985_v31, %s8831_s26 }
 0x136   : > { %7911 = vmatmul.mubr.msk.bf16.gmra.mrb[36].mxu0 %vm412_vm0, %v3183_v45  ;;  %v7004_v45 = vld [vmem:[%s9295_s19 + $0x178] sm:$0xff] }
 0x137   : > { %v1181_v46 = vpop.permute.xlu1 %1180  ;;  %v1179_v47 = vpop.permute.xlu0 %1178 }
 0x138   : > { %1332 = vst.msk [vmem:[#allocation2 + $0x351] sm:$0xff] %vm1290_vm4, %v1181_v46  ;;  %1331 = vst.msk [vmem:[#allocation2 + $0x349] sm:$0xff] %vm1290_vm4, %v1179_v47  ;;  %v7003_v46 = vld [vmem:[%s9295_s19 + $0x170] sm:$0xff] }
 0x139   : > { %1883 = vrot.lane.b32.xlu1 %v6988_v34, %s8831_s26  ;;  %1881 = vrot.lane.b32.xlu0 %v6987_v35, %s8831_s26 }
 0x13b   : > { %v1185_v50 = vpop.permute.xlu1 %1184  ;;  %v1183_v51 = vpop.permute.xlu0 %1182 }
 0x13c   : > { %1334 = vst.msk [vmem:[#allocation2 + $0x361] sm:$0xff] %vm1290_vm4, %v1185_v50  ;;  %1333 = vst.msk [vmem:[#allocation2 + $0x359] sm:$0xff] %vm1290_vm4, %v1183_v51 }
 0x13d   : > { %1502 = vrot.lane.b32.xlu1 %v6990_v48, %s8830_s20  ;;  %1500 = vrot.lane.b32.xlu0 %v6989_v49, %s8830_s20 }
 0x13f   : > { %v803_v55 = vpop.permute.xlu1 %802  ;;  %v801_v56 = vpop.permute.xlu0 %800  ;;  %v3140_v57 = vld [vmem:[#allocation2 + $0x348] sm:$0xff]  ;;  %v3141_v58 = vld [vmem:[#allocation2 + $0x350] sm:$0xff] }
 0x140   : > { %951 = vst.msk [vmem:[#allocation2 + $0x3a0] sm:$0xff] %vm905_vm3, %v803_v55  ;;  %950 = vst.msk [vmem:[#allocation2 + $0x398] sm:$0xff] %vm905_vm3, %v801_v56  ;;  %v3184_v59 = vpack.c.bf16 %v3141_v58, %v3140_v57 }
 0x141   : > { %1506 = vrot.lane.b32.xlu1 %v6992_v52, %s8830_s20  ;;  %1504 = vrot.lane.b32.xlu0 %v6991_v53, %s8830_s20 }
 0x142   : > { %7914 = vmatprep.mubr.msk.bf16.mxu0 %vm412_vm0, %v3184_v59 }
 0x143   : > { %v807_v60 = vpop.permute.xlu1 %806  ;;  %v805_v61 = vpop.permute.xlu0 %804  ;;  %v3142_v62 = vld [vmem:[#allocation2 + $0x358] sm:$0xff]  ;;  %v3143_v63 = vld [vmem:[#allocation2 + $0x360] sm:$0xff] }
 0x144   : > { %953 = vst.msk [vmem:[#allocation2 + $0x3b0] sm:$0xff] %vm905_vm3, %v807_v60  ;;  %952 = vst.msk [vmem:[#allocation2 + $0x3a8] sm:$0xff] %vm905_vm3, %v805_v61  ;;  %v3185_v1 = vpack.c.bf16 %v3143_v63, %v3142_v62  ;;  %v7006_v60 = vld [vmem:[%s9295_s19 + $0x1a8] sm:$0xff]  ;;  %v7005_v61 = vld [vmem:[%s9295_s19 + $0x1a0] sm:$0xff] }
 0x145   : > { %1887 = vrot.lane.b32.xlu1 %v6990_v48, %s8831_s26  ;;  %1885 = vrot.lane.b32.xlu0 %v6989_v49, %s8831_s26 }
 0x146   : > { %7915 = vmatmul.mubr.msk.bf16.gmra.mrb[40].mxu0 %vm412_vm0, %v3185_v1  ;;  %v7008_v1 = vld [vmem:[%s9295_s19 + $0x1b8] sm:$0xff] }
 0x147   : > { %v1189_v2 = vpop.permute.xlu1 %1188  ;;  %v1187_v3 = vpop.permute.xlu0 %1186 }
 0x148   : > { %1336 = vst.msk [vmem:[#allocation2 + $0x3a1] sm:$0xff] %vm1290_vm4, %v1189_v2  ;;  %1335 = vst.msk [vmem:[#allocation2 + $0x399] sm:$0xff] %vm1290_vm4, %v1187_v3  ;;  %v7007_v2 = vld [vmem:[%s9295_s19 + $0x1b0] sm:$0xff] }
 0x149   : > { %1891 = vrot.lane.b32.xlu1 %v6992_v52, %s8831_s26  ;;  %1889 = vrot.lane.b32.xlu0 %v6991_v53, %s8831_s26 }
 0x14b   : > { %v1193_v6 = vpop.permute.xlu1 %1192  ;;  %v1191_v7 = vpop.permute.xlu0 %1190 }
 0x14c   : > { %1338 = vst.msk [vmem:[#allocation2 + $0x3b1] sm:$0xff] %vm1290_vm4, %v1193_v6  ;;  %1337 = vst.msk [vmem:[#allocation2 + $0x3a9] sm:$0xff] %vm1290_vm4, %v1191_v7 }
 0x14d   : > { %1510 = vrot.lane.b32.xlu1 %v6994_v4, %s8830_s20  ;;  %1508 = vrot.lane.b32.xlu0 %v6993_v5, %s8830_s20 }
 0x14f   : > { %v811_v10 = vpop.permute.xlu1 %810  ;;  %v809_v11 = vpop.permute.xlu0 %808  ;;  %v3144_v12 = vld [vmem:[#allocation2 + $0x398] sm:$0xff]  ;;  %v3145_v13 = vld [vmem:[#allocation2 + $0x3a0] sm:$0xff] }
 0x150   : > { %955 = vst.msk [vmem:[#allocation2 + $0x3f0] sm:$0xff] %vm905_vm3, %v811_v10  ;;  %954 = vst.msk [vmem:[#allocation2 + $0x3e8] sm:$0xff] %vm905_vm3, %v809_v11  ;;  %v3186_v14 = vpack.c.bf16 %v3145_v13, %v3144_v12 }
 0x151   : > { %1514 = vrot.lane.b32.xlu1 %v6996_v8, %s8830_s20  ;;  %1512 = vrot.lane.b32.xlu0 %v6995_v9, %s8830_s20 }
 0x152   : > { %7918 = vmatprep.mubr.msk.bf16.mxu0 %vm412_vm0, %v3186_v14 }
 0x153   : > { %v815_v15 = vpop.permute.xlu1 %814  ;;  %v813_v16 = vpop.permute.xlu0 %812  ;;  %v3146_v18 = vld [vmem:[#allocation2 + $0x3a8] sm:$0xff]  ;;  %v3147_v19 = vld [vmem:[#allocation2 + $0x3b0] sm:$0xff] }
 0x154   : > { %957 = vst.msk [vmem:[#allocation2 + $0x400] sm:$0xff] %vm905_vm3, %v815_v15  ;;  %956 = vst.msk [vmem:[#allocation2 + $0x3f8] sm:$0xff] %vm905_vm3, %v813_v16  ;;  %v3187_v20 = vpack.c.bf16 %v3147_v19, %v3146_v18  ;;  %v7010_v15 = vld [vmem:[%s9295_s19 + $0x1e8] sm:$0xff]  ;;  %v7009_v16 = vld [vmem:[%s9295_s19 + $0x1e0] sm:$0xff] }
 0x155   : > { %1895 = vrot.lane.b32.xlu1 %v6994_v4, %s8831_s26  ;;  %1893 = vrot.lane.b32.xlu0 %v6993_v5, %s8831_s26 }
 0x156   : > { %7919 = vmatmul.mubr.msk.bf16.gmra.mrb[44].mxu0 %vm412_vm0, %v3187_v20  ;;  %v7012_v20 = vld [vmem:[%s9295_s19 + $0x1f8] sm:$0xff] }
 0x157   : > { %v1197_v21 = vpop.permute.xlu1 %1196  ;;  %v1195_v22 = vpop.permute.xlu0 %1194 }
 0x158   : > { %1340 = vst.msk [vmem:[#allocation2 + $0x3f1] sm:$0xff] %vm1290_vm4, %v1197_v21  ;;  %1339 = vst.msk [vmem:[#allocation2 + $0x3e9] sm:$0xff] %vm1290_vm4, %v1195_v22  ;;  %v7011_v21 = vld [vmem:[%s9295_s19 + $0x1f0] sm:$0xff] }
 0x159   : > { %1899 = vrot.lane.b32.xlu1 %v6996_v8, %s8831_s26  ;;  %1897 = vrot.lane.b32.xlu0 %v6995_v9, %s8831_s26 }
 0x15b   : > { %v1201_v25 = vpop.permute.xlu1 %1200  ;;  %v1199_v26 = vpop.permute.xlu0 %1198 }
 0x15c   : > { %1342 = vst.msk [vmem:[#allocation2 + $0x401] sm:$0xff] %vm1290_vm4, %v1201_v25  ;;  %1341 = vst.msk [vmem:[#allocation2 + $0x3f9] sm:$0xff] %vm1290_vm4, %v1199_v26 }
 0x15d   : > { %1518 = vrot.lane.b32.xlu1 %v6998_v23, %s8830_s20  ;;  %1516 = vrot.lane.b32.xlu0 %v6997_v24, %s8830_s20 }
 0x15f   : > { %v819_v29 = vpop.permute.xlu1 %818  ;;  %v817_v30 = vpop.permute.xlu0 %816  ;;  %v3148_v31 = vld [vmem:[#allocation2 + $0x3e8] sm:$0xff]  ;;  %v3149_v32 = vld [vmem:[#allocation2 + $0x3f0] sm:$0xff] }
 0x160   : > { %959 = vst.msk [vmem:[#allocation2 + $0x440] sm:$0xff] %vm905_vm3, %v819_v29  ;;  %958 = vst.msk [vmem:[#allocation2 + $0x438] sm:$0xff] %vm905_vm3, %v817_v30  ;;  %v3188_v33 = vpack.c.bf16 %v3149_v32, %v3148_v31 }
 0x161   : > { %1522 = vrot.lane.b32.xlu1 %v7000_v27, %s8830_s20  ;;  %1520 = vrot.lane.b32.xlu0 %v6999_v28, %s8830_s20 }
 0x162   : > { %7922 = vmatprep.mubr.msk.bf16.mxu0 %vm412_vm0, %v3188_v33 }
 0x163   : > { %v823_v34 = vpop.permute.xlu1 %822  ;;  %v821_v35 = vpop.permute.xlu0 %820  ;;  %v3150_v36 = vld [vmem:[#allocation2 + $0x3f8] sm:$0xff]  ;;  %v3151_v37 = vld [vmem:[#allocation2 + $0x400] sm:$0xff] }
 0x164   : > { %961 = vst.msk [vmem:[#allocation2 + $0x450] sm:$0xff] %vm905_vm3, %v823_v34  ;;  %960 = vst.msk [vmem:[#allocation2 + $0x448] sm:$0xff] %vm905_vm3, %v821_v35  ;;  %v3189_v38 = vpack.c.bf16 %v3151_v37, %v3150_v36  ;;  %v3652_v37 = vld [vmem:[#allocation2 + $0x39] sm:$0xff] }
 0x165   : > { %1903 = vrot.lane.b32.xlu1 %v6998_v23, %s8831_s26  ;;  %1901 = vrot.lane.b32.xlu0 %v6997_v24, %s8831_s26 }
 0x166   : > { %7923 = vmatmul.mubr.msk.bf16.gmra.mrb[48].mxu0 %vm412_vm0, %v3189_v38  ;;  %v3653_v38 = vld [vmem:[#allocation2 + $0x41] sm:$0xff] }
 0x167   : > { %v1205_v39 = vpop.permute.xlu1 %1204  ;;  %v1203_v40 = vpop.permute.xlu0 %1202 }
 0x168   : > { %1344 = vst.msk [vmem:[#allocation2 + $0x441] sm:$0xff] %vm1290_vm4, %v1205_v39  ;;  %1343 = vst.msk [vmem:[#allocation2 + $0x439] sm:$0xff] %vm1290_vm4, %v1203_v40  ;;  %v3654_v39 = vld [vmem:[#allocation2 + $0x79] sm:$0xff]  ;;  %v7014_v40 = vld [vmem:[%s9295_s19 + $0x228] sm:$0xff] }
 0x169   : > { %1907 = vrot.lane.b32.xlu1 %v7000_v27, %s8831_s26  ;;  %1905 = vrot.lane.b32.xlu0 %v6999_v28, %s8831_s26  ;;  %v3650_v27 = vld [vmem:[#allocation2 + $0x29] sm:$0xff]  ;;  %v3651_v28 = vld [vmem:[#allocation2 + $0x31] sm:$0xff] }
 0x16a   : > { %v3714_v34 = vpack.c.bf16 %v3651_v28, %v3650_v27  ;;  %v3665_v27 = vld [vmem:[#allocation2 + $0x131] sm:$0xff]  ;;  %v3666_v28 = vld [vmem:[#allocation2 + $0x169] sm:$0xff] }
 0x16b   : > { %v1209_v43 = vpop.permute.xlu1 %1208  ;;  %v1207_v44 = vpop.permute.xlu0 %1206 }
 0x16c   : > { %1346 = vst.msk [vmem:[#allocation2 + $0x451] sm:$0xff] %vm1290_vm4, %v1209_v43  ;;  %1345 = vst.msk [vmem:[#allocation2 + $0x449] sm:$0xff] %vm1290_vm4, %v1207_v44 }
 0x16d   : > { %1526 = vrot.lane.b32.xlu1 %v7002_v41, %s8830_s20  ;;  %1524 = vrot.lane.b32.xlu0 %v7001_v42, %s8830_s20 }
 0x16f   : > { %v827_v47 = vpop.permute.xlu1 %826  ;;  %v825_v48 = vpop.permute.xlu0 %824  ;;  %v3152_v49 = vld [vmem:[#allocation2 + $0x438] sm:$0xff]  ;;  %v3153_v50 = vld [vmem:[#allocation2 + $0x440] sm:$0xff] }
 0x170   : > { %963 = vst.msk [vmem:[#allocation2 + $0x490] sm:$0xff] %vm905_vm3, %v827_v47  ;;  %962 = vst.msk [vmem:[#allocation2 + $0x488] sm:$0xff] %vm905_vm3, %v825_v48  ;;  %v3190_v51 = vpack.c.bf16 %v3153_v50, %v3152_v49  ;;  %v2221_v47 = vld [vmem:[%s10960_s1] sm:$0x7]  ;;  %v7016_v49 = vld [vmem:[%s9295_s19 + $0x238] sm:$0xff] }
 0x171   : > { %1530 = vrot.lane.b32.xlu1 %v7004_v45, %s8830_s20  ;;  %1528 = vrot.lane.b32.xlu0 %v7003_v46, %s8830_s20  ;;  %v7015_v50 = vld [vmem:[%s9295_s19 + $0x230] sm:$0xff] }
 0x172   : > { %7926 = vmatprep.mubr.msk.bf16.mxu0 %vm412_vm0, %v3190_v51  ;;  %8652 = vmatprep.subr.msk.bf16.mxu1 %vm2807_vm2, %v2221_v47  ;;  %v7272_v51 = vld [vmem:[%s10944_s2 + $0x4] sm:$0x3] }
 0x173   : > { %v831_v52 = vpop.permute.xlu1 %830  ;;  %v829_v53 = vpop.permute.xlu0 %828  ;;  %v3154_v55 = vld [vmem:[#allocation2 + $0x448] sm:$0xff]  ;;  %v3155_v56 = vld [vmem:[#allocation2 + $0x450] sm:$0xff] }
 0x174   : > { %965 = vst.msk [vmem:[#allocation2 + $0x4a0] sm:$0xff] %vm905_vm3, %v831_v52  ;;  %964 = vst.msk [vmem:[#allocation2 + $0x498] sm:$0xff] %vm905_vm3, %v829_v53  ;;  %v3191_v57 = vpack.c.bf16 %v3155_v56, %v3154_v55 }
 0x175   : > { %1911 = vrot.lane.b32.xlu1 %v7002_v41, %s8831_s26  ;;  %1909 = vrot.lane.b32.xlu0 %v7001_v42, %s8831_s26  ;;  %v7013_v41 = vld [vmem:[%s9295_s19 + $0x220] sm:$0xff] }
 0x176   : > { %7927 = vmatmul.mubr.msk.bf16.gmra.mrb[52].mxu0 %vm412_vm0, %v3191_v57  ;;  %v3655_v42 = vld [vmem:[#allocation2 + $0x81] sm:$0xff]  ;;  %v9799_v57 = vand.u32 %v7272_v51, %v9417_v54 }
 0x177   : > { %v1213_v58 = vpop.permute.xlu1 %1212  ;;  %v1211_v59 = vpop.permute.xlu0 %1210  ;;  %v3716_v48 = vpack.c.bf16 %v3655_v42, %v3654_v39  ;;  %v3668_v39 = vld [vmem:[#allocation2 + $0x179] sm:$0xff]  ;;  %v7022_v42 = vld [vmem:[%s9295_s19 + $0x2a8] sm:$0xff] }
 0x178   : > { %1348 = vst.msk [vmem:[#allocation2 + $0x491] sm:$0xff] %vm1290_vm4, %v1213_v58  ;;  %1347 = vst.msk [vmem:[#allocation2 + $0x489] sm:$0xff] %vm1290_vm4, %v1211_v59  ;;  %v3656_v59 = vld [vmem:[#allocation2 + $0x89] sm:$0xff] }
 0x179   : > { %1915 = vrot.lane.b32.xlu1 %v7004_v45, %s8831_s26  ;;  %1913 = vrot.lane.b32.xlu0 %v7003_v46, %s8831_s26  ;;  %v3715_v45 = vpack.c.bf16 %v3653_v38, %v3652_v37  ;;  %v4395_v46 = vsel %vm2807_vm2, %v9604_v17, 0  ;;  %v2809_v17 = vsel %vm2807_vm2, %v2221_v47, 0 }
 0x17a   : > { %7807 = vmatpush3.bf16.msra.mxu1 %v2809_v17 }
 0x17b   : > { %v1217_v62 = vpop.permute.xlu1 %1216  ;;  %v1215_v63 = vpop.permute.xlu0 %1214 }
 0x17c   : > { %1350 = vst.msk [vmem:[#allocation2 + $0x4a1] sm:$0xff] %vm1290_vm4, %v1217_v62  ;;  %1349 = vst.msk [vmem:[#allocation2 + $0x499] sm:$0xff] %vm1290_vm4, %v1215_v63  ;;  %v3659_v62 = vld [vmem:[#allocation2 + $0xd1] sm:$0xff] }
 0x17d   : > { %1534 = vrot.lane.b32.xlu1 %v7006_v60, %s8830_s20  ;;  %1532 = vrot.lane.b32.xlu0 %v7005_v61, %s8830_s20 }
 0x17f   : > { %v835_v3 = vpop.permute.xlu1 %834  ;;  %v833_v4 = vpop.permute.xlu0 %832  ;;  %v3156_v5 = vld [vmem:[#allocation2 + $0x488] sm:$0xff]  ;;  %v3157_v6 = vld [vmem:[#allocation2 + $0x490] sm:$0xff] }
 0x180   : > { %967 = vst.msk [vmem:[#allocation2 + $0x4e0] sm:$0xff] %vm905_vm3, %v835_v3  ;;  %966 = vst.msk [vmem:[#allocation2 + $0x4d8] sm:$0xff] %vm905_vm3, %v833_v4  ;;  %v3192_v7 = vpack.c.bf16 %v3157_v6, %v3156_v5 }
 0x181   : > { %1538 = vrot.lane.b32.xlu1 %v7008_v1, %s8830_s20  ;;  %1536 = vrot.lane.b32.xlu0 %v7007_v2, %s8830_s20 }
 0x182   : > { %7930 = vmatprep.mubr.msk.bf16.mxu0 %vm412_vm0, %v3192_v7 }
 0x183   : > { %v839_v8 = vpop.permute.xlu1 %838  ;;  %v837_v9 = vpop.permute.xlu0 %836  ;;  %v3158_v10 = vld [vmem:[#allocation2 + $0x498] sm:$0xff]  ;;  %v3159_v11 = vld [vmem:[#allocation2 + $0x4a0] sm:$0xff] }
 0x184   : > { %969 = vst.msk [vmem:[#allocation2 + $0x4f0] sm:$0xff] %vm905_vm3, %v839_v8  ;;  %968 = vst.msk [vmem:[#allocation2 + $0x4e8] sm:$0xff] %vm905_vm3, %v837_v9  ;;  %v3193_v12 = vpack.c.bf16 %v3159_v11, %v3158_v10  ;;  %v3660_v8 = vld [vmem:[#allocation2 + $0xd9] sm:$0xff]  ;;  %v3661_v9 = vld [vmem:[#allocation2 + $0xe1] sm:$0xff] }
 0x185   : > { %1919 = vrot.lane.b32.xlu1 %v7006_v60, %s8831_s26  ;;  %1917 = vrot.lane.b32.xlu0 %v7005_v61, %s8831_s26  ;;  %v3657_v60 = vld [vmem:[#allocation2 + $0x91] sm:$0xff]  ;;  %v3658_v61 = vld [vmem:[#allocation2 + $0xc9] sm:$0xff]  ;;  %v3662_v10 = vld [vmem:[#allocation2 + $0x119] sm:$0xff] }
 0x186   : > { %7931 = vmatmul.mubr.msk.bf16.gmra.mrb[56].mxu0 %vm412_vm0, %v3193_v12  ;;  %v3717_v4 = vpack.c.bf16 %v3657_v60, %v3656_v59  ;;  %v3718_v5 = vpack.c.bf16 %v3659_v62, %v3658_v61  ;;  %v7018_v11 = vld [vmem:[%s9295_s19 + $0x268] sm:$0xff]  ;;  %v7017_v12 = vld [vmem:[%s9295_s19 + $0x260] sm:$0xff]  ;;  %v3675_v60 = vld [vmem:[#allocation2 + $0x211] sm:$0xff] }
 0x187   : > { %v1221_v13 = vpop.permute.xlu1 %1220  ;;  %v1219_v14 = vpop.permute.xlu0 %1218  ;;  %v3674_v59 = vld [vmem:[#allocation2 + $0x209] sm:$0xff] }
 0x188   : > { %1352 = vst.msk [vmem:[#allocation2 + $0x4e1] sm:$0xff] %vm1290_vm4, %v1221_v13  ;;  %1351 = vst.msk [vmem:[#allocation2 + $0x4d9] sm:$0xff] %vm1290_vm4, %v1219_v14  ;;  %v3663_v13 = vld [vmem:[#allocation2 + $0x121] sm:$0xff] }
 0x189   : > { %1923 = vrot.lane.b32.xlu1 %v7008_v1, %s8831_s26  ;;  %1921 = vrot.lane.b32.xlu0 %v7007_v2, %s8831_s26 }
 0x18b   : > { %v1225_v18 = vpop.permute.xlu1 %1224  ;;  %v1223_v19 = vpop.permute.xlu0 %1222 }
 0x18c   : > { %1354 = vst.msk [vmem:[#allocation2 + $0x4f1] sm:$0xff] %vm1290_vm4, %v1225_v18  ;;  %1353 = vst.msk [vmem:[#allocation2 + $0x4e9] sm:$0xff] %vm1290_vm4, %v1223_v19  ;;  %v3720_v18 = vpack.c.bf16 %v3663_v13, %v3662_v10  ;;  %v7020_v19 = vld [vmem:[%s9295_s19 + $0x278] sm:$0xff]  ;;  %v7025_v10 = vld [vmem:[%s9295_s19 + $0x2e0] sm:$0xff] }
 0x18d   : > { %1542 = vrot.lane.b32.xlu1 %v7010_v15, %s8830_s20  ;;  %1540 = vrot.lane.b32.xlu0 %v7009_v16, %s8830_s20 }
 0x18f   : > { %v1487_v22 = vpop.permute.xlu1 %1486  ;;  %v1485_v23 = vpop.permute.xlu0 %1484  ;;  %v3160_v24 = vld [vmem:[#allocation2 + $0x4d8] sm:$0xff]  ;;  %v3161_v25 = vld [vmem:[#allocation2 + $0x4e0] sm:$0xff] }
 0x190   : > { %1678 = vst.msk [vmem:[#allocation2 + $0x58] sm:$0xff] %vm905_vm3, %v1487_v22  ;;  %1677 = vst.msk [vmem:[#allocation2 + $0x50] sm:$0xff] %vm905_vm3, %v1485_v23  ;;  %v3194_v26 = vpack.c.bf16 %v3161_v25, %v3160_v24 }
 0x191   : > { %1546 = vrot.lane.b32.xlu1 %v7012_v20, %s8830_s20  ;;  %1544 = vrot.lane.b32.xlu0 %v7011_v21, %s8830_s20 }
 0x192   : > { %7934 = vmatprep.mubr.msk.bf16.mxu0 %vm412_vm0, %v3194_v26  ;;  %v3664_v26 = vld [vmem:[#allocation2 + $0x129] sm:$0xff] }
 0x193   : > { %v1491_v29 = vpop.permute.xlu1 %1490  ;;  %v1489_v30 = vpop.permute.xlu0 %1488  ;;  %v3162_v31 = vld [vmem:[#allocation2 + $0x4e8] sm:$0xff]  ;;  %v3163_v32 = vld [vmem:[#allocation2 + $0x4f0] sm:$0xff] }
 0x194   : > { %1680 = vst.msk [vmem:[#allocation2 + $0x68] sm:$0xff] %vm905_vm3, %v1491_v29  ;;  %1679 = vst.msk [vmem:[#allocation2 + $0x60] sm:$0xff] %vm905_vm3, %v1489_v30  ;;  %v3195_v33 = vpack.c.bf16 %v3163_v32, %v3162_v31  ;;  %v3667_v29 = vld [vmem:[#allocation2 + $0x171] sm:$0xff] }
 0x195   : > { %1927 = vrot.lane.b32.xlu1 %v7010_v15, %s8831_s26  ;;  %1925 = vrot.lane.b32.xlu0 %v7009_v16, %s8831_s26  ;;  %v3719_v16 = vpack.c.bf16 %v3661_v9, %v3660_v8  ;;  %v3678_v8 = vld [vmem:[#allocation2 + $0x259] sm:$0xff]  ;;  %v7026_v9 = vld [vmem:[%s9295_s19 + $0x2e8] sm:$0xff] }
 0x196   : > { %7935 = vmatmul.mubr.msk.bf16.gmra.mrb[60].mxu0 %vm412_vm0, %v3195_v33 }
 0x197   : > { %v1872_v35 = vpop.permute.xlu1 %1871  ;;  %7940 = vmatprep.mubr.msk.bf16.mxu0 %vm1290_vm4, %v3714_v34  ;;  %v1870_v36 = vpop.permute.xlu0 %1869 }
 0x198   : > { %2062 = vst.msk [vmem:[#allocation2 + $0x59] sm:$0xff] %vm1290_vm4, %v1872_v35  ;;  %2061 = vst.msk [vmem:[#allocation2 + $0x51] sm:$0xff] %vm1290_vm4, %v1870_v36  ;;  %v3721_v35 = vpack.c.bf16 %v3665_v27, %v3664_v26  ;;  %v3722_v36 = vpack.c.bf16 %v3667_v29, %v3666_v28  ;;  %v3682_v26 = vld [vmem:[#allocation2 + $0x2a9] sm:$0xff]  ;;  %v3683_v27 = vld [vmem:[#allocation2 + $0x2b1] sm:$0xff] }
 0x199   : > { %1931 = vrot.lane.b32.xlu1 %v7012_v20, %s8831_s26  ;;  %1929 = vrot.lane.b32.xlu0 %v7011_v21, %s8831_s26  ;;  %v7019_v20 = vld [vmem:[%s9295_s19 + $0x270] sm:$0xff] }
 0x19b   : > { %v1876_v43 = vpop.permute.xlu1 %1875  ;;  %v1874_v44 = vpop.permute.xlu0 %1873 }
 0x19c   : > { %2064 = vst.msk [vmem:[#allocation2 + $0x69] sm:$0xff] %vm1290_vm4, %v1876_v43  ;;  %2063 = vst.msk [vmem:[#allocation2 + $0x61] sm:$0xff] %vm1290_vm4, %v1874_v44  ;;  %v7021_v43 = vld [vmem:[%s9295_s19 + $0x2a0] sm:$0xff] }
 0x19d   : > { %1550 = vrot.lane.b32.xlu1 %v7014_v40, %s8830_s20  ;;  %1548 = vrot.lane.b32.xlu0 %v7013_v41, %s8830_s20  ;;  %v3671_v44 = vld [vmem:[#allocation2 + $0x1c1] sm:$0xff] }
 0x19e   : > { %7941 = vmatmul.mubr.msk.bf16.vlgmr.msra.gmra.mrb[0].mxu0 %vm1290_vm4, %v3715_v45 }
 0x19f   : > { %v1495_v52 = vpop.permute.xlu1 %1494  ;;  %7944 = vmatprep.mubr.msk.bf16.mxu0 %vm1290_vm4, %v3716_v48  ;;  %8005 = vmatpush3.bf16.msra.mxu0 %v4395_v46  ;;  %v1493_v53 = vpop.permute.xlu0 %1492  ;;  %v2226_v55 = vld [vmem:[#allocation2 + $0x51] sm:$0xff]  ;;  %v2227_v56 = vld [vmem:[#allocation2 + $0x59] sm:$0xff] }
 0x1a0   : > { %1682 = vst.msk [vmem:[#allocation2 + $0xa8] sm:$0xff] %vm905_vm3, %v1495_v52  ;;  %1681 = vst.msk [vmem:[#allocation2 + $0xa0] sm:$0xff] %vm905_vm3, %v1493_v53  ;;  %v2288_v58 = vpack.c.bf16 %v2227_v56, %v2226_v55  ;;  %8070 = vmatprep.subr.bf16.mxu0 %v9799_v57  ;;  %v3672_v56 = vld [vmem:[#allocation2 + $0x1c9] sm:$0xff] }
 0x1a1   : > { %1554 = vrot.lane.b32.xlu1 %v7016_v49, %s8830_s20  ;;  %1552 = vrot.lane.b32.xlu0 %v7015_v50, %s8830_s20 }
 0x1a2   : > { %7746 = vmatprep.mubr.msk.bf16.mxu1 %vm1290_vm4, %v2288_v58  ;;  %v3673_v58 = vld [vmem:[#allocation2 + $0x1d1] sm:$0xff] }
 0x1a3   : > { %v1499_v54 = vpop.permute.xlu1 %1498  ;;  %v1497_v63 = vpop.permute.xlu0 %1496  ;;  %v2228_v1 = vld [vmem:[#allocation2 + $0x61] sm:$0xff]  ;;  %v2229_v2 = vld [vmem:[#allocation2 + $0x69] sm:$0xff] }
 0x1a4   : > { %1684 = vst.msk [vmem:[#allocation2 + $0xb8] sm:$0xff] %vm905_vm3, %v1499_v54  ;;  %1683 = vst.msk [vmem:[#allocation2 + $0xb0] sm:$0xff] %vm905_vm3, %v1497_v63  ;;  %v2289_v3 = vpack.c.bf16 %v2229_v2, %v2228_v1  ;;  %v3725_v2 = vpack.c.bf16 %v3673_v58, %v3672_v56  ;;  %v3690_v56 = vld [vmem:[#allocation2 + $0x349] sm:$0xff]  ;;  %v3691_v58 = vld [vmem:[#allocation2 + $0x351] sm:$0xff] }
 0x1a5   : > { %1935 = vrot.lane.b32.xlu1 %v7014_v40, %s8831_s26  ;;  %1933 = vrot.lane.b32.xlu0 %v7013_v41, %s8831_s26  ;;  %v3669_v40 = vld [vmem:[#allocation2 + $0x181] sm:$0xff]  ;;  %v3670_v41 = vld [vmem:[#allocation2 + $0x1b9] sm:$0xff] }
 0x1a6   : > { %7747 = vmatmul.mubr.msk.bf16.gmra.mrb[4].mxu1 %vm1290_vm4, %v2289_v3  ;;  %7945 = vmatmul.mubr.msk.bf16.gmra.mrb[4].mxu0 %vm1290_vm4, %v3717_v4  ;;  %v3723_v47 = vpack.c.bf16 %v3669_v40, %v3668_v39  ;;  %v3724_v48 = vpack.c.bf16 %v3671_v44, %v3670_v41  ;;  %v3726_v3 = vpack.c.bf16 %v3675_v60, %v3674_v59  ;;  %v3686_v39 = vld [vmem:[#allocation2 + $0x2f9] sm:$0xff]  ;;  %v7030_v40 = vld [vmem:[%s9295_s19 + $0x328] sm:$0xff] }
 0x1a7   : > { %v1880_v6 = vpop.permute.xlu1 %1879  ;;  %7948 = vmatprep.mubr.msk.bf16.mxu0 %vm1290_vm4, %v3718_v5  ;;  %v1878_v7 = vpop.permute.xlu0 %1877  ;;  %v7029_v41 = vld [vmem:[%s9295_s19 + $0x320] sm:$0xff] }
 0x1a8   : > { %2066 = vst.msk [vmem:[#allocation2 + $0xa9] sm:$0xff] %vm1290_vm4, %v1880_v6  ;;  %2065 = vst.msk [vmem:[#allocation2 + $0xa1] sm:$0xff] %vm1290_vm4, %v1878_v7  ;;  %v3676_v6 = vld [vmem:[#allocation2 + $0x219] sm:$0xff]  ;;  %v3677_v7 = vld [vmem:[#allocation2 + $0x221] sm:$0xff] }
 0x1a9   : > { %1939 = vrot.lane.b32.xlu1 %v7016_v49, %s8831_s26  ;;  %1937 = vrot.lane.b32.xlu0 %v7015_v50, %s8831_s26  ;;  %v7024_v49 = vld [vmem:[%s9295_s19 + $0x2b8] sm:$0xff]  ;;  %v7023_v50 = vld [vmem:[%s9295_s19 + $0x2b0] sm:$0xff] }
 0x1ab   : > { %v1884_v14 = vpop.permute.xlu1 %1883  ;;  %v1882_v15 = vpop.permute.xlu0 %1881 }
 0x1ac   : > { %2068 = vst.msk [vmem:[#allocation2 + $0xb9] sm:$0xff] %vm1290_vm4, %v1884_v14  ;;  %2067 = vst.msk [vmem:[#allocation2 + $0xb1] sm:$0xff] %vm1290_vm4, %v1882_v15  ;;  %v3727_v14 = vpack.c.bf16 %v3677_v7, %v3676_v6  ;;  %v3694_v6 = vld [vmem:[#allocation2 + $0x399] sm:$0xff]  ;;  %v7034_v7 = vld [vmem:[%s9295_s19 + $0x368] sm:$0xff] }
 0x1ad   : > { %1558 = vrot.lane.b32.xlu1 %v7018_v11, %s8830_s20  ;;  %1556 = vrot.lane.b32.xlu0 %v7017_v12, %s8830_s20 }
 0x1ae   : > { %7949 = vmatmul.mubr.msk.bf16.gmra.mrb[8].mxu0 %vm1290_vm4, %v3719_v16  ;;  %v7028_v16 = vld [vmem:[%s9295_s19 + $0x2f8] sm:$0xff] }
 0x1af   : > { %v1503_v21 = vpop.permute.xlu1 %1502  ;;  %7952 = vmatprep.mubr.msk.bf16.mxu0 %vm1290_vm4, %v3720_v18  ;;  %v1501_v22 = vpop.permute.xlu0 %1500  ;;  %v2230_v23 = vld [vmem:[#allocation2 + $0xa1] sm:$0xff]  ;;  %v2231_v24 = vld [vmem:[#allocation2 + $0xa9] sm:$0xff] }
 0x1b0   : > { %1686 = vst.msk [vmem:[#allocation2 + $0xf8] sm:$0xff] %vm905_vm3, %v1503_v21  ;;  %1685 = vst.msk [vmem:[#allocation2 + $0xf0] sm:$0xff] %vm905_vm3, %v1501_v22  ;;  %v2290_v25 = vpack.c.bf16 %v2231_v24, %v2230_v23  ;;  %v7027_v18 = vld [vmem:[%s9295_s19 + $0x2f0] sm:$0xff] }
 0x1b1   : > { %1562 = vrot.lane.b32.xlu1 %v7020_v19, %s8830_s20  ;;  %1560 = vrot.lane.b32.xlu0 %v7019_v20, %s8830_s20  ;;  %v3680_v24 = vld [vmem:[#allocation2 + $0x269] sm:$0xff] }
 0x1b2   : > { %7750 = vmatprep.mubr.msk.bf16.mxu1 %vm1290_vm4, %v2290_v25  ;;  %v3681_v25 = vld [vmem:[#allocation2 + $0x271] sm:$0xff] }
 0x1b3   : > { %v1507_v30 = vpop.permute.xlu1 %1506  ;;  %v1505_v31 = vpop.permute.xlu0 %1504  ;;  %v2232_v32 = vld [vmem:[#allocation2 + $0xb1] sm:$0xff]  ;;  %v2233_v33 = vld [vmem:[#allocation2 + $0xb9] sm:$0xff] }
 0x1b4   : > { %1688 = vst.msk [vmem:[#allocation2 + $0x108] sm:$0xff] %vm905_vm3, %v1507_v30  ;;  %1687 = vst.msk [vmem:[#allocation2 + $0x100] sm:$0xff] %vm905_vm3, %v1505_v31  ;;  %v2291_v34 = vpack.c.bf16 %v2233_v33, %v2232_v32  ;;  %v3729_v33 = vpack.c.bf16 %v3681_v25, %v3680_v24  ;;  %v3698_v24 = vld [vmem:[#allocation2 + $0x3e9] sm:$0xff]  ;;  %v3699_v25 = vld [vmem:[#allocation2 + $0x3f1] sm:$0xff] }
 0x1b5   : > { %1943 = vrot.lane.b32.xlu1 %v7018_v11, %s8831_s26  ;;  %1941 = vrot.lane.b32.xlu0 %v7017_v12, %s8831_s26  ;;  %v3679_v11 = vld [vmem:[#allocation2 + $0x261] sm:$0xff] }
 0x1b6   : > { %7751 = vmatmul.mubr.msk.bf16.gmra.mrb[8].mxu1 %vm1290_vm4, %v2291_v34  ;;  %7953 = vmatmul.mubr.msk.bf16.gmra.mrb[12].mxu0 %vm1290_vm4, %v3721_v35  ;;  %v3728_v15 = vpack.c.bf16 %v3679_v11, %v3678_v8  ;;  %v3730_v34 = vpack.c.bf16 %v3683_v27, %v3682_v26  ;;  %v7033_v8 = vld [vmem:[%s9295_s19 + $0x360] sm:$0xff] }
 0x1b7   : > { %v1888_v37 = vpop.permute.xlu1 %1887  ;;  %7956 = vmatprep.mubr.msk.bf16.mxu0 %vm1290_vm4, %v3722_v36  ;;  %v1886_v38 = vpop.permute.xlu0 %1885 }
 0x1b8   : > { %2070 = vst.msk [vmem:[#allocation2 + $0xf9] sm:$0xff] %vm1290_vm4, %v1888_v37  ;;  %2069 = vst.msk [vmem:[#allocation2 + $0xf1] sm:$0xff] %vm1290_vm4, %v1886_v38  ;;  %v3684_v37 = vld [vmem:[#allocation2 + $0x2b9] sm:$0xff]  ;;  %v3685_v38 = vld [vmem:[#allocation2 + $0x2c1] sm:$0xff] }
 0x1b9   : > { %1947 = vrot.lane.b32.xlu1 %v7020_v19, %s8831_s26  ;;  %1945 = vrot.lane.b32.xlu0 %v7019_v20, %s8831_s26 }
 0x1bb   : > { %v1892_v45 = vpop.permute.xlu1 %1891  ;;  %v1890_v46 = vpop.permute.xlu0 %1889 }
 0x1bc   : > { %2072 = vst.msk [vmem:[#allocation2 + $0x109] sm:$0xff] %vm1290_vm4, %v1892_v45  ;;  %2071 = vst.msk [vmem:[#allocation2 + $0x101] sm:$0xff] %vm1290_vm4, %v1890_v46  ;;  %v3731_v45 = vpack.c.bf16 %v3685_v38, %v3684_v37  ;;  %v3702_v37 = vld [vmem:[#allocation2 + $0x439] sm:$0xff]  ;;  %v7038_v38 = vld [vmem:[%s9295_s19 + $0x3a8] sm:$0xff] }
 0x1bd   : > { %1566 = vrot.lane.b32.xlu1 %v7022_v42, %s8830_s20  ;;  %1564 = vrot.lane.b32.xlu0 %v7021_v43, %s8830_s20 }
 0x1be   : > { %7957 = vmatmul.mubr.msk.bf16.gmra.mrb[16].mxu0 %vm1290_vm4, %v3723_v47  ;;  %v7032_v47 = vld [vmem:[%s9295_s19 + $0x338] sm:$0xff] }
 0x1bf   : > { %v1511_v51 = vpop.permute.xlu1 %1510  ;;  %7960 = vmatprep.mubr.msk.bf16.mxu0 %vm1290_vm4, %v3724_v48  ;;  %v1509_v17 = vpop.permute.xlu0 %1508  ;;  %v2234_v52 = vld [vmem:[#allocation2 + $0xf1] sm:$0xff]  ;;  %v2235_v53 = vld [vmem:[#allocation2 + $0xf9] sm:$0xff] }
 0x1c0   : > { %1690 = vst.msk [vmem:[#allocation2 + $0x148] sm:$0xff] %vm905_vm3, %v1511_v51  ;;  %1689 = vst.msk [vmem:[#allocation2 + $0x140] sm:$0xff] %vm905_vm3, %v1509_v17  ;;  %v2292_v55 = vpack.c.bf16 %v2235_v53, %v2234_v52  ;;  %v7031_v48 = vld [vmem:[%s9295_s19 + $0x330] sm:$0xff] }
 0x1c1   : > { %1570 = vrot.lane.b32.xlu1 %v7024_v49, %s8830_s20  ;;  %1568 = vrot.lane.b32.xlu0 %v7023_v50, %s8830_s20  ;;  %v3688_v53 = vld [vmem:[#allocation2 + $0x309] sm:$0xff] }
 0x1c2   : > { %7754 = vmatprep.mubr.msk.bf16.mxu1 %vm1290_vm4, %v2292_v55  ;;  %v3689_v55 = vld [vmem:[#allocation2 + $0x311] sm:$0xff] }
 0x1c3   : > { %v1515_v61 = vpop.permute.xlu1 %1514  ;;  %v1513_v62 = vpop.permute.xlu0 %1512  ;;  %v2236_v54 = vld [vmem:[#allocation2 + $0x101] sm:$0xff]  ;;  %v2237_v63 = vld [vmem:[#allocation2 + $0x109] sm:$0xff] }
 0x1c4   : > { %1692 = vst.msk [vmem:[#allocation2 + $0x158] sm:$0xff] %vm905_vm3, %v1515_v61  ;;  %1691 = vst.msk [vmem:[#allocation2 + $0x150] sm:$0xff] %vm905_vm3, %v1513_v62  ;;  %v2293_v1 = vpack.c.bf16 %v2237_v63, %v2236_v54  ;;  %v3733_v63 = vpack.c.bf16 %v3689_v55, %v3688_v53  ;;  %v3706_v53 = vld [vmem:[#allocation2 + $0x489] sm:$0xff]  ;;  %v3707_v55 = vld [vmem:[#allocation2 + $0x491] sm:$0xff] }
 0x1c5   : > { %1951 = vrot.lane.b32.xlu1 %v7022_v42, %s8831_s26  ;;  %1949 = vrot.lane.b32.xlu0 %v7021_v43, %s8831_s26  ;;  %v3687_v42 = vld [vmem:[#allocation2 + $0x301] sm:$0xff] }
 0x1c6   : > { %7755 = vmatmul.mubr.msk.bf16.gmra.mrb[12].mxu1 %vm1290_vm4, %v2293_v1  ;;  %7961 = vmatmul.mubr.msk.bf16.gmra.mrb[20].mxu0 %vm1290_vm4, %v3725_v2  ;;  %v3732_v46 = vpack.c.bf16 %v3687_v42, %v3686_v39  ;;  %v3734_v1 = vpack.c.bf16 %v3691_v58, %v3690_v56  ;;  %v7037_v39 = vld [vmem:[%s9295_s19 + $0x3a0] sm:$0xff] }
 0x1c7   : > { %v1896_v4 = vpop.permute.xlu1 %1895  ;;  %7964 = vmatprep.mubr.msk.bf16.mxu0 %vm1290_vm4, %v3726_v3  ;;  %v1894_v5 = vpop.permute.xlu0 %1893 }
 0x1c8   : > { %2074 = vst.msk [vmem:[#allocation2 + $0x149] sm:$0xff] %vm1290_vm4, %v1896_v4  ;;  %2073 = vst.msk [vmem:[#allocation2 + $0x141] sm:$0xff] %vm1290_vm4, %v1894_v5  ;;  %v3692_v4 = vld [vmem:[#allocation2 + $0x359] sm:$0xff]  ;;  %v3693_v5 = vld [vmem:[#allocation2 + $0x361] sm:$0xff] }
 0x1c9   : > { %1955 = vrot.lane.b32.xlu1 %v7024_v49, %s8831_s26  ;;  %1953 = vrot.lane.b32.xlu0 %v7023_v50, %s8831_s26 }
 0x1cb   : > { %v1900_v12 = vpop.permute.xlu1 %1899  ;;  %v1898_v13 = vpop.permute.xlu0 %1897 }
 0x1cc   : > { %2076 = vst.msk [vmem:[#allocation2 + $0x159] sm:$0xff] %vm1290_vm4, %v1900_v12  ;;  %2075 = vst.msk [vmem:[#allocation2 + $0x151] sm:$0xff] %vm1290_vm4, %v1898_v13  ;;  %v3735_v12 = vpack.c.bf16 %v3693_v5, %v3692_v4  ;;  %v3709_v4 = vld [vmem:[#allocation2 + $0x4a1] sm:$0xff] }
 0x1cd   : > { %1574 = vrot.lane.b32.xlu1 %v7026_v9, %s8830_s20  ;;  %1572 = vrot.lane.b32.xlu0 %v7025_v10, %s8830_s20  ;;  %v7041_v5 = vld [vmem:[%s9295_s19 + $0x3e0] sm:$0xff] }
 0x1ce   : > { %7965 = vmatmul.mubr.msk.bf16.gmra.mrb[24].mxu0 %vm1290_vm4, %v3727_v14  ;;  %v7036_v14 = vld [vmem:[%s9295_s19 + $0x378] sm:$0xff] }
 0x1cf   : > { %v1519_v19 = vpop.permute.xlu1 %1518  ;;  %7968 = vmatprep.mubr.msk.bf16.mxu0 %vm1290_vm4, %v3728_v15  ;;  %v1517_v20 = vpop.permute.xlu0 %1516  ;;  %v2238_v21 = vld [vmem:[#allocation2 + $0x141] sm:$0xff]  ;;  %v2239_v22 = vld [vmem:[#allocation2 + $0x149] sm:$0xff] }
 0x1d0   : > { %1694 = vst.msk [vmem:[#allocation2 + $0x198] sm:$0xff] %vm905_vm3, %v1519_v19  ;;  %1693 = vst.msk [vmem:[#allocation2 + $0x190] sm:$0xff] %vm905_vm3, %v1517_v20  ;;  %v2294_v23 = vpack.c.bf16 %v2239_v22, %v2238_v21  ;;  %v7035_v15 = vld [vmem:[%s9295_s19 + $0x370] sm:$0xff] }
 0x1d1   : > { %1578 = vrot.lane.b32.xlu1 %v7028_v16, %s8830_s20  ;;  %1576 = vrot.lane.b32.xlu0 %v7027_v18, %s8830_s20  ;;  %v3696_v22 = vld [vmem:[#allocation2 + $0x3a9] sm:$0xff] }
 0x1d2   : > { %7758 = vmatprep.mubr.msk.bf16.mxu1 %vm1290_vm4, %v2294_v23  ;;  %v3697_v23 = vld [vmem:[#allocation2 + $0x3b1] sm:$0xff] }
 0x1d3   : > { %v1523_v28 = vpop.permute.xlu1 %1522  ;;  %v1521_v29 = vpop.permute.xlu0 %1520  ;;  %v2240_v30 = vld [vmem:[#allocation2 + $0x151] sm:$0xff]  ;;  %v2241_v31 = vld [vmem:[#allocation2 + $0x159] sm:$0xff] }
 0x1d4   : > { %1696 = vst.msk [vmem:[#allocation2 + $0x1a8] sm:$0xff] %vm905_vm3, %v1523_v28  ;;  %1695 = vst.msk [vmem:[#allocation2 + $0x1a0] sm:$0xff] %vm905_vm3, %v1521_v29  ;;  %v2295_v32 = vpack.c.bf16 %v2241_v31, %v2240_v30  ;;  %v3737_v31 = vpack.c.bf16 %v3697_v23, %v3696_v22  ;;  %v4200_v22 = vld [vmem:[#allocation2 + $0x50] sm:$0xff]  ;;  %v4201_v23 = vld [vmem:[#allocation2 + $0x58] sm:$0xff] }
 0x1d5   : > { %1959 = vrot.lane.b32.xlu1 %v7026_v9, %s8831_s26  ;;  %1957 = vrot.lane.b32.xlu0 %v7025_v10, %s8831_s26  ;;  %v3695_v9 = vld [vmem:[#allocation2 + $0x3a1] sm:$0xff] }
 0x1d6   : > { %7759 = vmatmul.mubr.msk.bf16.gmra.mrb[16].mxu1 %vm1290_vm4, %v2295_v32  ;;  %7969 = vmatmul.mubr.msk.bf16.gmra.mrb[28].mxu0 %vm1290_vm4, %v3729_v33  ;;  %v3736_v13 = vpack.c.bf16 %v3695_v9, %v3694_v6  ;;  %v3738_v32 = vpack.c.bf16 %v3699_v25, %v3698_v24  ;;  %v3710_v6 = vld [vmem:[#allocation2 + $0x4d9] sm:$0xff] }
 0x1d7   : > { %v1904_v35 = vpop.permute.xlu1 %1903  ;;  %7972 = vmatprep.mubr.msk.bf16.mxu0 %vm1290_vm4, %v3730_v34  ;;  %v1902_v36 = vpop.permute.xlu0 %1901 }
 0x1d8   : > { %2078 = vst.msk [vmem:[#allocation2 + $0x199] sm:$0xff] %vm1290_vm4, %v1904_v35  ;;  %2077 = vst.msk [vmem:[#allocation2 + $0x191] sm:$0xff] %vm1290_vm4, %v1902_v36  ;;  %v3700_v35 = vld [vmem:[#allocation2 + $0x3f9] sm:$0xff]  ;;  %v3701_v36 = vld [vmem:[#allocation2 + $0x401] sm:$0xff] }
 0x1d9   : > { %1963 = vrot.lane.b32.xlu1 %v7028_v16, %s8831_s26  ;;  %1961 = vrot.lane.b32.xlu0 %v7027_v18, %s8831_s26 }
 0x1db   : > { %v1908_v43 = vpop.permute.xlu1 %1907  ;;  %v1906_v44 = vpop.permute.xlu0 %1905 }
 0x1dc   : > { %2080 = vst.msk [vmem:[#allocation2 + $0x1a9] sm:$0xff] %vm1290_vm4, %v1908_v43  ;;  %2079 = vst.msk [vmem:[#allocation2 + $0x1a1] sm:$0xff] %vm1290_vm4, %v1906_v44  ;;  %v3739_v43 = vpack.c.bf16 %v3701_v36, %v3700_v35  ;;  %v4204_v35 = vld [vmem:[#allocation2 + $0xa0] sm:$0xff]  ;;  %v4205_v36 = vld [vmem:[#allocation2 + $0xa8] sm:$0xff] }
 0x1dd   : > { %1582 = vrot.lane.b32.xlu1 %v7030_v40, %s8830_s20  ;;  %1580 = vrot.lane.b32.xlu0 %v7029_v41, %s8830_s20 }
 0x1de   : > { %7973 = vmatmul.mubr.msk.bf16.gmra.mrb[32].mxu0 %vm1290_vm4, %v3731_v45  ;;  %v7040_v45 = vld [vmem:[%s9295_s19 + $0x3b8] sm:$0xff] }
 0x1df   : > { %v1527_v49 = vpop.permute.xlu1 %1526  ;;  %7976 = vmatprep.mubr.msk.bf16.mxu0 %vm1290_vm4, %v3732_v46  ;;  %v1525_v50 = vpop.permute.xlu0 %1524  ;;  %v2242_v51 = vld [vmem:[#allocation2 + $0x191] sm:$0xff]  ;;  %v2243_v17 = vld [vmem:[#allocation2 + $0x199] sm:$0xff] }
 0x1e0   : > { %1698 = vst.msk [vmem:[#allocation2 + $0x1e8] sm:$0xff] %vm905_vm3, %v1527_v49  ;;  %1697 = vst.msk [vmem:[#allocation2 + $0x1e0] sm:$0xff] %vm905_vm3, %v1525_v50  ;;  %v2296_v52 = vpack.c.bf16 %v2243_v17, %v2242_v51  ;;  %v7039_v46 = vld [vmem:[%s9295_s19 + $0x3b0] sm:$0xff] }
 0x1e1   : > { %1586 = vrot.lane.b32.xlu1 %v7032_v47, %s8830_s20  ;;  %1584 = vrot.lane.b32.xlu0 %v7031_v48, %s8830_s20  ;;  %v3704_v17 = vld [vmem:[#allocation2 + $0x449] sm:$0xff] }
 0x1e2   : > { %7762 = vmatprep.mubr.msk.bf16.mxu1 %vm1290_vm4, %v2296_v52  ;;  %v3705_v52 = vld [vmem:[#allocation2 + $0x451] sm:$0xff] }
 0x1e3   : > { %v1531_v59 = vpop.permute.xlu1 %1530  ;;  %v1529_v60 = vpop.permute.xlu0 %1528  ;;  %v2244_v61 = vld [vmem:[#allocation2 + $0x1a1] sm:$0xff]  ;;  %v2245_v62 = vld [vmem:[#allocation2 + $0x1a9] sm:$0xff] }
 0x1e4   : > { %1700 = vst.msk [vmem:[#allocation2 + $0x1f8] sm:$0xff] %vm905_vm3, %v1531_v59  ;;  %1699 = vst.msk [vmem:[#allocation2 + $0x1f0] sm:$0xff] %vm905_vm3, %v1529_v60  ;;  %v2297_v54 = vpack.c.bf16 %v2245_v62, %v2244_v61  ;;  %v3741_v62 = vpack.c.bf16 %v3705_v52, %v3704_v17 }
 0x1e5   : > { %1967 = vrot.lane.b32.xlu1 %v7030_v40, %s8831_s26  ;;  %1965 = vrot.lane.b32.xlu0 %v7029_v41, %s8831_s26  ;;  %v3703_v40 = vld [vmem:[#allocation2 + $0x441] sm:$0xff] }
 0x1e6   : > { %7763 = vmatmul.mubr.msk.bf16.gmra.mrb[20].mxu1 %vm1290_vm4, %v2297_v54  ;;  %7977 = vmatmul.mubr.msk.bf16.gmra.mrb[36].mxu0 %vm1290_vm4, %v3733_v63  ;;  %v3740_v44 = vpack.c.bf16 %v3703_v40, %v3702_v37  ;;  %v3742_v54 = vpack.c.bf16 %v3707_v55, %v3706_v53  ;;  %v10019_v40 = vpack.c.bf16 %v4205_v36, %v4204_v35 }
 0x1e7   : > { %v1912_v2 = vpop.permute.xlu1 %1911  ;;  %7980 = vmatprep.mubr.msk.bf16.mxu0 %vm1290_vm4, %v3734_v1  ;;  %v1910_v3 = vpop.permute.xlu0 %1909 }
 0x1e8   : > { %2082 = vst.msk [vmem:[#allocation2 + $0x1e9] sm:$0xff] %vm1290_vm4, %v1912_v2  ;;  %2081 = vst.msk [vmem:[#allocation2 + $0x1e1] sm:$0xff] %vm1290_vm4, %v1910_v3  ;;  %v7042_v2 = vld [vmem:[%s9295_s19 + $0x3e8] sm:$0xff]  ;;  %v3708_v3 = vld [vmem:[#allocation2 + $0x499] sm:$0xff] }
 0x1e9   : > { %1971 = vrot.lane.b32.xlu1 %v7032_v47, %s8831_s26  ;;  %1969 = vrot.lane.b32.xlu0 %v7031_v48, %s8831_s26 }
 0x1eb   : > { %v1916_v10 = vpop.permute.xlu1 %1915  ;;  %v1914_v11 = vpop.permute.xlu0 %1913 }
 0x1ec   : > { %2084 = vst.msk [vmem:[#allocation2 + $0x1f9] sm:$0xff] %vm1290_vm4, %v1916_v10  ;;  %2083 = vst.msk [vmem:[#allocation2 + $0x1f1] sm:$0xff] %vm1290_vm4, %v1914_v11  ;;  %v3743_v10 = vpack.c.bf16 %v3709_v4, %v3708_v3 }
 0x1ed   : > { %1590 = vrot.lane.b32.xlu1 %v7034_v7, %s8830_s20  ;;  %1588 = vrot.lane.b32.xlu0 %v7033_v8, %s8830_s20 }
 0x1ee   : > { %7981 = vmatmul.mubr.msk.bf16.gmra.mrb[40].mxu0 %vm1290_vm4, %v3735_v12  ;;  %v7044_v12 = vld [vmem:[%s9295_s19 + $0x3f8] sm:$0xff] }
 0x1ef   : > { %v1535_v16 = vpop.permute.xlu1 %1534  ;;  %7984 = vmatprep.mubr.msk.bf16.mxu0 %vm1290_vm4, %v3736_v13  ;;  %v1533_v18 = vpop.permute.xlu0 %1532  ;;  %v2246_v19 = vld [vmem:[#allocation2 + $0x1e1] sm:$0xff]  ;;  %v2247_v20 = vld [vmem:[#allocation2 + $0x1e9] sm:$0xff] }
 0x1f0   : > { %1702 = vst.msk [vmem:[#allocation2 + $0x238] sm:$0xff] %vm905_vm3, %v1535_v16  ;;  %1701 = vst.msk [vmem:[#allocation2 + $0x230] sm:$0xff] %vm905_vm3, %v1533_v18  ;;  %v2298_v21 = vpack.c.bf16 %v2247_v20, %v2246_v19  ;;  %v7043_v13 = vld [vmem:[%s9295_s19 + $0x3f0] sm:$0xff]  ;;  %s8835_s19 = smov 64  }
 0x1f1   : > { %1594 = vrot.lane.b32.xlu1 %v7036_v14, %s8830_s20  ;;  %1592 = vrot.lane.b32.xlu0 %v7035_v15, %s8830_s20  ;;  %v3712_v20 = vld [vmem:[#allocation2 + $0x4e9] sm:$0xff] }
 0x1f2   : > { %7766 = vmatprep.mubr.msk.bf16.mxu1 %vm1290_vm4, %v2298_v21  ;;  %v3713_v21 = vld [vmem:[#allocation2 + $0x4f1] sm:$0xff] }
 0x1f3   : > { %v1539_v26 = vpop.permute.xlu1 %1538  ;;  %v1537_v27 = vpop.permute.xlu0 %1536  ;;  %v2248_v28 = vld [vmem:[#allocation2 + $0x1f1] sm:$0xff]  ;;  %v2249_v29 = vld [vmem:[#allocation2 + $0x1f9] sm:$0xff] }
 0x1f4   : > { %1704 = vst.msk [vmem:[#allocation2 + $0x248] sm:$0xff] %vm905_vm3, %v1539_v26  ;;  %1703 = vst.msk [vmem:[#allocation2 + $0x240] sm:$0xff] %vm905_vm3, %v1537_v27  ;;  %v2299_v30 = vpack.c.bf16 %v2249_v29, %v2248_v28  ;;  %v3745_v29 = vpack.c.bf16 %v3713_v21, %v3712_v20 }
 0x1f5   : > { %1975 = vrot.lane.b32.xlu1 %v7034_v7, %s8831_s26  ;;  %1973 = vrot.lane.b32.xlu0 %v7033_v8, %s8831_s26  ;;  %v3711_v7 = vld [vmem:[#allocation2 + $0x4e1] sm:$0xff] }
 0x1f6   : > { %7767 = vmatmul.mubr.msk.bf16.gmra.mrb[24].mxu1 %vm1290_vm4, %v2299_v30  ;;  %7985 = vmatmul.mubr.msk.bf16.gmra.mrb[44].mxu0 %vm1290_vm4, %v3737_v31  ;;  %v3744_v11 = vpack.c.bf16 %v3711_v7, %v3710_v6  ;;  %v10004_v30 = vpack.c.bf16 %v4201_v23, %v4200_v22 }
 0x1f7   : > { %v1920_v33 = vpop.permute.xlu1 %1919  ;;  %7988 = vmatprep.mubr.msk.bf16.mxu0 %vm1290_vm4, %v3738_v32  ;;  %v1918_v34 = vpop.permute.xlu0 %1917 }
 0x1f8   : > { %2086 = vst.msk [vmem:[#allocation2 + $0x239] sm:$0xff] %vm1290_vm4, %v1920_v33  ;;  %2085 = vst.msk [vmem:[#allocation2 + $0x231] sm:$0xff] %vm1290_vm4, %v1918_v34  ;;  %v4202_v33 = vld [vmem:[#allocation2 + $0x60] sm:$0xff]  ;;  %v4203_v34 = vld [vmem:[#allocation2 + $0x68] sm:$0xff] }
 0x1f9   : > { %1979 = vrot.lane.b32.xlu1 %v7036_v14, %s8831_s26  ;;  %1977 = vrot.lane.b32.xlu0 %v7035_v15, %s8831_s26 }
 0x1fb   : > { %v1924_v41 = vpop.permute.xlu1 %1923  ;;  %v1922_v42 = vpop.permute.xlu0 %1921 }
 0x1fc   : > { %2088 = vst.msk [vmem:[#allocation2 + $0x249] sm:$0xff] %vm1290_vm4, %v1924_v41  ;;  %2087 = vst.msk [vmem:[#allocation2 + $0x241] sm:$0xff] %vm1290_vm4, %v1922_v42 }
 0x1fd   : > { %1598 = vrot.lane.b32.xlu1 %v7038_v38, %s8830_s20  ;;  %1596 = vrot.lane.b32.xlu0 %v7037_v39, %s8830_s20 }
 0x1fe   : > { %7989 = vmatmul.mubr.msk.bf16.gmra.mrb[48].mxu0 %vm1290_vm4, %v3739_v43 }
 0x1ff   : > { %v1543_v47 = vpop.permute.xlu1 %1542  ;;  %7992 = vmatprep.mubr.msk.bf16.mxu0 %vm1290_vm4, %v3740_v44  ;;  %v1541_v48 = vpop.permute.xlu0 %1540  ;;  %v2250_v49 = vld [vmem:[#allocation2 + $0x231] sm:$0xff]  ;;  %v2251_v50 = vld [vmem:[#allocation2 + $0x239] sm:$0xff] }
 0x200   : > { %1706 = vst.msk [vmem:[#allocation2 + $0x288] sm:$0xff] %vm905_vm3, %v1543_v47  ;;  %1705 = vst.msk [vmem:[#allocation2 + $0x280] sm:$0xff] %vm905_vm3, %v1541_v48  ;;  %v9960_v51 = vpack.c.bf16 %v2251_v50, %v2250_v49  ;;  %v4207_v47 = vld [vmem:[#allocation2 + $0xb8] sm:$0xff]  ;;  %v4208_v48 = vld [vmem:[#allocation2 + $0xf0] sm:$0xff] }
 0x201   : > { %1602 = vrot.lane.b32.xlu1 %v7040_v45, %s8830_s20  ;;  %1600 = vrot.lane.b32.xlu0 %v7039_v46, %s8830_s20  ;;  %v4209_v49 = vld [vmem:[#allocation2 + $0xf8] sm:$0xff] }
 0x202   : > { %7770 = vmatprep.mubr.msk.bf16.mxu1 %vm1290_vm4, %v9960_v51 }
 0x203   : > { %v1547_v56 = vpop.permute.xlu1 %1546  ;;  %v1545_v58 = vpop.permute.xlu0 %1544  ;;  %v2252_v59 = vld [vmem:[#allocation2 + $0x241] sm:$0xff]  ;;  %v2253_v60 = vld [vmem:[#allocation2 + $0x249] sm:$0xff] }
 0x204   : > { %1708 = vst.msk [vmem:[#allocation2 + $0x298] sm:$0xff] %vm905_vm3, %v1547_v56  ;;  %1707 = vst.msk [vmem:[#allocation2 + $0x290] sm:$0xff] %vm905_vm3, %v1545_v58  ;;  %v9968_v61 = vpack.c.bf16 %v2253_v60, %v2252_v59  ;;  %v10038_v56 = vpack.c.bf16 %v4209_v49, %v4208_v48  ;;  %v4210_v60 = vld [vmem:[#allocation2 + $0x100] sm:$0xff] }
 0x205   : > { %1983 = vrot.lane.b32.xlu1 %v7038_v38, %s8831_s26  ;;  %1981 = vrot.lane.b32.xlu0 %v7037_v39, %s8831_s26  ;;  %v10017_v39 = vpack.c.bf16 %v4203_v34, %v4202_v33 }
 0x206   : > { %7771 = vmatmul.mubr.msk.bf16.gmra.mrb[28].mxu1 %vm1290_vm4, %v9968_v61  ;;  %7993 = vmatmul.mubr.msk.bf16.gmra.mrb[52].mxu0 %vm1290_vm4, %v3741_v62  ;;  %v4211_v62 = vld [vmem:[#allocation2 + $0x108] sm:$0xff] }
 0x207   : > { %v1928_v63 = vpop.permute.xlu1 %1927  ;;  %7996 = vmatprep.mubr.msk.bf16.mxu0 %vm1290_vm4, %v3742_v54  ;;  %v1926_v1 = vpop.permute.xlu0 %1925  ;;  %v4212_v54 = vld [vmem:[#allocation2 + $0x140] sm:$0xff]  ;;  %v10050_v3 = vpack.c.bf16 %v4211_v62, %v4210_v60  ;;  %v4227_v62 = vld [vmem:[#allocation2 + $0x248] sm:$0xff] }
 0x208   : > { %2090 = vst.msk [vmem:[#allocation2 + $0x289] sm:$0xff] %vm1290_vm4, %v1928_v63  ;;  %2089 = vst.msk [vmem:[#allocation2 + $0x281] sm:$0xff] %vm1290_vm4, %v1926_v1  ;;  %v4213_v63 = vld [vmem:[#allocation2 + $0x148] sm:$0xff]  ;;  %v4226_v60 = vld [vmem:[#allocation2 + $0x240] sm:$0xff] }
 0x209   : > { %1987 = vrot.lane.b32.xlu1 %v7040_v45, %s8831_s26  ;;  %1985 = vrot.lane.b32.xlu0 %v7039_v46, %s8831_s26  ;;  %v4206_v46 = vld [vmem:[#allocation2 + $0xb0] sm:$0xff]  ;;  %v10052_v4 = vpack.c.bf16 %v4213_v63, %v4212_v54 }
 0x20a   : > { %v10036_v55 = vpack.c.bf16 %v4207_v47, %v4206_v46  ;;  %v4225_v46 = vld [vmem:[#allocation2 + $0x238] sm:$0xff] }
 0x20b   : > { %v1932_v8 = vpop.permute.xlu1 %1931  ;;  %v1930_v9 = vpop.permute.xlu0 %1929 }
 0x20c   : > { %2092 = vst.msk [vmem:[#allocation2 + $0x299] sm:$0xff] %vm1290_vm4, %v1932_v8  ;;  %2091 = vst.msk [vmem:[#allocation2 + $0x291] sm:$0xff] %vm1290_vm4, %v1930_v9 }
 0x20d   : > { %1606 = vrot.lane.b32.xlu1 %v7042_v2, %s8830_s20  ;;  %1604 = vrot.lane.b32.xlu0 %v7041_v5, %s8830_s20 }
 0x20e   : > { %7997 = vmatmul.mubr.msk.bf16.gmra.mrb[56].mxu0 %vm1290_vm4, %v3743_v10  ;;  %v4214_v10 = vld [vmem:[#allocation2 + $0x150] sm:$0xff] }
 0x20f   : > { %v1551_v14 = vpop.permute.xlu1 %1550  ;;  %8000 = vmatprep.mubr.msk.bf16.mxu0 %vm1290_vm4, %v3744_v11  ;;  %v1549_v15 = vpop.permute.xlu0 %1548  ;;  %v2254_v16 = vld [vmem:[#allocation2 + $0x281] sm:$0xff]  ;;  %v2255_v18 = vld [vmem:[#allocation2 + $0x289] sm:$0xff]  ;;  %v4215_v11 = vld [vmem:[#allocation2 + $0x158] sm:$0xff] }
 0x210   : > { %1710 = vst.msk [vmem:[#allocation2 + $0x2d8] sm:$0xff] %vm905_vm3, %v1551_v14  ;;  %1709 = vst.msk [vmem:[#allocation2 + $0x2d0] sm:$0xff] %vm905_vm3, %v1549_v15  ;;  %v9992_v19 = vpack.c.bf16 %v2255_v18, %v2254_v16  ;;  %v10068_v21 = vpack.c.bf16 %v4215_v11, %v4214_v10  ;;  %v4228_v54 = vld [vmem:[#allocation2 + $0x280] sm:$0xff]  ;;  %v4229_v63 = vld [vmem:[#allocation2 + $0x288] sm:$0xff] }
 0x211   : > { %1610 = vrot.lane.b32.xlu1 %v7044_v12, %s8830_s20  ;;  %1608 = vrot.lane.b32.xlu0 %v7043_v13, %s8830_s20  ;;  %s405_s20 = scalar_lea.vmem [#allocation7], %s404_s18 }
 0x212   : > { %7774 = vmatprep.mubr.msk.bf16.mxu1 %vm1290_vm4, %v9992_v19 }
 0x213   : > { %v1555_v24 = vpop.permute.xlu1 %1554  ;;  %v1553_v25 = vpop.permute.xlu0 %1552  ;;  %v2256_v26 = vld [vmem:[#allocation2 + $0x291] sm:$0xff]  ;;  %v2257_v27 = vld [vmem:[#allocation2 + $0x299] sm:$0xff] }
 0x214   : > { %1712 = vst.msk [vmem:[#allocation2 + $0x2e8] sm:$0xff] %vm905_vm3, %v1555_v24  ;;  %1711 = vst.msk [vmem:[#allocation2 + $0x2e0] sm:$0xff] %vm905_vm3, %v1553_v25  ;;  %v10000_v28 = vpack.c.bf16 %v2257_v27, %v2256_v26  ;;  %v4218_v25 = vld [vmem:[#allocation2 + $0x1a0] sm:$0xff]  ;;  %v4219_v26 = vld [vmem:[#allocation2 + $0x1a8] sm:$0xff] }
 0x215   : > { %1991 = vrot.lane.b32.xlu1 %v7042_v2, %s8831_s26  ;;  %1989 = vrot.lane.b32.xlu0 %v7041_v5, %s8831_s26  ;;  %v4220_v27 = vld [vmem:[#allocation2 + $0x1e0] sm:$0xff]  ;;  %v10082_v33 = vpack.c.bf16 %v4219_v26, %v4218_v25 }
 0x216   : > { %7775 = vmatmul.mubr.msk.bf16.gmra.mrb[32].mxu1 %vm1290_vm4, %v10000_v28  ;;  %8001 = vmatmul.mubr.msk.bf16.gmra.mrb[60].mxu0 %vm1290_vm4, %v3745_v29  ;;  %v4221_v29 = vld [vmem:[#allocation2 + $0x1e8] sm:$0xff] }
 0x217   : > { %v1936_v31 = vpop.permute.xlu1 %1935  ;;  %8006 = vmatprep.mubr.msk.bf16.mxu0 %vm412_vm0, %v10004_v30  ;;  %v1934_v32 = vpop.permute.xlu0 %1933  ;;  %v10084_v34 = vpack.c.bf16 %v4221_v29, %v4220_v27 }
 0x218   : > { %2094 = vst.msk [vmem:[#allocation2 + $0x2d9] sm:$0xff] %vm1290_vm4, %v1936_v31  ;;  %2093 = vst.msk [vmem:[#allocation2 + $0x2d1] sm:$0xff] %vm1290_vm4, %v1934_v32 }
 0x219   : > { %1995 = vrot.lane.b32.xlu1 %v7044_v12, %s8831_s26  ;;  %1993 = vrot.lane.b32.xlu0 %v7043_v13, %s8831_s26  ;;  %v4216_v12 = vld [vmem:[#allocation2 + $0x190] sm:$0xff]  ;;  %v4217_v13 = vld [vmem:[#allocation2 + $0x198] sm:$0xff]  ;;  %s6920_s26 = sshll.u32 %s405_s20, 4  ;;  %s10902_s26 = int_to_ptr.vmem [resolvable:$true] %s6920_s26 }
 0x21a   : > { %v10070_v22 = vpack.c.bf16 %v4217_v13, %v4216_v12  ;;  %v4230_v13 = vld [vmem:[#allocation2 + $0x290] sm:$0xff]  ;;  %s8765_s17 = scalar_lea.vmem %s10902_s26, 16 }
 0x21b   : > { %v1940_v37 = vpop.permute.xlu1 %1939  ;;  %v1938_v38 = vpop.permute.xlu0 %1937  ;;  %p8766_p11 = scmp.ne.s32.totalorder %s10902_s26, %s8765_s17 }
 0x21c   : > { %2096 = vst.msk [vmem:[#allocation2 + $0x2e9] sm:$0xff] %vm1290_vm4, %v1940_v37  ;;  %2095 = vst.msk [vmem:[#allocation2 + $0x2e1] sm:$0xff] %vm1290_vm4, %v1938_v38 }
 0x21d   : > { %p8767_p12 = pnand %p8766_p11, %p8940_p5 }
 0x21e   : > { %8007 = vmatmul.mubr.msk.bf16.vlgmr.msra.gmra.mrb[0].mxu0 %vm412_vm0, %v10017_v39 }
 0x21f   : > { %v1559_v41 = vpop.permute.xlu1 %1558  ;;  %8010 = vmatprep.mubr.msk.bf16.mxu0 %vm412_vm0, %v10019_v40  ;;  %8071 = vmatpush3.bf16.msra.mxu0 %v9799_v57  ;;  %v1557_v42 = vpop.permute.xlu0 %1556  ;;  %v2258_v43 = vld [vmem:[#allocation2 + $0x2d1] sm:$0xff]  ;;  %v2259_v44 = vld [vmem:[#allocation2 + $0x2d9] sm:$0xff]  ;;  %p8768_p13 = pneg %p8767_p12 }
 0x220   : > { %1714 = vst.msk [vmem:[#allocation2 + $0x328] sm:$0xff] %vm905_vm3, %v1559_v41  ;;  %1713 = vst.msk [vmem:[#allocation2 + $0x320] sm:$0xff] %vm905_vm3, %v1557_v42  ;;  %v10028_v45 = vpack.c.bf16 %v2259_v44, %v2258_v43  ;;  %v4222_v42 = vld [vmem:[#allocation2 + $0x1f0] sm:$0xff]  ;;  %v4223_v43 = vld [vmem:[#allocation2 + $0x1f8] sm:$0xff] }
 0x221   : > { %v4224_v44 = vld [vmem:[#allocation2 + $0x230] sm:$0xff] }
 0x222   : > { %7778 = vmatprep.mubr.msk.bf16.mxu1 %vm1290_vm4, %v10028_v45 }
 0x223   : > { %v1563_v50 = vpop.permute.xlu1 %1562  ;;  %v1561_v17 = vpop.permute.xlu0 %1560  ;;  %v2260_v52 = vld [vmem:[#allocation2 + $0x2e1] sm:$0xff]  ;;  %v2261_v57 = vld [vmem:[#allocation2 + $0x2e9] sm:$0xff] }
 0x224   : > { %1716 = vst.msk [vmem:[#allocation2 + $0x338] sm:$0xff] %vm905_vm3, %v1563_v50  ;;  %1715 = vst.msk [vmem:[#allocation2 + $0x330] sm:$0xff] %vm905_vm3, %v1561_v17  ;;  %v10034_v53 = vpack.c.bf16 %v2261_v57, %v2260_v52  ;;  %v10100_v52 = vpack.c.bf16 %v4223_v43, %v4222_v42  ;;  %v10102_v57 = vpack.c.bf16 %v4225_v46, %v4224_v44 }
 0x226   : > { %7779 = vmatmul.mubr.msk.bf16.gmra.mrb[36].mxu1 %vm1290_vm4, %v10034_v53  ;;  %8011 = vmatmul.mubr.msk.bf16.gmra.mrb[4].mxu0 %vm412_vm0, %v10036_v55 }
 0x227   : > { %v1944_v58 = vpop.permute.xlu1 %1943  ;;  %8014 = vmatprep.mubr.msk.bf16.mxu0 %vm412_vm0, %v10038_v56  ;;  %v1942_v59 = vpop.permute.xlu0 %1941 }
 0x228   : > { %2098 = vst.msk [vmem:[#allocation2 + $0x329] sm:$0xff] %vm1290_vm4, %v1944_v58  ;;  %2097 = vst.msk [vmem:[#allocation2 + $0x321] sm:$0xff] %vm1290_vm4, %v1942_v59 }
 0x22b   : > { %v1948_v1 = vpop.permute.xlu1 %1947  ;;  %v1946_v2 = vpop.permute.xlu0 %1945 }
 0x22c   : > { %2100 = vst.msk [vmem:[#allocation2 + $0x339] sm:$0xff] %vm1290_vm4, %v1948_v1  ;;  %2099 = vst.msk [vmem:[#allocation2 + $0x331] sm:$0xff] %vm1290_vm4, %v1946_v2 }
 0x22e   : > { %8015 = vmatmul.mubr.msk.bf16.gmra.mrb[8].mxu0 %vm412_vm0, %v10050_v3 }
 0x22f   : > { %v1567_v5 = vpop.permute.xlu1 %1566  ;;  %8018 = vmatprep.mubr.msk.bf16.mxu0 %vm412_vm0, %v10052_v4  ;;  %v1565_v6 = vpop.permute.xlu0 %1564  ;;  %v2262_v7 = vld [vmem:[#allocation2 + $0x321] sm:$0xff]  ;;  %v2263_v8 = vld [vmem:[#allocation2 + $0x329] sm:$0xff] }
 0x230   : > { %1718 = vst.msk [vmem:[#allocation2 + $0x378] sm:$0xff] %vm905_vm3, %v1567_v5  ;;  %1717 = vst.msk [vmem:[#allocation2 + $0x370] sm:$0xff] %vm905_vm3, %v1565_v6  ;;  %v10060_v9 = vpack.c.bf16 %v2263_v8, %v2262_v7  ;;  %v10114_v5 = vpack.c.bf16 %v4227_v62, %v4226_v60  ;;  %v10116_v6 = vpack.c.bf16 %v4229_v63, %v4228_v54 }
 0x232   : > { %7782 = vmatprep.mubr.msk.bf16.mxu1 %vm1290_vm4, %v10060_v9 }
 0x233   : > { %v1571_v14 = vpop.permute.xlu1 %1570  ;;  %v1569_v15 = vpop.permute.xlu0 %1568  ;;  %v2264_v16 = vld [vmem:[#allocation2 + $0x331] sm:$0xff]  ;;  %v2265_v18 = vld [vmem:[#allocation2 + $0x339] sm:$0xff] }
 0x234   : > { %1720 = vst.msk [vmem:[#allocation2 + $0x388] sm:$0xff] %vm905_vm3, %v1571_v14  ;;  %1719 = vst.msk [vmem:[#allocation2 + $0x380] sm:$0xff] %vm905_vm3, %v1569_v15  ;;  %v10066_v20 = vpack.c.bf16 %v2265_v18, %v2264_v16  ;;  %v4231_v14 = vld [vmem:[#allocation2 + $0x298] sm:$0xff]  ;;  %v4232_v15 = vld [vmem:[#allocation2 + $0x2d0] sm:$0xff] }
 0x235   : > { %v4233_v16 = vld [vmem:[#allocation2 + $0x2d8] sm:$0xff]  ;;  %v10132_v27 = vpack.c.bf16 %v4231_v14, %v4230_v13 }
 0x236   : > { %7783 = vmatmul.mubr.msk.bf16.gmra.mrb[40].mxu1 %vm1290_vm4, %v10066_v20  ;;  %8019 = vmatmul.mubr.msk.bf16.gmra.mrb[12].mxu0 %vm412_vm0, %v10068_v21  ;;  %v10134_v29 = vpack.c.bf16 %v4233_v16, %v4232_v15  ;;  %v4239_v60 = vld [vmem:[#allocation2 + $0x338] sm:$0xff] }
 0x237   : > { %v1952_v23 = vpop.permute.xlu1 %1951  ;;  %8022 = vmatprep.mubr.msk.bf16.mxu0 %vm412_vm0, %v10070_v22  ;;  %v1950_v24 = vpop.permute.xlu0 %1949 }
 0x238   : > { %2102 = vst.msk [vmem:[#allocation2 + $0x379] sm:$0xff] %vm1290_vm4, %v1952_v23  ;;  %2101 = vst.msk [vmem:[#allocation2 + $0x371] sm:$0xff] %vm1290_vm4, %v1950_v24 }
 0x23b   : > { %v1956_v31 = vpop.permute.xlu1 %1955  ;;  %v1954_v32 = vpop.permute.xlu0 %1953 }
 0x23c   : > { %2104 = vst.msk [vmem:[#allocation2 + $0x389] sm:$0xff] %vm1290_vm4, %v1956_v31  ;;  %2103 = vst.msk [vmem:[#allocation2 + $0x381] sm:$0xff] %vm1290_vm4, %v1954_v32 }
 0x23e   : > { %8023 = vmatmul.mubr.msk.bf16.gmra.mrb[16].mxu0 %vm412_vm0, %v10082_v33 }
 0x23f   : > { %v1575_v35 = vpop.permute.xlu1 %1574  ;;  %8026 = vmatprep.mubr.msk.bf16.mxu0 %vm412_vm0, %v10084_v34  ;;  %v1573_v36 = vpop.permute.xlu0 %1572  ;;  %v2266_v37 = vld [vmem:[#allocation2 + $0x371] sm:$0xff]  ;;  %v2267_v38 = vld [vmem:[#allocation2 + $0x379] sm:$0xff] }
 0x240   : > { %1722 = vst.msk [vmem:[#allocation2 + $0x3c8] sm:$0xff] %vm905_vm3, %v1575_v35  ;;  %1721 = vst.msk [vmem:[#allocation2 + $0x3c0] sm:$0xff] %vm905_vm3, %v1573_v36  ;;  %v10092_v41 = vpack.c.bf16 %v2267_v38, %v2266_v37  ;;  %v4234_v35 = vld [vmem:[#allocation2 + $0x2e0] sm:$0xff]  ;;  %v4235_v36 = vld [vmem:[#allocation2 + $0x2e8] sm:$0xff] }
 0x241   : > { %v4236_v37 = vld [vmem:[#allocation2 + $0x320] sm:$0xff]  ;;  %v4237_v38 = vld [vmem:[#allocation2 + $0x328] sm:$0xff]  ;;  %v10146_v44 = vpack.c.bf16 %v4235_v36, %v4234_v35  ;;  %v4240_v62 = vld [vmem:[#allocation2 + $0x370] sm:$0xff] }
 0x242   : > { %7786 = vmatprep.mubr.msk.bf16.mxu1 %vm1290_vm4, %v10092_v41  ;;  %v10148_v46 = vpack.c.bf16 %v4237_v38, %v4236_v37  ;;  %v4241_v54 = vld [vmem:[#allocation2 + $0x378] sm:$0xff] }
 0x243   : > { %v1579_v47 = vpop.permute.xlu1 %1578  ;;  %v1577_v48 = vpop.permute.xlu0 %1576  ;;  %v2268_v49 = vld [vmem:[#allocation2 + $0x381] sm:$0xff]  ;;  %v2269_v50 = vld [vmem:[#allocation2 + $0x389] sm:$0xff] }
 0x244   : > { %1724 = vst.msk [vmem:[#allocation2 + $0x3d8] sm:$0xff] %vm905_vm3, %v1579_v47  ;;  %1723 = vst.msk [vmem:[#allocation2 + $0x3d0] sm:$0xff] %vm905_vm3, %v1577_v48  ;;  %v10098_v17 = vpack.c.bf16 %v2269_v50, %v2268_v49  ;;  %v4242_v15 = vld [vmem:[#allocation2 + $0x380] sm:$0xff]  ;;  %v4243_v16 = vld [vmem:[#allocation2 + $0x388] sm:$0xff] }
 0x246   : > { %7787 = vmatmul.mubr.msk.bf16.gmra.mrb[44].mxu1 %vm1290_vm4, %v10098_v17  ;;  %8027 = vmatmul.mubr.msk.bf16.gmra.mrb[20].mxu0 %vm412_vm0, %v10100_v52 }
 0x247   : > { %v1960_v58 = vpop.permute.xlu1 %1959  ;;  %8030 = vmatprep.mubr.msk.bf16.mxu0 %vm412_vm0, %v10102_v57  ;;  %v1958_v59 = vpop.permute.xlu0 %1957 }
 0x248   : > { %2106 = vst.msk [vmem:[#allocation2 + $0x3c9] sm:$0xff] %vm1290_vm4, %v1960_v58  ;;  %2105 = vst.msk [vmem:[#allocation2 + $0x3c1] sm:$0xff] %vm1290_vm4, %v1958_v59  ;;  %v4238_v59 = vld [vmem:[#allocation2 + $0x330] sm:$0xff] }
 0x24b   : > { %v1964_v1 = vpop.permute.xlu1 %1963  ;;  %v1962_v2 = vpop.permute.xlu0 %1961 }
 0x24c   : > { %2108 = vst.msk [vmem:[#allocation2 + $0x3d9] sm:$0xff] %vm1290_vm4, %v1964_v1  ;;  %2107 = vst.msk [vmem:[#allocation2 + $0x3d1] sm:$0xff] %vm1290_vm4, %v1962_v2 }
 0x24e   : > { %8031 = vmatmul.mubr.msk.bf16.gmra.mrb[24].mxu0 %vm412_vm0, %v10114_v5 }
 0x24f   : > { %v1583_v7 = vpop.permute.xlu1 %1582  ;;  %8034 = vmatprep.mubr.msk.bf16.mxu0 %vm412_vm0, %v10116_v6  ;;  %v1581_v8 = vpop.permute.xlu0 %1580  ;;  %v2270_v10 = vld [vmem:[#allocation2 + $0x3c1] sm:$0xff]  ;;  %v2271_v11 = vld [vmem:[#allocation2 + $0x3c9] sm:$0xff] }
 0x250   : > { %1726 = vst.msk [vmem:[#allocation2 + $0x418] sm:$0xff] %vm905_vm3, %v1583_v7  ;;  %1725 = vst.msk [vmem:[#allocation2 + $0x410] sm:$0xff] %vm905_vm3, %v1581_v8  ;;  %v10124_v12 = vpack.c.bf16 %v2271_v11, %v2270_v10  ;;  %v10164_v10 = vpack.c.bf16 %v4239_v60, %v4238_v59  ;;  %v10166_v11 = vpack.c.bf16 %v4241_v54, %v4240_v62 }
 0x252   : > { %7790 = vmatprep.mubr.msk.bf16.mxu1 %vm1290_vm4, %v10124_v12 }
 0x253   : > { %v1587_v18 = vpop.permute.xlu1 %1586  ;;  %v1585_v23 = vpop.permute.xlu0 %1584  ;;  %v2272_v24 = vld [vmem:[#allocation2 + $0x3d1] sm:$0xff]  ;;  %v2273_v25 = vld [vmem:[#allocation2 + $0x3d9] sm:$0xff] }
 0x254   : > { %1728 = vst.msk [vmem:[#allocation2 + $0x428] sm:$0xff] %vm905_vm3, %v1587_v18  ;;  %1727 = vst.msk [vmem:[#allocation2 + $0x420] sm:$0xff] %vm905_vm3, %v1585_v23  ;;  %v10130_v26 = vpack.c.bf16 %v2273_v25, %v2272_v24  ;;  %v4244_v18 = vld [vmem:[#allocation2 + $0x3c0] sm:$0xff]  ;;  %v4245_v23 = vld [vmem:[#allocation2 + $0x3c8] sm:$0xff] }
 0x256   : > { %7791 = vmatmul.mubr.msk.bf16.gmra.mrb[48].mxu1 %vm1290_vm4, %v10130_v26  ;;  %8035 = vmatmul.mubr.msk.bf16.gmra.mrb[28].mxu0 %vm412_vm0, %v10132_v27 }
 0x257   : > { %v1968_v31 = vpop.permute.xlu1 %1967  ;;  %8038 = vmatprep.mubr.msk.bf16.mxu0 %vm412_vm0, %v10134_v29  ;;  %v1966_v32 = vpop.permute.xlu0 %1965 }
 0x258   : > { %2110 = vst.msk [vmem:[#allocation2 + $0x419] sm:$0xff] %vm1290_vm4, %v1968_v31  ;;  %2109 = vst.msk [vmem:[#allocation2 + $0x411] sm:$0xff] %vm1290_vm4, %v1966_v32  ;;  %v10178_v31 = vpack.c.bf16 %v4243_v16, %v4242_v15  ;;  %v10180_v32 = vpack.c.bf16 %v4245_v23, %v4244_v18 }
 0x25b   : > { %v1972_v42 = vpop.permute.xlu1 %1971  ;;  %v1970_v43 = vpop.permute.xlu0 %1969 }
 0x25c   : > { %2112 = vst.msk [vmem:[#allocation2 + $0x429] sm:$0xff] %vm1290_vm4, %v1972_v42  ;;  %2111 = vst.msk [vmem:[#allocation2 + $0x421] sm:$0xff] %vm1290_vm4, %v1970_v43  ;;  %v4246_v43 = vld [vmem:[#allocation2 + $0x3d0] sm:$0xff] }
 0x25e   : > { %8039 = vmatmul.mubr.msk.bf16.gmra.mrb[32].mxu0 %vm412_vm0, %v10146_v44 }
 0x25f   : > { %v1591_v47 = vpop.permute.xlu1 %1590  ;;  %8042 = vmatprep.mubr.msk.bf16.mxu0 %vm412_vm0, %v10148_v46  ;;  %v1589_v48 = vpop.permute.xlu0 %1588  ;;  %v2274_v49 = vld [vmem:[#allocation2 + $0x411] sm:$0xff]  ;;  %v2275_v50 = vld [vmem:[#allocation2 + $0x419] sm:$0xff] }
 0x260   : > { %1730 = vst.msk [vmem:[#allocation2 + $0x468] sm:$0xff] %vm905_vm3, %v1591_v47  ;;  %1729 = vst.msk [vmem:[#allocation2 + $0x460] sm:$0xff] %vm905_vm3, %v1589_v48  ;;  %v10156_v58 = vpack.c.bf16 %v2275_v50, %v2274_v49  ;;  %v4247_v47 = vld [vmem:[#allocation2 + $0x3d8] sm:$0xff]  ;;  %v4248_v48 = vld [vmem:[#allocation2 + $0x410] sm:$0xff] }
 0x261   : > { %v4249_v49 = vld [vmem:[#allocation2 + $0x418] sm:$0xff] }
 0x262   : > { %7794 = vmatprep.mubr.msk.bf16.mxu1 %vm1290_vm4, %v10156_v58 }
 0x263   : > { %v1595_v63 = vpop.permute.xlu1 %1594  ;;  %v1593_v1 = vpop.permute.xlu0 %1592  ;;  %v2276_v2 = vld [vmem:[#allocation2 + $0x421] sm:$0xff]  ;;  %v2277_v7 = vld [vmem:[#allocation2 + $0x429] sm:$0xff] }
 0x264   : > { %1732 = vst.msk [vmem:[#allocation2 + $0x478] sm:$0xff] %vm905_vm3, %v1595_v63  ;;  %1731 = vst.msk [vmem:[#allocation2 + $0x470] sm:$0xff] %vm905_vm3, %v1593_v1  ;;  %v10162_v8 = vpack.c.bf16 %v2277_v7, %v2276_v2  ;;  %v10196_v63 = vpack.c.bf16 %v4247_v47, %v4246_v43  ;;  %v10198_v1 = vpack.c.bf16 %v4249_v49, %v4248_v48  ;;  %v2125_v47 = vld [vmem:[#allocation2] sm:$0xff]  ;;  %v2126_v48 = vld [vmem:[#allocation2 + $0x8] sm:$0xff] }
 0x266   : > { %7795 = vmatmul.mubr.msk.bf16.gmra.mrb[52].mxu1 %vm1290_vm4, %v10162_v8  ;;  %8043 = vmatmul.mubr.msk.bf16.gmra.mrb[36].mxu0 %vm412_vm0, %v10164_v10 }
 0x267   : > { %v1976_v13 = vpop.permute.xlu1 %1975  ;;  %8046 = vmatprep.mubr.msk.bf16.mxu0 %vm412_vm0, %v10166_v11  ;;  %v1974_v14 = vpop.permute.xlu0 %1973 }
 0x268   : > { %2114 = vst.msk [vmem:[#allocation2 + $0x469] sm:$0xff] %vm1290_vm4, %v1976_v13  ;;  %2113 = vst.msk [vmem:[#allocation2 + $0x461] sm:$0xff] %vm1290_vm4, %v1974_v14  ;;  %v4250_v13 = vld [vmem:[#allocation2 + $0x420] sm:$0xff]  ;;  %v4251_v14 = vld [vmem:[#allocation2 + $0x428] sm:$0xff] }
 0x26b   : > { %v1980_v24 = vpop.permute.xlu1 %1979  ;;  %v1978_v25 = vpop.permute.xlu0 %1977 }
 0x26c   : > { %2116 = vst.msk [vmem:[#allocation2 + $0x479] sm:$0xff] %vm1290_vm4, %v1980_v24  ;;  %2115 = vst.msk [vmem:[#allocation2 + $0x471] sm:$0xff] %vm1290_vm4, %v1978_v25  ;;  %v10210_v24 = vpack.c.bf16 %v4251_v14, %v4250_v13  ;;  %v2189_v14 = vpack.c.bf16 %v2126_v48, %v2125_v47 }
 0x26e   : > { %8047 = vmatmul.mubr.msk.bf16.gmra.mrb[40].mxu0 %vm412_vm0, %v10178_v31 }
 0x26f   : > { %v1599_v35 = vpop.permute.xlu1 %1598  ;;  %8050 = vmatprep.mubr.msk.bf16.mxu0 %vm412_vm0, %v10180_v32  ;;  %v1597_v36 = vpop.permute.xlu0 %1596  ;;  %v2278_v37 = vld [vmem:[#allocation2 + $0x461] sm:$0xff]  ;;  %v2279_v38 = vld [vmem:[#allocation2 + $0x469] sm:$0xff] }
 0x270   : > { %1734 = vst.msk [vmem:[#allocation2 + $0x4b8] sm:$0xff] %vm905_vm3, %v1599_v35  ;;  %1733 = vst.msk [vmem:[#allocation2 + $0x4b0] sm:$0xff] %vm905_vm3, %v1597_v36  ;;  %v10188_v42 = vpack.c.bf16 %v2279_v38, %v2278_v37  ;;  %v4252_v15 = vld [vmem:[#allocation2 + $0x460] sm:$0xff]  ;;  %v4253_v16 = vld [vmem:[#allocation2 + $0x468] sm:$0xff] }
 0x271   : > { %v10212_v25 = vpack.c.bf16 %v4253_v16, %v4252_v15 }
 0x272   : > { %7798 = vmatprep.mubr.msk.bf16.mxu1 %vm1290_vm4, %v10188_v42 }
 0x273   : > { %v1603_v50 = vpop.permute.xlu1 %1602  ;;  %v1601_v59 = vpop.permute.xlu0 %1600  ;;  %v2280_v60 = vld [vmem:[#allocation2 + $0x471] sm:$0xff]  ;;  %v2281_v62 = vld [vmem:[#allocation2 + $0x479] sm:$0xff] }
 0x274   : > { %1736 = vst.msk [vmem:[#allocation2 + $0x4c8] sm:$0xff] %vm905_vm3, %v1603_v50  ;;  %1735 = vst.msk [vmem:[#allocation2 + $0x4c0] sm:$0xff] %vm905_vm3, %v1601_v59  ;;  %v10194_v54 = vpack.c.bf16 %v2281_v62, %v2280_v60  ;;  %v4254_v49 = vld [vmem:[#allocation2 + $0x470] sm:$0xff]  ;;  %v4255_v50 = vld [vmem:[#allocation2 + $0x478] sm:$0xff] }
 0x275   : > { %v10228_v16 = vpack.c.bf16 %v4255_v50, %v4254_v49 }
 0x276   : > { %7799 = vmatmul.mubr.msk.bf16.gmra.mrb[56].mxu1 %vm1290_vm4, %v10194_v54  ;;  %8051 = vmatmul.mubr.msk.bf16.gmra.mrb[44].mxu0 %vm412_vm0, %v10196_v63 }
 0x277   : > { %v1984_v2 = vpop.permute.xlu1 %1983  ;;  %8054 = vmatprep.mubr.msk.bf16.mxu0 %vm412_vm0, %v10198_v1  ;;  %v1982_v7 = vpop.permute.xlu0 %1981 }
 0x278   : > { %2118 = vst.msk [vmem:[#allocation2 + $0x4b9] sm:$0xff] %vm1290_vm4, %v1984_v2  ;;  %2117 = vst.msk [vmem:[#allocation2 + $0x4b1] sm:$0xff] %vm1290_vm4, %v1982_v7 }
 0x27b   : > { %v1988_v18 = vpop.permute.xlu1 %1987  ;;  %v1986_v23 = vpop.permute.xlu0 %1985 }
 0x27c   : > { %2120 = vst.msk [vmem:[#allocation2 + $0x4c9] sm:$0xff] %vm1290_vm4, %v1988_v18  ;;  %2119 = vst.msk [vmem:[#allocation2 + $0x4c1] sm:$0xff] %vm1290_vm4, %v1986_v23 }
 0x27e   : > { %8055 = vmatmul.mubr.msk.bf16.gmra.mrb[48].mxu0 %vm412_vm0, %v10210_v24 }
 0x27f   : > { %v1607_v35 = vpop.permute.xlu1 %1606  ;;  %8058 = vmatprep.mubr.msk.bf16.mxu0 %vm412_vm0, %v10212_v25  ;;  %v1605_v36 = vpop.permute.xlu0 %1604  ;;  %v2282_v37 = vld [vmem:[#allocation2 + $0x4b1] sm:$0xff]  ;;  %v2283_v38 = vld [vmem:[#allocation2 + $0x4b9] sm:$0xff] }
 0x280   : > { %1738 = vst.msk [vmem:[#allocation2 + $0x508] sm:$0xff] %vm905_vm3, %v1607_v35  ;;  %1737 = vst.msk [vmem:[#allocation2 + $0x500] sm:$0xff] %vm905_vm3, %v1605_v36  ;;  %v10220_v43 = vpack.c.bf16 %v2283_v38, %v2282_v37  ;;  %v4256_v59 = vld [vmem:[#allocation2 + $0x4b0] sm:$0xff]  ;;  %v4257_v60 = vld [vmem:[#allocation2 + $0x4b8] sm:$0xff] }
 0x281   : > { %v10230_v18 = vpack.c.bf16 %v4257_v60, %v4256_v59  ;;  %v2127_v36 = vld [vmem:[#allocation2 + $0x10] sm:$0xff]  ;;  %v2128_v37 = vld [vmem:[#allocation2 + $0x18] sm:$0xff] }
 0x282   : > { %7802 = vmatprep.mubr.msk.bf16.mxu1 %vm1290_vm4, %v10220_v43  ;;  %v2190_v48 = vpack.c.bf16 %v2128_v37, %v2127_v36  ;;  %v4753_v37 = vld [vmem:[#allocation2 + $0x69] sm:$0xff] }
 0x283   : > { %v1611_v62 = vpop.permute.xlu1 %1610  ;;  %v1609_v2 = vpop.permute.xlu0 %1608  ;;  %v2284_v7 = vld [vmem:[#allocation2 + $0x4c1] sm:$0xff]  ;;  %v2285_v13 = vld [vmem:[#allocation2 + $0x4c9] sm:$0xff] }
 0x284   : > { %1740 = vst.msk [vmem:[#allocation2 + $0x518] sm:$0xff] %vm905_vm3, %v1611_v62  ;;  %1739 = vst.msk [vmem:[#allocation2 + $0x510] sm:$0xff] %vm905_vm3, %v1609_v2  ;;  %v10226_v15 = vpack.c.bf16 %v2285_v13, %v2284_v7  ;;  %v4258_v38 = vld [vmem:[#allocation2 + $0x4c0] sm:$0xff]  ;;  %v4259_v47 = vld [vmem:[#allocation2 + $0x4c8] sm:$0xff] }
 0x285   : > { %v10243_v59 = vpack.c.bf16 %v4259_v47, %v4258_v38  ;;  %v4750_v7 = vld [vmem:[#allocation2 + $0x51] sm:$0xff]  ;;  %v4751_v13 = vld [vmem:[#allocation2 + $0x59] sm:$0xff]  ;;  %v4754_v38 = vld [vmem:[#allocation2 + $0xa1] sm:$0xff] }
 0x286   : > { %7803 = vmatmul.mubr.msk.bf16.gmra.mrb[60].mxu1 %vm1290_vm4, %v10226_v15  ;;  %8059 = vmatmul.mubr.msk.bf16.gmra.mrb[52].mxu0 %vm412_vm0, %v10228_v16  ;;  %v4814_v36 = vpack.c.bf16 %v4751_v13, %v4750_v7  ;;  %v4755_v47 = vld [vmem:[#allocation2 + $0xa9] sm:$0xff]  ;;  %v4762_v7 = vld [vmem:[#allocation2 + $0x141] sm:$0xff] }
 0x287   : > { %v1992_v23 = vpop.permute.xlu1 %1991  ;;  %8062 = vmatprep.mubr.msk.bf16.mxu0 %vm412_vm0, %v10230_v18  ;;  %v1990_v35 = vpop.permute.xlu0 %1989  ;;  %7808 = vmatprep.mubr.msk.bf16.mxu1 %vm412_vm0, %v2189_v14  ;;  %v4763_v13 = vld [vmem:[#allocation2 + $0x149] sm:$0xff] }
 0x288   : > { %2122 = vst.msk [vmem:[#allocation2 + $0x509] sm:$0xff] %vm1290_vm4, %v1992_v23  ;;  %2121 = vst.msk [vmem:[#allocation2 + $0x501] sm:$0xff] %vm1290_vm4, %v1990_v35 }
 0x28b   : > { %v1996_v49 = vpop.permute.xlu1 %1995  ;;  %v1994_v50 = vpop.permute.xlu0 %1993 }
 0x28c   : > { %2124 = vst.msk [vmem:[#allocation2 + $0x519] sm:$0xff] %vm1290_vm4, %v1996_v49  ;;  %2123 = vst.msk [vmem:[#allocation2 + $0x511] sm:$0xff] %vm1290_vm4, %v1994_v50  ;;  %v4816_v49 = vpack.c.bf16 %v4755_v47, %v4754_v38  ;;  %v4758_v50 = vld [vmem:[#allocation2 + $0xf1] sm:$0xff]  ;;  %v4770_v38 = vld [vmem:[#allocation2 + $0x1e1] sm:$0xff] }
 0x28d   : > { %v4771_v47 = vld [vmem:[#allocation2 + $0x1e9] sm:$0xff] }
 0x28e   : > { %7809 = vmatmul.mubr.msk.bf16.vlgmr.msra.gmra.mrb[0].mxu1 %vm412_vm0, %v2190_v48  ;;  %8063 = vmatmul.mubr.msk.bf16.gmra.mrb[56].mxu0 %vm412_vm0, %v10243_v59 }
 0x28f   : > { %7812 = vmatprep.mubr.msk.bf16.mxu1 %vm412_vm0, %v10004_v30  ;;  %v4260_v60 = vld [vmem:[#allocation2 + $0x500] sm:$0xff]  ;;  %v4261_v62 = vld [vmem:[#allocation2 + $0x508] sm:$0xff] }
 0x290   : > { %v4294_v2 = vpack.c.bf16 %v4261_v62, %v4260_v60  ;;  %v4752_v30 = vld [vmem:[#allocation2 + $0x61] sm:$0xff]  ;;  %v4759_v60 = vld [vmem:[#allocation2 + $0xf9] sm:$0xff] }
 0x291   : > { %v4815_v48 = vpack.c.bf16 %v4753_v37, %v4752_v30 }
 0x292   : > { %8066 = vmatprep.mubr.msk.bf16.mxu0 %vm412_vm0, %v4294_v2  ;;  %v4818_v2 = vpack.c.bf16 %v4759_v60, %v4758_v50 }
 0x293   : > { %v4262_v14 = vld [vmem:[#allocation2 + $0x510] sm:$0xff]  ;;  %v4263_v23 = vld [vmem:[#allocation2 + $0x518] sm:$0xff] }
 0x294   : > { %v4295_v35 = vpack.c.bf16 %v4263_v23, %v4262_v14  ;;  %v4820_v23 = vpack.c.bf16 %v4763_v13, %v4762_v7 }
 0x296   : > { %7813 = vmatmul.mubr.msk.bf16.gmra.mrb[4].mxu1 %vm412_vm0, %v10017_v39  ;;  %8067 = vmatmul.mubr.msk.bf16.gmra.mrb[60].mxu0 %vm412_vm0, %v4295_v35  ;;  %v4756_v39 = vld [vmem:[#allocation2 + $0xb1] sm:$0xff] }
 0x297   : > { %7816 = vmatprep.mubr.msk.bf16.mxu1 %vm412_vm0, %v10019_v40  ;;  %8072 = vmatprep.mubr.msk.bf16.mxu0 %vm1290_vm4, %v4814_v36  ;;  %v4757_v40 = vld [vmem:[#allocation2 + $0xb9] sm:$0xff]  ;;  %v4766_v35 = vld [vmem:[#allocation2 + $0x191] sm:$0xff] }
 0x298   : > { %v4817_v62 = vpack.c.bf16 %v4757_v40, %v4756_v39  ;;  %v4767_v36 = vld [vmem:[#allocation2 + $0x199] sm:$0xff] }
 0x299   : > { %v4822_v37 = vpack.c.bf16 %v4767_v36, %v4766_v35 }
 0x29e   : > { %7817 = vmatmul.mubr.msk.bf16.gmra.mrb[8].mxu1 %vm412_vm0, %v10036_v55  ;;  %8073 = vmatmul.mubr.msk.bf16.vlgmr.msra.gmra.mrb[0].mxu0 %vm1290_vm4, %v4815_v48  ;;  %v4760_v55 = vld [vmem:[#allocation2 + $0x101] sm:$0xff] }
 0x29f   : > { %7820 = vmatprep.mubr.msk.bf16.mxu1 %vm412_vm0, %v10038_v56  ;;  %8076 = vmatprep.mubr.msk.bf16.mxu0 %vm1290_vm4, %v4816_v49  ;;  %v4761_v56 = vld [vmem:[#allocation2 + $0x109] sm:$0xff]  ;;  %v4824_v49 = vpack.c.bf16 %v4771_v47, %v4770_v38 }
 0x2a0   : > { %v4819_v14 = vpack.c.bf16 %v4761_v56, %v4760_v55 }
 0x2a6   : > { %7821 = vmatmul.mubr.msk.bf16.gmra.mrb[12].mxu1 %vm412_vm0, %v10050_v3  ;;  %8077 = vmatmul.mubr.msk.bf16.gmra.mrb[4].mxu0 %vm1290_vm4, %v4817_v62  ;;  %v4764_v3 = vld [vmem:[#allocation2 + $0x151] sm:$0xff] }
 0x2a7   : > { %7824 = vmatprep.mubr.msk.bf16.mxu1 %vm412_vm0, %v10052_v4  ;;  %8080 = vmatprep.mubr.msk.bf16.mxu0 %vm1290_vm4, %v4818_v2  ;;  %v4765_v4 = vld [vmem:[#allocation2 + $0x159] sm:$0xff] }
 0x2a8   : > { %v4821_v30 = vpack.c.bf16 %v4765_v4, %v4764_v3 }
 0x2ae   : > { %7825 = vmatmul.mubr.msk.bf16.gmra.mrb[16].mxu1 %vm412_vm0, %v10068_v21  ;;  %8081 = vmatmul.mubr.msk.bf16.gmra.mrb[8].mxu0 %vm1290_vm4, %v4819_v14  ;;  %v4768_v21 = vld [vmem:[#allocation2 + $0x1a1] sm:$0xff] }
 0x2af   : > { %7828 = vmatprep.mubr.msk.bf16.mxu1 %vm412_vm0, %v10070_v22  ;;  %8084 = vmatprep.mubr.msk.bf16.mxu0 %vm1290_vm4, %v4820_v23  ;;  %v4769_v22 = vld [vmem:[#allocation2 + $0x1a9] sm:$0xff] }
 0x2b0   : > { %v4823_v48 = vpack.c.bf16 %v4769_v22, %v4768_v21 }
 0x2b6   : > { %7829 = vmatmul.mubr.msk.bf16.gmra.mrb[20].mxu1 %vm412_vm0, %v10082_v33  ;;  %8085 = vmatmul.mubr.msk.bf16.gmra.mrb[12].mxu0 %vm1290_vm4, %v4821_v30  ;;  %v4772_v33 = vld [vmem:[#allocation2 + $0x1f1] sm:$0xff] }
 0x2b7   : > { %7832 = vmatprep.mubr.msk.bf16.mxu1 %vm412_vm0, %v10084_v34  ;;  %8088 = vmatprep.mubr.msk.bf16.mxu0 %vm1290_vm4, %v4822_v37  ;;  %v4773_v34 = vld [vmem:[#allocation2 + $0x1f9] sm:$0xff] }
 0x2b8   : > { %v4825_v39 = vpack.c.bf16 %v4773_v34, %v4772_v33 }
 0x2be   : > { %7833 = vmatmul.mubr.msk.bf16.gmra.mrb[24].mxu1 %vm412_vm0, %v10100_v52  ;;  %8089 = vmatmul.mubr.msk.bf16.gmra.mrb[16].mxu0 %vm1290_vm4, %v4823_v48  ;;  %v8701_v52 = vld [vmem:[%s10947_s5] sm:$0xff]  }
 0x2bf   : > { %7836 = vmatprep.mubr.msk.bf16.mxu1 %vm412_vm0, %v10102_v57  ;;  %8092 = vmatprep.mubr.msk.bf16.mxu0 %vm1290_vm4, %v4824_v49 }
 0x2c0   : > { %8136 = vmatprep.subr.bf16.mxu1 %v8701_v52 }
 0x2c1   : > { %8137 = vmatpush3.bf16.msra.mxu1 %v8701_v52 }
 0x2c6   : > { %7837 = vmatmul.mubr.msk.bf16.gmra.mrb[28].mxu1 %vm412_vm0, %v10114_v5  ;;  %8093 = vmatmul.mubr.msk.bf16.gmra.mrb[20].mxu0 %vm1290_vm4, %v4825_v39 }
 0x2c7   : > { %7840 = vmatprep.mubr.msk.bf16.mxu1 %vm412_vm0, %v10116_v6  ;;  %8096 = vmatprep.mubr.msk.bf16.mxu0 %vm1290_vm4, %v9960_v51  ;;  %v4810_v51 = vld [vmem:[#allocation2 + $0x501] sm:$0xff] }
 0x2ce   : > { %7841 = vmatmul.mubr.msk.bf16.gmra.mrb[32].mxu1 %vm412_vm0, %v10132_v27  ;;  %8097 = vmatmul.mubr.msk.bf16.gmra.mrb[24].mxu0 %vm1290_vm4, %v9968_v61  ;;  %v4811_v61 = vld [vmem:[#allocation2 + $0x509] sm:$0xff] }
 0x2cf   : > { %7844 = vmatprep.mubr.msk.bf16.mxu1 %vm412_vm0, %v10134_v29  ;;  %8100 = vmatprep.mubr.msk.bf16.mxu0 %vm1290_vm4, %v9992_v19  ;;  %v4844_v19 = vpack.c.bf16 %v4811_v61, %v4810_v51 }
 0x2d6   : > { %7845 = vmatmul.mubr.msk.bf16.gmra.mrb[36].mxu1 %vm412_vm0, %v10146_v44  ;;  %8101 = vmatmul.mubr.msk.bf16.gmra.mrb[28].mxu0 %vm1290_vm4, %v10000_v28  ;;  %v4812_v28 = vld [vmem:[#allocation2 + $0x511] sm:$0xff] }
 0x2d7   : > { %7848 = vmatprep.mubr.msk.bf16.mxu1 %vm412_vm0, %v10148_v46  ;;  %8104 = vmatprep.mubr.msk.bf16.mxu0 %vm1290_vm4, %v10028_v45  ;;  %v4813_v45 = vld [vmem:[#allocation2 + $0x519] sm:$0xff] }
 0x2de   : > { %7849 = vmatmul.mubr.msk.bf16.gmra.mrb[40].mxu1 %vm412_vm0, %v10164_v10  ;;  %8105 = vmatmul.mubr.msk.bf16.gmra.mrb[32].mxu0 %vm1290_vm4, %v10034_v53  ;;  %v4845_v53 = vpack.c.bf16 %v4813_v45, %v4812_v28 }
 0x2df   : > { %7852 = vmatprep.mubr.msk.bf16.mxu1 %vm412_vm0, %v10166_v11  ;;  %8108 = vmatprep.mubr.msk.bf16.mxu0 %vm1290_vm4, %v10060_v9 }
 0x2e6   : > { %7853 = vmatmul.mubr.msk.bf16.gmra.mrb[44].mxu1 %vm412_vm0, %v10178_v31  ;;  %8109 = vmatmul.mubr.msk.bf16.gmra.mrb[36].mxu0 %vm1290_vm4, %v10066_v20 }
 0x2e7   : > { %7856 = vmatprep.mubr.msk.bf16.mxu1 %vm412_vm0, %v10180_v32  ;;  %8112 = vmatprep.mubr.msk.bf16.mxu0 %vm1290_vm4, %v10092_v41 }
 0x2ee   : > { %7857 = vmatmul.mubr.msk.bf16.gmra.mrb[48].mxu1 %vm412_vm0, %v10196_v63  ;;  %8113 = vmatmul.mubr.msk.bf16.gmra.mrb[40].mxu0 %vm1290_vm4, %v10098_v17 }
 0x2ef   : > { %7860 = vmatprep.mubr.msk.bf16.mxu1 %vm412_vm0, %v10198_v1  ;;  %8116 = vmatprep.mubr.msk.bf16.mxu0 %vm1290_vm4, %v10124_v12 }
 0x2f6   : > { %7861 = vmatmul.mubr.msk.bf16.gmra.mrb[52].mxu1 %vm412_vm0, %v10210_v24  ;;  %8117 = vmatmul.mubr.msk.bf16.gmra.mrb[44].mxu0 %vm1290_vm4, %v10130_v26 }
 0x2f7   : > { %7864 = vmatprep.mubr.msk.bf16.mxu1 %vm412_vm0, %v10212_v25  ;;  %8120 = vmatprep.mubr.msk.bf16.mxu0 %vm1290_vm4, %v10156_v58 }
 0x2fe   : > { %7865 = vmatmul.mubr.msk.bf16.gmra.mrb[56].mxu1 %vm412_vm0, %v10228_v16  ;;  %8121 = vmatmul.mubr.msk.bf16.gmra.mrb[48].mxu0 %vm1290_vm4, %v10162_v8 }
 0x2ff   : > { %7868 = vmatprep.mubr.msk.bf16.mxu1 %vm412_vm0, %v10230_v18  ;;  %8124 = vmatprep.mubr.msk.bf16.mxu0 %vm1290_vm4, %v10188_v42 }
 0x306   : > { %7869 = vmatmul.mubr.msk.bf16.gmra.mrb[60].mxu1 %vm412_vm0, %v10243_v59  ;;  %8125 = vmatmul.mubr.msk.bf16.gmra.mrb[52].mxu0 %vm1290_vm4, %v10194_v54  ;;  %v10374_v54 = vld [vmem:[%s10945_s3] ss:$0 sm:$0xff] }
 0x307   : > { %8128 = vmatprep.mubr.msk.bf16.mxu0 %vm1290_vm4, %v10220_v43 }
 0x30e   : > { %8129 = vmatmul.mubr.msk.bf16.gmra.mrb[56].mxu0 %vm1290_vm4, %v10226_v15 }
 0x30f   : > { %8132 = vmatprep.mubr.msk.bf16.mxu0 %vm1290_vm4, %v4844_v19 }
 0x316   : > { %8133 = vmatmul.mubr.msk.bf16.gmra.mrb[60].mxu0 %vm1290_vm4, %v4845_v53 }
 0x361   : > { %v7810_v9 = vpop.f32.mrb[0].mxu1 }
 0x362   : > { %v2845_v20 = vpop.f32.mrb[1].mxu1 }
 0x363   : > { %v7811_v41 = vpop.f32.mrb[2].mxu1 }
 0x364   : > { %v2848_v17 = vpop.f32.mrb[3].mxu1 }
 0x369   : > { %v7814_v57 = vpop.f32.mrb[4].mxu1 }
 0x36a   : > { %v2861_v5 = vpop.f32.mrb[5].mxu1 }
 0x36b   : > { %v7815_v6 = vpop.f32.mrb[6].mxu1 }
 0x36c   : > { %v2864_v12 = vpop.f32.mrb[7].mxu1 }
 0x371   : > { %v10363_v26 = vpop.f32.mrb[8].mxu1  ;;  %v8074_v27 = vpop.f32.mrb[0].mxu0 }
 0x372   : > { %v8312_v29 = vadd.f32 %v8074_v27, %v7810_v9  ;;  %v10365_v44 = vpop.f32.mrb[9].mxu1  ;;  %v4981_v46 = vpop.f32.mrb[1].mxu0 }
 0x373   : > { %v8313_v58 = vadd.f32 %v4981_v46, %v2845_v20  ;;  %v10367_v8 = vpop.f32.mrb[10].mxu1  ;;  %v8075_v10 = vpop.f32.mrb[2].mxu0 }
 0x374   : > { %v8314_v11 = vadd.f32 %v8075_v10, %v7811_v41  ;;  %v10369_v31 = vpop.f32.mrb[11].mxu1  ;;  %v4984_v32 = vpop.f32.mrb[3].mxu0  ;;  %v5309_v24 = vadd.f32 %v8312_v29, %v10374_v54 }
 0x375   : > { %v8315_v42 = vadd.f32 %v4984_v32, %v2848_v17  ;;  %v5307_v25 = vadd.f32 %v8313_v58, %v10374_v54 }
 0x376   : > { %v5310_v50 = vadd.f32 %v8314_v11, %v10374_v54  ;;  %v5373_v14 = vmax.f32 %v5309_v24, 0.0 }
 0x377   : > { %v5308_v56 = vadd.f32 %v8315_v42, %v10374_v54  ;;  %v5371_v23 = vmax.f32 %v5307_v25, 0.0 }
 0x378   : > { %v5374_v30 = vmax.f32 %v5310_v50, 0.0 }
 0x379   : > { %v10376_v63 = vpop.f32.mrb[12].mxu1  ;;  %v8078_v1 = vpop.f32.mrb[4].mxu0  ;;  %v5372_v22 = vmax.f32 %v5308_v56, 0.0 }
 0x37a   : > { %v8316_v43 = vadd.f32 %v8078_v1, %v7814_v57  ;;  %v10380_v15 = vpop.f32.mrb[13].mxu1  ;;  %v4997_v16 = vpop.f32.mrb[5].mxu0 }
 0x37b   : > { %v8317_v18 = vadd.f32 %v4997_v16, %v2861_v5  ;;  %v10382_v59 = vpop.f32.mrb[14].mxu1  ;;  %v8079_v40 = vpop.f32.mrb[6].mxu0 }
 0x37c   : > { %v5313_v60 = vadd.f32 %v8316_v43, %v10374_v54  ;;  %v8318_v62 = vadd.f32 %v8079_v40, %v7815_v6  ;;  %v10386_v2 = vpop.f32.mrb[15].mxu1  ;;  %v5000_v55 = vpop.f32.mrb[7].mxu0 }
 0x37d   : > { %v5311_v7 = vadd.f32 %v8317_v18, %v10374_v54  ;;  %v8319_v13 = vadd.f32 %v5000_v55, %v2864_v12 }
 0x37e   : > { %v5377_v3 = vmax.f32 %v5313_v60, 0.0  ;;  %v5314_v4 = vadd.f32 %v8318_v62, %v10374_v54 }
 0x37f   : > { %v5375_v35 = vmax.f32 %v5311_v7, 0.0  ;;  %v5312_v36 = vadd.f32 %v8319_v13, %v10374_v54 }
 0x380   : > { %v5459_v37 = vmax.f32 %v5373_v14, %v5377_v3  ;;  %v5378_v21 = vmax.f32 %v5314_v4, 0.0 }
 0x381   : > { %v5457_v38 = vmax.f32 %v5371_v23, %v5375_v35  ;;  %v5376_v47 = vmax.f32 %v5312_v36, 0.0  ;;  %v7826_v48 = vpop.f32.mrb[16].mxu1  ;;  %v8082_v49 = vpop.f32.mrb[8].mxu0 }
 0x382   : > { %5476 = vst.msk [vmem:[#allocation5 + $0x10] sm:$0xff] %vm5473_vm7, %v5459_v37  ;;  %v5460_v33 = vmax.f32 %v5374_v30, %v5378_v21  ;;  %v8320_v34 = vadd.f32 %v8082_v49, %v10363_v26  ;;  %v2909_v39 = vpop.f32.mrb[17].mxu1  ;;  %v5013_v51 = vpop.f32.mrb[9].mxu0  ;;  %v8702_v49 = vld [vmem:[%s10947_s5 + $0x8] sm:$0xff]  }
 0x383   : > { %5474 = vst.msk [vmem:[#allocation5] sm:$0xff] %vm5473_vm7, %v5457_v38  ;;  %v5458_v61 = vmax.f32 %v5372_v22, %v5376_v47  ;;  %v8321_v19 = vadd.f32 %v5013_v51, %v10365_v44  ;;  %v7827_v28 = vpop.f32.mrb[18].mxu1  ;;  %v8083_v45 = vpop.f32.mrb[10].mxu0  ;;  %8138 = vmatprep.subr.bf16.mxu1 %v8702_v49 }
 0x384   : > { %5477 = vst.msk [vmem:[#allocation5 + $0x18] sm:$0xff] %vm5473_vm7, %v5460_v33  ;;  %v8322_v53 = vadd.f32 %v8083_v45, %v10367_v8  ;;  %v2912_v9 = vpop.f32.mrb[19].mxu1  ;;  %v5016_v20 = vpop.f32.mrb[11].mxu0  ;;  %v5317_v17 = vadd.f32 %v8320_v34, %v10374_v54  ;;  %8139 = vmatpush3.bf16.msra.mxu1 %v8702_v49 }
 0x385   : > { %5475 = vst.msk [vmem:[#allocation5 + $0x8] sm:$0xff] %vm5473_vm7, %v5458_v61  ;;  %v8323_v41 = vadd.f32 %v5016_v20, %v10369_v31  ;;  %v5315_v26 = vadd.f32 %v8321_v19, %v10374_v54 }
 0x386   : > { %v5318_v58 = vadd.f32 %v8322_v53, %v10374_v54  ;;  %v5381_v31 = vmax.f32 %v5317_v17, 0.0 }
 0x387   : > { %v5316_v32 = vadd.f32 %v8323_v41, %v10374_v54  ;;  %v5379_v16 = vmax.f32 %v5315_v26, 0.0 }
 0x389   : > { %v7830_v52 = vpop.f32.mrb[20].mxu1  ;;  %v8086_v57 = vpop.f32.mrb[12].mxu0  ;;  %v5380_v14 = vmax.f32 %v5316_v32, 0.0 }
 0x38a   : > { %v8324_v5 = vadd.f32 %v8086_v57, %v10376_v63  ;;  %v2925_v6 = vpop.f32.mrb[21].mxu1  ;;  %v5029_v12 = vpop.f32.mrb[13].mxu0 }
 0x38b   : > { %v8325_v27 = vadd.f32 %v5029_v12, %v10380_v15  ;;  %v7831_v29 = vpop.f32.mrb[22].mxu1  ;;  %v8087_v44 = vpop.f32.mrb[14].mxu0 }
 0x38c   : > { %v10440_v46 = vld [vmem:[#allocation5 + $0x2] ss:$4 sm:$0xff]  ;;  %v5321_v8 = vadd.f32 %v8324_v5, %v10374_v54  ;;  %v8326_v10 = vadd.f32 %v8087_v44, %v10382_v59  ;;  %v10445_v11 = vld [vmem:[#allocation5 + $0x3] ss:$4 sm:$0xff]  ;;  %v2928_v63 = vpop.f32.mrb[23].mxu1  ;;  %v5032_v1 = vpop.f32.mrb[15].mxu0 }
 0x38d   : > { %v5319_v42 = vadd.f32 %v8325_v27, %v10374_v54  ;;  %v8327_v43 = vadd.f32 %v5032_v1, %v10386_v2  ;;  %v5547_v15 = vmax.f32 %v10440_v46, %v10445_v11  ;;  %v5382_v59 = vmax.f32 %v5318_v58, 0.0  ;;  %v10454_v62 = vld [vmem:[#allocation5] ss:$4 sm:$0xff]  ;;  %v10456_v55 = vld [vmem:[#allocation5 + $0x1] ss:$4 sm:$0xff] }
 0x38e   : > { %v5385_v24 = vmax.f32 %v5321_v8, 0.0  ;;  %v5322_v25 = vadd.f32 %v8326_v10, %v10374_v54  ;;  %v5636_v46 = vld [vmem:[#allocation3] sm:$0xff] }
 0x38f   : > { %v5383_v18 = vmax.f32 %v5319_v42, 0.0  ;;  %v5320_v60 = vadd.f32 %v8327_v43, %v10374_v54 }
 0x390   : > { %v5557_v40 = vmax.f32 %v5381_v31, %v5385_v24  ;;  %v5386_v50 = vmax.f32 %v5322_v25, 0.0 }
 0x391   : > { %v5555_v56 = vmax.f32 %v5379_v16, %v5383_v18  ;;  %v7834_v7 = vpop.f32.mrb[24].mxu1  ;;  %v8090_v13 = vpop.f32.mrb[16].mxu0  ;;  %v5384_v23 = vmax.f32 %v5320_v60, 0.0 }
 0x392   : > { %5573 = vst.msk [vmem:[#allocation5 + $0x10] sm:$0xff] %vm5473_vm7, %v5557_v40  ;;  %v5558_v2 = vmax.f32 %v5382_v59, %v5386_v50  ;;  %v8328_v3 = vadd.f32 %v8090_v13, %v7826_v48  ;;  %v2941_v4 = vpop.f32.mrb[25].mxu1  ;;  %v5045_v35 = vpop.f32.mrb[17].mxu0 }
 0x393   : > { %5571 = vst.msk [vmem:[#allocation5] sm:$0xff] %vm5473_vm7, %v5555_v56  ;;  %v8329_v36 = vadd.f32 %v5045_v35, %v2909_v39  ;;  %v7835_v30 = vpop.f32.mrb[26].mxu1  ;;  %v8091_v37 = vpop.f32.mrb[18].mxu0  ;;  %v5556_v21 = vmax.f32 %v5380_v14, %v5384_v23 }
 0x394   : > { %5574 = vst.msk [vmem:[#allocation5 + $0x18] sm:$0xff] %vm5473_vm7, %v5558_v2  ;;  %v8330_v22 = vadd.f32 %v8091_v37, %v7827_v28  ;;  %v2944_v38 = vpop.f32.mrb[27].mxu1  ;;  %v5048_v47 = vpop.f32.mrb[19].mxu0  ;;  %v5325_v39 = vadd.f32 %v8328_v3, %v10374_v54 }
 0x395   : > { %v8331_v33 = vadd.f32 %v5048_v47, %v2912_v9  ;;  %5572 = vst.msk [vmem:[#allocation5 + $0x8] sm:$0xff] %vm5473_vm7, %v5556_v21  ;;  %v5323_v28 = vadd.f32 %v8329_v36, %v10374_v54 }
 0x396   : > { %v5326_v41 = vadd.f32 %v8330_v22, %v10374_v54  ;;  %v5389_v58 = vmax.f32 %v5325_v39, 0.0 }
 0x397   : > { %v5324_v12 = vadd.f32 %v8331_v33, %v10374_v54  ;;  %v5387_v31 = vmax.f32 %v5323_v28, 0.0 }
 0x398   : > { %v5390_v1 = vmax.f32 %v5326_v41, 0.0 }
 0x399   : > { %v7838_v48 = vpop.f32.mrb[28].mxu1  ;;  %v8094_v34 = vpop.f32.mrb[20].mxu0  ;;  %v5388_v25 = vmax.f32 %v5324_v12, 0.0 }
 0x39a   : > { %v8332_v51 = vadd.f32 %v8094_v34, %v7830_v52  ;;  %v2957_v61 = vpop.f32.mrb[29].mxu1  ;;  %v5061_v19 = vpop.f32.mrb[21].mxu0 }
 0x39b   : > { %v8333_v45 = vadd.f32 %v5061_v19, %v2925_v6  ;;  %v7839_v53 = vpop.f32.mrb[30].mxu1  ;;  %v8095_v20 = vpop.f32.mrb[22].mxu0 }
 0x39c   : > { %v5329_v9 = vadd.f32 %v8332_v51, %v10374_v54  ;;  %v8334_v17 = vadd.f32 %v8095_v20, %v7831_v29  ;;  %v2960_v57 = vpop.f32.mrb[31].mxu1  ;;  %v5064_v5 = vpop.f32.mrb[23].mxu0  ;;  %v5587_v52 = vld [vmem:[#allocation5] ss:$4 sm:$0xff]  ;;  %v5591_v44 = vld [vmem:[#allocation5 + $0x1] ss:$4 sm:$0xff] }
 0x39d   : > { %v5327_v26 = vadd.f32 %v8333_v45, %v10374_v54  ;;  %v8335_v27 = vadd.f32 %v5064_v5, %v2928_v63  ;;  %v5595_v10 = vmax.f32 %v5587_v52, %v5591_v44 }
 0x39e   : > { %v5393_v8 = vmax.f32 %v5329_v9, 0.0  ;;  %v5330_v6 = vadd.f32 %v8334_v17, %v10374_v54 }
 0x39f   : > { %v5391_v32 = vmax.f32 %v5327_v26, 0.0  ;;  %v5328_v42 = vadd.f32 %v8335_v27, %v10374_v54  ;;  %5603 = vrot.lane.b32.xlu0 %v5595_v10, %s8833_s16 }
 0x3a0   : > { %v5463_v29 = vmax.f32 %v5389_v58, %v5393_v8  ;;  %v5394_v24 = vmax.f32 %v5330_v6, 0.0 }
 0x3a1   : > { %v5461_v43 = vmax.f32 %v5387_v31, %v5391_v32  ;;  %v5392_v63 = vmax.f32 %v5328_v42, 0.0  ;;  %v7842_v16 = vpop.f32.mrb[32].mxu1  ;;  %v8098_v18 = vpop.f32.mrb[24].mxu0 }
 0x3a2   : > { %5480 = vst.msk [vmem:[#allocation5 + $0x30] sm:$0xff] %vm5473_vm7, %v5463_v29  ;;  %v5464_v59 = vmax.f32 %v5390_v1, %v5394_v24  ;;  %v8336_v40 = vadd.f32 %v8098_v18, %v7834_v7  ;;  %v2973_v50 = vpop.f32.mrb[33].mxu1  ;;  %v5077_v60 = vpop.f32.mrb[25].mxu0 }
 0x3a3   : > { %5478 = vst.msk [vmem:[#allocation5 + $0x20] sm:$0xff] %vm5473_vm7, %v5461_v43  ;;  %v5462_v56 = vmax.f32 %v5388_v25, %v5392_v63  ;;  %v8337_v13 = vadd.f32 %v5077_v60, %v2941_v4  ;;  %v7843_v14 = vpop.f32.mrb[34].mxu1  ;;  %v8099_v2 = vpop.f32.mrb[26].mxu0 }
 0x3a4   : > { %5481 = vst.msk [vmem:[#allocation5 + $0x38] sm:$0xff] %vm5473_vm7, %v5464_v59  ;;  %v8338_v23 = vadd.f32 %v8099_v2, %v7835_v30  ;;  %v2976_v3 = vpop.f32.mrb[35].mxu1  ;;  %v5080_v35 = vpop.f32.mrb[27].mxu0  ;;  %v5333_v37 = vadd.f32 %v8336_v40, %v10374_v54 }
 0x3a5   : > { %5479 = vst.msk [vmem:[#allocation5 + $0x28] sm:$0xff] %vm5473_vm7, %v5462_v56  ;;  %v8339_v36 = vadd.f32 %v5080_v35, %v2944_v38  ;;  %v5331_v33 = vadd.f32 %v8337_v13, %v10374_v54 }
 0x3a6   : > { %v5334_v30 = vadd.f32 %v8338_v23, %v10374_v54  ;;  %v5397_v45 = vmax.f32 %v5333_v37, 0.0 }
 0x3a7   : > { %v5332_v20 = vadd.f32 %v8339_v36, %v10374_v54  ;;  %v5395_v26 = vmax.f32 %v5331_v33, 0.0 }
 0x3a8   : > { %v5398_v52 = vmax.f32 %v5334_v30, 0.0 }
 0x3a9   : > { %v7846_v21 = vpop.f32.mrb[36].mxu1  ;;  %v8102_v7 = vpop.f32.mrb[28].mxu0  ;;  %v5396_v42 = vmax.f32 %v5332_v20, 0.0 }
 0x3aa   : > { %v8340_v22 = vadd.f32 %v8102_v7, %v7838_v48  ;;  %v2989_v47 = vpop.f32.mrb[37].mxu1  ;;  %v5093_v49 = vpop.f32.mrb[29].mxu0 }
 0x3ab   : > { %v8341_v4 = vadd.f32 %v5093_v49, %v2957_v61  ;;  %v7847_v34 = vpop.f32.mrb[38].mxu1  ;;  %v8103_v39 = vpop.f32.mrb[30].mxu0 }
 0x3ac   : > { %v10480_v51 = vld [vmem:[#allocation5 + $0x22] ss:$4 sm:$0xff]  ;;  %v5337_v19 = vadd.f32 %v8340_v22, %v10374_v54  ;;  %v8342_v28 = vadd.f32 %v8103_v39, %v7839_v53  ;;  %v10484_v38 = vld [vmem:[#allocation5 + $0x23] ss:$4 sm:$0xff]  ;;  %v2992_v41 = vpop.f32.mrb[39].mxu1  ;;  %v5096_v9 = vpop.f32.mrb[31].mxu0 }
 0x3ad   : > { %v5335_v48 = vadd.f32 %v8341_v4, %v10374_v54  ;;  %v8343_v5 = vadd.f32 %v5096_v9, %v2960_v57  ;;  %v5548_v12 = vmax.f32 %v10480_v51, %v10484_v38  ;;  %v10492_v8 = vld [vmem:[#allocation5 + $0x20] ss:$4 sm:$0xff]  ;;  %v10494_v6 = vld [vmem:[#allocation5 + $0x21] ss:$4 sm:$0xff] }
 0x3ae   : > { %v5401_v17 = vmax.f32 %v5337_v19, 0.0  ;;  %v5338_v61 = vadd.f32 %v8342_v28, %v10374_v54  ;;  %v8705_v51 = vld [vmem:[%s10946_s4 + $0x10] sm:$0xff]  }
 0x3af   : > { %v5399_v27 = vmax.f32 %v5335_v48, 0.0  ;;  %v5336_v58 = vadd.f32 %v8343_v5, %v10374_v54 }
 0x3b0   : > { %v5561_v53 = vmax.f32 %v5397_v45, %v5401_v17  ;;  %v5402_v44 = vmax.f32 %v5338_v61, 0.0 }
 0x3b1   : > { %v5559_v10 = vmax.f32 %v5395_v26, %v5399_v27  ;;  %v7850_v31 = vpop.f32.mrb[40].mxu1  ;;  %v8106_v32 = vpop.f32.mrb[32].mxu0  ;;  %v5400_v1 = vmax.f32 %v5336_v58, 0.0 }
 0x3b2   : > { %5577 = vst.msk [vmem:[#allocation5 + $0x30] sm:$0xff] %vm5473_vm7, %v5561_v53  ;;  %v5562_v57 = vmax.f32 %v5398_v52, %v5402_v44  ;;  %v8344_v29 = vadd.f32 %v8106_v32, %v7842_v16  ;;  %v3005_v24 = vpop.f32.mrb[41].mxu1  ;;  %v5109_v25 = vpop.f32.mrb[33].mxu0 }
 0x3b3   : > { %5575 = vst.msk [vmem:[#allocation5 + $0x20] sm:$0xff] %vm5473_vm7, %v5559_v10  ;;  %v8345_v43 = vadd.f32 %v5109_v25, %v2973_v50  ;;  %v7851_v63 = vpop.f32.mrb[42].mxu1  ;;  %v8107_v18 = vpop.f32.mrb[34].mxu0  ;;  %v5560_v59 = vmax.f32 %v5396_v42, %v5400_v1  ;;  %v5505_v1 = vmax.f32 %v10454_v62, %v10456_v55 }
 0x3b4   : > { %5578 = vst.msk [vmem:[#allocation5 + $0x38] sm:$0xff] %vm5473_vm7, %v5562_v57  ;;  %v8346_v40 = vadd.f32 %v8107_v18, %v7843_v14  ;;  %v3008_v60 = vpop.f32.mrb[43].mxu1  ;;  %v5112_v56 = vpop.f32.mrb[35].mxu0  ;;  %v5341_v16 = vadd.f32 %v8344_v29, %v10374_v54 }
 0x3b5   : > { %v8347_v13 = vadd.f32 %v5112_v56, %v2976_v3  ;;  %5576 = vst.msk [vmem:[#allocation5 + $0x28] sm:$0xff] %vm5473_vm7, %v5560_v59  ;;  %v5339_v50 = vadd.f32 %v8345_v43, %v10374_v54 }
 0x3b6   : > { %v5342_v33 = vadd.f32 %v8346_v40, %v10374_v54  ;;  %v5405_v20 = vmax.f32 %v5341_v16, 0.0 }
 0x3b7   : > { %v5340_v30 = vadd.f32 %v8347_v13, %v10374_v54  ;;  %v5403_v17 = vmax.f32 %v5339_v50, 0.0 }
 0x3b8   : > { %v5406_v26 = vmax.f32 %v5342_v33, 0.0 }
 0x3b9   : > { %v7854_v2 = vpop.f32.mrb[44].mxu1  ;;  %v8110_v23 = vpop.f32.mrb[36].mxu0  ;;  %v5404_v52 = vmax.f32 %v5340_v30, 0.0 }
 0x3ba   : > { %v8348_v35 = vadd.f32 %v8110_v23, %v7846_v21  ;;  %v3021_v36 = vpop.f32.mrb[45].mxu1  ;;  %v5125_v37 = vpop.f32.mrb[37].mxu0 }
 0x3bb   : > { %v8349_v7 = vadd.f32 %v5125_v37, %v2989_v47  ;;  %v7855_v22 = vpop.f32.mrb[46].mxu1  ;;  %v8111_v49 = vpop.f32.mrb[38].mxu0 }
 0x3bc   : > { %v5345_v14 = vadd.f32 %v8348_v35, %v10374_v54  ;;  %v8350_v4 = vadd.f32 %v8111_v49, %v7847_v34  ;;  %v3024_v3 = vpop.f32.mrb[47].mxu1  ;;  %v5128_v39 = vpop.f32.mrb[39].mxu0  ;;  %v5588_v21 = vld [vmem:[#allocation5 + $0x20] ss:$4 sm:$0xff]  ;;  %v5592_v45 = vld [vmem:[#allocation5 + $0x21] ss:$4 sm:$0xff] }
 0x3bd   : > { %v5343_v19 = vadd.f32 %v8349_v7, %v10374_v54  ;;  %v8351_v28 = vadd.f32 %v5128_v39, %v2992_v41  ;;  %v5596_v9 = vmax.f32 %v5588_v21, %v5592_v45 }
 0x3be   : > { %v5409_v48 = vmax.f32 %v5345_v14, 0.0  ;;  %v5346_v47 = vadd.f32 %v8350_v4, %v10374_v54 }
 0x3bf   : > { %v5407_v61 = vmax.f32 %v5343_v19, 0.0  ;;  %v5344_v5 = vadd.f32 %v8351_v28, %v10374_v54  ;;  %5605 = vrot.lane.b32.xlu1 %v5596_v9, %s8833_s16 }
 0x3c0   : > { %v5467_v34 = vmax.f32 %v5405_v20, %v5409_v48  ;;  %v5410_v27 = vmax.f32 %v5346_v47, 0.0 }
 0x3c1   : > { %v5465_v53 = vmax.f32 %v5403_v17, %v5407_v61  ;;  %v5408_v44 = vmax.f32 %v5344_v5, 0.0  ;;  %v7858_v41 = vpop.f32.mrb[48].mxu1  ;;  %v8114_v58 = vpop.f32.mrb[40].mxu0 }
 0x3c2   : > { %5484 = vst.msk [vmem:[#allocation5 + $0x50] sm:$0xff] %vm5473_vm7, %v5467_v34  ;;  %v5468_v10 = vmax.f32 %v5406_v26, %v5410_v27  ;;  %v8352_v32 = vadd.f32 %v8114_v58, %v7850_v31  ;;  %v3037_v42 = vpop.f32.mrb[49].mxu1  ;;  %v5141_v57 = vpop.f32.mrb[41].mxu0 }
 0x3c3   : > { %5482 = vst.msk [vmem:[#allocation5 + $0x40] sm:$0xff] %vm5473_vm7, %v5465_v53  ;;  %v5466_v29 = vmax.f32 %v5404_v52, %v5408_v44  ;;  %v8353_v25 = vadd.f32 %v5141_v57, %v3005_v24  ;;  %v7859_v43 = vpop.f32.mrb[50].mxu1  ;;  %v8115_v18 = vpop.f32.mrb[42].mxu0  ;;  %5513 = vrot.lane.b32.xlu1 %v5505_v1, %s8833_s16 }
 0x3c4   : > { %5485 = vst.msk [vmem:[#allocation5 + $0x58] sm:$0xff] %vm5473_vm7, %v5468_v10  ;;  %v8354_v59 = vadd.f32 %v8115_v18, %v7851_v63  ;;  %v3040_v40 = vpop.f32.mrb[51].mxu1  ;;  %v5144_v56 = vpop.f32.mrb[43].mxu0  ;;  %v5349_v62 = vadd.f32 %v8352_v32, %v10374_v54 }
 0x3c5   : > { %5483 = vst.msk [vmem:[#allocation5 + $0x48] sm:$0xff] %vm5473_vm7, %v5466_v29  ;;  %v8355_v31 = vadd.f32 %v5144_v56, %v3008_v60  ;;  %v5347_v24 = vadd.f32 %v8353_v25, %v10374_v54 }
 0x3c6   : > { %v5350_v49 = vadd.f32 %v8354_v59, %v10374_v54  ;;  %v5413_v45 = vmax.f32 %v5349_v62, 0.0 }
 0x3c7   : > { %v5348_v30 = vadd.f32 %v8355_v31, %v10374_v54  ;;  %v5411_v47 = vmax.f32 %v5347_v24, 0.0 }
 0x3c8   : > { %v5414_v61 = vmax.f32 %v5350_v49, 0.0 }
 0x3c9   : > { %v7862_v13 = vpop.f32.mrb[52].mxu1  ;;  %v8118_v23 = vpop.f32.mrb[44].mxu0  ;;  %v5412_v26 = vmax.f32 %v5348_v30, 0.0 }
 0x3ca   : > { %v8356_v55 = vadd.f32 %v8118_v23, %v7854_v2  ;;  %v3053_v16 = vpop.f32.mrb[53].mxu1  ;;  %v5157_v35 = vpop.f32.mrb[45].mxu0 }
 0x3cb   : > { %v8357_v37 = vadd.f32 %v5157_v35, %v3021_v36  ;;  %v7863_v50 = vpop.f32.mrb[54].mxu1  ;;  %v8119_v7 = vpop.f32.mrb[46].mxu0 }
 0x3cc   : > { %v5353_v63 = vadd.f32 %v8356_v55, %v10374_v54  ;;  %v8358_v33 = vadd.f32 %v8119_v7, %v7855_v22  ;;  %v10520_v14 = vpop.f32.mrb[55].mxu1  ;;  %v5160_v60 = vpop.f32.mrb[47].mxu0  ;;  %v5494_v4 = vld [vmem:[#allocation5 + $0x40] ss:$4 sm:$0xff]  ;;  %v5502_v39 = vld [vmem:[#allocation5 + $0x41] ss:$4 sm:$0xff] }
 0x3cd   : > { %v5351_v2 = vadd.f32 %v8357_v37, %v10374_v54  ;;  %v8359_v19 = vadd.f32 %v5160_v60, %v3024_v3  ;;  %v5507_v28 = vmax.f32 %v5494_v4, %v5502_v39  ;;  %v10524_v21 = vld [vmem:[#allocation5 + $0x42] ss:$4 sm:$0xff]  ;;  %v10526_v36 = vld [vmem:[#allocation5 + $0x43] ss:$4 sm:$0xff] }
 0x3ce   : > { %v5417_v20 = vmax.f32 %v5353_v63, 0.0  ;;  %v5354_v48 = vadd.f32 %v8358_v33, %v10374_v54  ;;  %v5549_v22 = vmax.f32 %v10524_v21, %v10526_v36 }
 0x3cf   : > { %v5415_v9 = vmax.f32 %v5351_v2, 0.0  ;;  %v5352_v17 = vadd.f32 %v8359_v19, %v10374_v54  ;;  %5517 = vrot.lane.b32.xlu1 %v5507_v28, %s8833_s16 }
 0x3d0   : > { %v5565_v3 = vmax.f32 %v5413_v45, %v5417_v20  ;;  %v5418_v5 = vmax.f32 %v5354_v48, 0.0 }
 0x3d1   : > { %v5563_v34 = vmax.f32 %v5411_v47, %v5415_v9  ;;  %v5416_v27 = vmax.f32 %v5352_v17, 0.0  ;;  %v7866_v52 = vpop.f32.mrb[56].mxu1  ;;  %v8122_v53 = vpop.f32.mrb[48].mxu0 }
 0x3d2   : > { %v5566_v44 = vmax.f32 %v5414_v61, %v5418_v5  ;;  %5581 = vst.msk [vmem:[#allocation5 + $0x50] sm:$0xff] %vm5473_vm7, %v5565_v3  ;;  %v8360_v58 = vadd.f32 %v8122_v53, %v7858_v41  ;;  %v3069_v10 = vpop.f32.mrb[57].mxu1  ;;  %v5173_v32 = vpop.f32.mrb[49].mxu0  ;;  %v10540_v41 = vld [vmem:[%s10946_s4] sm:$0xff]  }
 0x3d3   : > { %v5564_v57 = vmax.f32 %v5412_v26, %v5416_v27  ;;  %5579 = vst.msk [vmem:[#allocation5 + $0x40] sm:$0xff] %vm5473_vm7, %v5563_v34  ;;  %v8361_v1 = vadd.f32 %v5173_v32, %v3037_v42  ;;  %v7867_v29 = vpop.f32.mrb[58].mxu1  ;;  %v8123_v25 = vpop.f32.mrb[50].mxu0  ;;  %8144 = vmatprep.subr.bf16.mxu1 %v10540_v41 }
 0x3d4   : > { %5582 = vst.msk [vmem:[#allocation5 + $0x58] sm:$0xff] %vm5473_vm7, %v5566_v44  ;;  %v8362_v18 = vadd.f32 %v8123_v25, %v7859_v43  ;;  %v3072_v59 = vpop.f32.mrb[59].mxu1  ;;  %v5176_v56 = vpop.f32.mrb[51].mxu0  ;;  %v5357_v42 = vadd.f32 %v8360_v58, %v10374_v54 }
 0x3d5   : > { %5580 = vst.msk [vmem:[#allocation5 + $0x48] sm:$0xff] %vm5473_vm7, %v5564_v57  ;;  %v8363_v31 = vadd.f32 %v5176_v56, %v3040_v40  ;;  %v5355_v43 = vadd.f32 %v8361_v1, %v10374_v54 }
 0x3d6   : > { %v5358_v40 = vadd.f32 %v8362_v18, %v10374_v54  ;;  %v5421_v45 = vmax.f32 %v5357_v42, 0.0 }
 0x3d7   : > { %v5356_v2 = vadd.f32 %v8363_v31, %v10374_v54  ;;  %v5419_v48 = vmax.f32 %v5355_v43, 0.0 }
 0x3d9   : > { %v7870_v23 = vpop.f32.mrb[60].mxu1  ;;  %v8126_v62 = vpop.f32.mrb[52].mxu0  ;;  %v5420_v3 = vmax.f32 %v5356_v2, 0.0 }
 0x3da   : > { %v8364_v55 = vadd.f32 %v8126_v62, %v7862_v13  ;;  %v3085_v35 = vpop.f32.mrb[61].mxu1  ;;  %v5189_v24 = vpop.f32.mrb[53].mxu0 }
 0x3db   : > { %v8365_v37 = vadd.f32 %v5189_v24, %v3053_v16  ;;  %v7871_v7 = vpop.f32.mrb[62].mxu1  ;;  %v8127_v49 = vpop.f32.mrb[54].mxu0 }
 0x3dc   : > { %v5361_v63 = vadd.f32 %v8364_v55, %v10374_v54  ;;  %v8366_v33 = vadd.f32 %v8127_v49, %v7863_v50  ;;  %v3088_v60 = vpop.f32.mrb[63].mxu1  ;;  %v5192_v4 = vpop.f32.mrb[55].mxu0  ;;  %v5589_v39 = vld [vmem:[#allocation5 + $0x40] ss:$4 sm:$0xff]  ;;  %v5593_v30 = vld [vmem:[#allocation5 + $0x41] ss:$4 sm:$0xff] }
 0x3dd   : > { %v5359_v13 = vadd.f32 %v8365_v37, %v10374_v54  ;;  %v8367_v19 = vadd.f32 %v5192_v4, %v10520_v14  ;;  %v5597_v28 = vmax.f32 %v5589_v39, %v5593_v30  ;;  %v5422_v50 = vmax.f32 %v5358_v40, 0.0 }
 0x3de   : > { %v5425_v16 = vmax.f32 %v5361_v63, 0.0  ;;  %v5362_v20 = vadd.f32 %v8366_v33, %v10374_v54  ;;  %v5506_v14 = vmax.f32 %v10492_v8, %v10494_v6 }
 0x3df   : > { %v5423_v47 = vmax.f32 %v5359_v13, 0.0  ;;  %v5360_v9 = vadd.f32 %v8367_v19, %v10374_v54  ;;  %5607 = vrot.lane.b32.xlu0 %v5597_v28, %s8833_s16 }
 0x3e0   : > { %v5471_v17 = vmax.f32 %v5421_v45, %v5425_v16  ;;  %v5426_v61 = vmax.f32 %v5362_v20, 0.0 }
 0x3e1   : > { %v5469_v5 = vmax.f32 %v5419_v48, %v5423_v47  ;;  %v5424_v26 = vmax.f32 %v5360_v9, 0.0  ;;  %v8130_v34 = vpop.f32.mrb[56].mxu0 }
 0x3e2   : > { %5488 = vst.msk [vmem:[#allocation5 + $0x70] sm:$0xff] %vm5473_vm7, %v5471_v17  ;;  %v5472_v27 = vmax.f32 %v5422_v50, %v5426_v61  ;;  %v8368_v53 = vadd.f32 %v8130_v34, %v7866_v52  ;;  %v5205_v44 = vpop.f32.mrb[57].mxu0  ;;  %v5620_v17 = vld [vmem:[#allocation5 + $0x2] ss:$4 sm:$0xff]  ;;  %v5624_v61 = vld [vmem:[#allocation5 + $0x3] ss:$4 sm:$0xff] }
 0x3e3   : > { %5486 = vst.msk [vmem:[#allocation5 + $0x60] sm:$0xff] %vm5473_vm7, %v5469_v5  ;;  %v5470_v58 = vmax.f32 %v5420_v3, %v5424_v26  ;;  %v8369_v32 = vadd.f32 %v5205_v44, %v3069_v10  ;;  %5515 = vrot.lane.b32.xlu0 %v5506_v14, %s8833_s16  ;;  %v8131_v57 = vpop.f32.mrb[58].mxu0  ;;  %v5628_v3 = vmax.f32 %v5620_v17, %v5624_v61  ;;  %v5650_v26 = vld [vmem:[#allocation3 + $0x1] sm:$0xff] }
 0x3e4   : > { %5489 = vst.msk [vmem:[#allocation5 + $0x78] sm:$0xff] %vm5473_vm7, %v5472_v27  ;;  %v8370_v1 = vadd.f32 %v8131_v57, %v7867_v29  ;;  %v5208_v25 = vpop.f32.mrb[59].mxu0  ;;  %v5365_v6 = vadd.f32 %v8368_v53, %v10374_v54  ;;  %v5621_v27 = vld [vmem:[#allocation5 + $0x22] ss:$4 sm:$0xff]  ;;  %v5625_v53 = vld [vmem:[#allocation5 + $0x23] ss:$4 sm:$0xff] }
 0x3e5   : > { %5487 = vst.msk [vmem:[#allocation5 + $0x68] sm:$0xff] %vm5473_vm7, %v5470_v58  ;;  %v8371_v18 = vadd.f32 %v5208_v25, %v3072_v59  ;;  %v5363_v31 = vadd.f32 %v8369_v32, %v10374_v54  ;;  %v5629_v44 = vmax.f32 %v5621_v27, %v5625_v53  ;;  %v5626_v25 = vld [vmem:[#allocation5 + $0x43] ss:$4 sm:$0xff] }
 0x3e6   : > { %v5366_v10 = vadd.f32 %v8370_v1, %v10374_v54  ;;  %v5622_v1 = vld [vmem:[#allocation5 + $0x42] ss:$4 sm:$0xff] }
 0x3e7   : > { %v5364_v49 = vadd.f32 %v8371_v18, %v10374_v54  ;;  %v5427_v30 = vmax.f32 %v5363_v31, 0.0  ;;  %v5630_v18 = vmax.f32 %v5622_v1, %v5626_v25  ;;  %v8723_v53 = vld [vmem:[%s10949_s7] sm:$0xff]   ;;  %v8728_v1 = vld [vmem:[%s10949_s7 + $0x28] sm:$0xff]   ;;  %v8729_v25 = vld [vmem:[%s10949_s7 + $0x30] sm:$0xff]  }
 0x3e8   : > { %v5430_v19 = vmax.f32 %v5366_v10, 0.0 }
 0x3e9   : > { %v8134_v8 = vpop.f32.mrb[60].mxu0  ;;  %v5428_v45 = vmax.f32 %v5364_v49, 0.0 }
 0x3ea   : > { %v8372_v56 = vadd.f32 %v8134_v8, %v7870_v23  ;;  %v5221_v52 = vpop.f32.mrb[61].mxu0 }
 0x3eb   : > { %v8373_v62 = vadd.f32 %v5221_v52, %v3085_v35  ;;  %v8135_v42 = vpop.f32.mrb[62].mxu0  ;;  %v5429_v35 = vmax.f32 %v5365_v6, 0.0 }
 0x3ec   : > { %v5369_v55 = vadd.f32 %v8372_v56, %v10374_v54  ;;  %v8374_v24 = vadd.f32 %v8135_v42, %v7871_v7  ;;  %v5224_v43 = vpop.f32.mrb[63].mxu0  ;;  %v5496_v29 = vld [vmem:[#allocation5 + $0x60] ss:$4 sm:$0xff]  ;;  %v5504_v37 = vld [vmem:[#allocation5 + $0x61] ss:$4 sm:$0xff] }
 0x3ed   : > { %v5367_v59 = vadd.f32 %v8373_v62, %v10374_v54  ;;  %v8375_v40 = vadd.f32 %v5224_v43, %v3088_v60  ;;  %v5508_v63 = vmax.f32 %v5496_v29, %v5504_v37  ;;  %v10566_v23 = vld [vmem:[#allocation5 + $0x62] ss:$4 sm:$0xff]  ;;  %v10568_v33 = vld [vmem:[#allocation5 + $0x63] ss:$4 sm:$0xff] }
 0x3ee   : > { %v5433_v4 = vmax.f32 %v5369_v55, 0.0  ;;  %v5370_v39 = vadd.f32 %v8374_v24, %v10374_v54  ;;  %v5550_v7 = vmax.f32 %v10566_v23, %v10568_v33  ;;  %v8708_v55 = vld [vmem:[%s10946_s4 + $0x28] sm:$0xff]   ;;  %v8709_v37 = vld [vmem:[%s10946_s4 + $0x30] sm:$0xff]  }
 0x3ef   : > { %v5431_v2 = vmax.f32 %v5367_v59, 0.0  ;;  %v5368_v13 = vadd.f32 %v8375_v40, %v10374_v54  ;;  %5519 = vrot.lane.b32.xlu0 %v5508_v63, %s8833_s16  ;;  %v8710_v40 = vld [vmem:[%s10946_s4 + $0x38] sm:$0xff]   ;;  %v8711_v63 = vld [vmem:[%s10947_s5 + $0x10] sm:$0xff]  }
 0x3f0   : > { %v5569_v60 = vmax.f32 %v5429_v35, %v5433_v4  ;;  %v5434_v28 = vmax.f32 %v5370_v39, 0.0 }
 0x3f1   : > { %v5567_v16 = vmax.f32 %v5427_v30, %v5431_v2  ;;  %v5432_v20 = vmax.f32 %v5368_v13, 0.0  ;;  %v8713_v2 = vld [vmem:[%s10946_s4 + $0x40] sm:$0xff]  }
 0x3f2   : > { %v5570_v48 = vmax.f32 %v5430_v19, %v5434_v28  ;;  %5585 = vst.msk [vmem:[#allocation5 + $0x70] sm:$0xff] %vm5473_vm7, %v5569_v60  ;;  %v8714_v28 = vld [vmem:[%s10946_s4 + $0x48] sm:$0xff]  }
 0x3f3   : > { %v5568_v47 = vmax.f32 %v5428_v45, %v5432_v20  ;;  %5583 = vst.msk [vmem:[#allocation5 + $0x60] sm:$0xff] %vm5473_vm7, %v5567_v16  ;;  %v8715_v16 = vld [vmem:[%s10946_s4 + $0x50] sm:$0xff]   ;;  %v8716_v20 = vld [vmem:[%s10946_s4 + $0x58] sm:$0xff]  }
 0x3f4   : > { %5586 = vst.msk [vmem:[#allocation5 + $0x78] sm:$0xff] %vm5473_vm7, %v5570_v48  ;;  %v8717_v48 = vld [vmem:[%s10947_s5 + $0x20] sm:$0xff]  }
 0x3f5   : > { %5584 = vst.msk [vmem:[#allocation5 + $0x68] sm:$0xff] %vm5473_vm7, %v5568_v47 }
 0x3fc   : > { %v5590_v9 = vld [vmem:[#allocation5 + $0x60] ss:$4 sm:$0xff]  ;;  %v5594_v54 = vld [vmem:[#allocation5 + $0x61] ss:$4 sm:$0xff]  ;;  %v5623_v43 = vld [vmem:[#allocation5 + $0x62] ss:$4 sm:$0xff] }
 0x3fd   : > { %v5598_v50 = vmax.f32 %v5590_v9, %v5594_v54  ;;  %v5627_v29 = vld [vmem:[#allocation5 + $0x63] ss:$4 sm:$0xff] }
 0x3fe   : > { %v5631_v49 = vmax.f32 %v5623_v43, %v5627_v29  ;;  %v8718_v54 = vld [vmem:[%s10947_s5 + $0x28] sm:$0xff]  }
 0x3ff   : > { %5609 = vrot.lane.b32.xlu1 %v5598_v50, %s8833_s16  ;;  %s6908_s16 = scalar_lea.sflag [#allocation8], %s404_s18 }
 0x411   : > { %v5604_v5 = vpop.permute.xlu0 %5603 }
 0x412   : > { %5616 = vst.msk [vmem:[#allocation3 + $0x20] sm:$0xff] %vm5526_vm10, %v5604_v5  ;;  %v8720_v5 = vld [vmem:[%s10950_s8 + $0x8] sm:$0xff]  }
 0x413   : > { %5632 = vst.msk [vmem:[#allocation3 + $0x21] sm:$0xff] %vm5473_vm7, %v5628_v3  ;;  %v8719_v3 = vld [vmem:[%s10950_s8] sm:$0xff]  }
 0x41a   : > { %v10582_v34 = vld [vmem:[#allocation3 + $0x21] sm:$0xff] }
 0x41b   : > { %v5654_v14 = vpack.c.bf16 %v10582_v34, %v5650_v26  ;;  %v10605_v11 = vld [vmem:[#allocation3 + $0x20] sm:$0xff] }
 0x41c   : > { %v5640_v56 = vpack.c.bf16 %v10605_v11, %v5636_v46  ;;  %v8721_v26 = vld [vmem:[%s10950_s8 + $0x10] sm:$0xff]   ;;  %v8731_v46 = vld [vmem:[%s10949_s7 + $0x40] sm:$0xff]  }
 0x41d   : > { %8140 = vmatprep.mubr.msk.bf16.mxu1 %vm5473_vm7, %v5654_v14  ;;  %v6238_v14 = vld [vmem:[#allocation4 + $0x1] sm:$0x3] }
 0x41e   : > { %v6239_v27 = vpack.c.bf16 %v6238_v14, %v6238_v14 }
 0x431   : > { %v5606_v58 = vpop.permute.xlu1 %5605 }
 0x432   : > { %5617 = vst.msk [vmem:[#allocation3 + $0x40] sm:$0xff] %vm5526_vm10, %v5606_v58  ;;  %v8725_v58 = vld [vmem:[%s10949_s7 + $0x10] sm:$0xff]  }
 0x433   : > { %5633 = vst.msk [vmem:[#allocation3 + $0x41] sm:$0xff] %vm5473_vm7, %v5629_v44  ;;  %v8724_v44 = vld [vmem:[%s10949_s7 + $0x8] sm:$0xff]  }
 0x435   : > { %v5514_v32 = vpop.permute.xlu1 %5513 }
 0x436   : > { %5527 = vst.msk [vmem:[#allocation3 + $0x10] sm:$0xff] %vm5526_vm10, %v5514_v32  ;;  %v8726_v32 = vld [vmem:[%s10949_s7 + $0x18] sm:$0xff]  }
 0x437   : > { %5551 = vst.msk [vmem:[#allocation3 + $0x11] sm:$0xff] %vm5473_vm7, %v5547_v15 }
 0x43a   : > { %v10607_v15 = vld [vmem:[#allocation3 + $0x41] sm:$0xff] }
 0x43b   : > { %v5638_v62 = vld [vmem:[#allocation3 + $0x40] sm:$0xff]  ;;  %v6088_v50 = vpack.c.bf16 %v10607_v15, %v10582_v34  ;;  %v8722_v34 = vld [vmem:[%s10950_s8 + $0x18] sm:$0xff]  }
 0x43c   : > { %v5990_v45 = vpack.c.bf16 %v5638_v62, %v10605_v11  ;;  %v8732_v11 = vld [vmem:[%s10949_s7 + $0x48] sm:$0xff]  }
 0x43e   : > { %v5806_v10 = vld [vmem:[#allocation3 + $0x10] sm:$0xff] }
 0x43f   : > { %v5904_v39 = vld [vmem:[#allocation3 + $0x11] sm:$0xff] }
 0x441   : > { %v5518_v57 = vpop.permute.xlu1 %5517 }
 0x442   : > { %5529 = vst.msk [vmem:[#allocation3 + $0x50] sm:$0xff] %vm5526_vm10, %v5518_v57  ;;  %v8727_v57 = vld [vmem:[%s10949_s7 + $0x20] sm:$0xff]  }
 0x443   : > { %5553 = vst.msk [vmem:[#allocation3 + $0x51] sm:$0xff] %vm5473_vm7, %v5549_v22  ;;  %v8704_v22 = vld [vmem:[%s10946_s4 + $0x8] sm:$0xff]  }
 0x44a   : > { %v5808_v35 = vld [vmem:[#allocation3 + $0x50] sm:$0xff] }
 0x44b   : > { %v5906_v19 = vld [vmem:[#allocation3 + $0x51] sm:$0xff] }
 0x451   : > { %v5608_v8 = vpop.permute.xlu0 %5607 }
 0x452   : > { %5618 = vst.msk [vmem:[#allocation3 + $0x60] sm:$0xff] %vm5526_vm10, %v5608_v8  ;;  %v6220_v8 = vld [vmem:[#allocation4] sm:$0x3] }
 0x453   : > { %5634 = vst.msk [vmem:[#allocation3 + $0x61] sm:$0xff] %vm5473_vm7, %v5630_v18  ;;  %v8730_v18 = vld [vmem:[%s10949_s7 + $0x38] sm:$0xff]  }
 0x455   : > { %v5516_v6 = vpop.permute.xlu0 %5515 }
 0x456   : > { %5528 = vst.msk [vmem:[#allocation3 + $0x30] sm:$0xff] %vm5526_vm10, %v5516_v6  ;;  %v6221_v6 = vpack.c.bf16 %v6220_v8, %v6220_v8  ;;  %v8750_v8 = vld [vmem:[%s10949_s7 + $0xb8] sm:$0xff]  }
 0x457   : > { %5552 = vst.msk [vmem:[#allocation3 + $0x31] sm:$0xff] %vm5473_vm7, %v5548_v12  ;;  %v8706_v12 = vld [vmem:[%s10946_s4 + $0x18] sm:$0xff]  }
 0x45a   : > { %v10609_v21 = vld [vmem:[#allocation3 + $0x61] sm:$0xff] }
 0x45b   : > { %v5655_v36 = vpack.c.bf16 %v10609_v21, %v10607_v15  ;;  %v10634_v52 = vld [vmem:[#allocation3 + $0x60] sm:$0xff] }
 0x45c   : > { %v5641_v42 = vpack.c.bf16 %v10634_v52, %v5638_v62  ;;  %v8733_v15 = vld [vmem:[%s10949_s7 + $0x50] sm:$0xff]  }
 0x45d   : > { %8141 = vmatmul.mubr.msk.bf16.vlgmr.msra.gmra.mrb[64].mxu1 %vm5473_vm7, %v5655_v36  ;;  %v8735_v36 = vld [vmem:[%s10949_s7 + $0x60] sm:$0xff]  }
 0x45e   : > { %8145 = vmatpush3.bf16.msra.mxu1 %v10540_v41  ;;  %8152 = vmatprep.mubr.msk.bf16.mxu1 %vm5435_vm8, %v5640_v56  ;;  %v8707_v41 = vld [vmem:[%s10946_s4 + $0x20] sm:$0xff]  }
 0x45f   : > { %8146 = vmatprep.subr.bf16.mxu1 %v8704_v22  ;;  %v5807_v31 = vld [vmem:[#allocation3 + $0x30] sm:$0xff] }
 0x460   : > { %v5810_v24 = vpack.c.bf16 %v5807_v31, %v5806_v10  ;;  %v5905_v33 = vld [vmem:[#allocation3 + $0x31] sm:$0xff]  ;;  %v7360_v56 = vld [vmem:[%s10948_s6] ss:$0 sm:$0xff] }
 0x461   : > { %v5520_v38 = vpop.permute.xlu0 %5519  ;;  %v5908_v30 = vpack.c.bf16 %v5905_v33, %v5904_v39 }
 0x462   : > { %8147 = vmatpush3.bf16.msra.mxu1 %v8704_v22  ;;  %5530 = vst.msk [vmem:[#allocation3 + $0x70] sm:$0xff] %vm5526_vm10, %v5520_v38  ;;  %v8736_v22 = vld [vmem:[%s10949_s7 + $0x68] sm:$0xff]  }
 0x463   : > { %5554 = vst.msk [vmem:[#allocation3 + $0x71] sm:$0xff] %vm5473_vm7, %v5550_v7  ;;  %8148 = vmatprep.subr.bf16.mxu1 %v8705_v51  ;;  %v8712_v7 = vld [vmem:[%s10947_s5 + $0x18] sm:$0xff]  }
 0x466   : > { %8149 = vmatpush3.bf16.msra.mxu1 %v8705_v51 }
 0x467   : > { %8150 = vmatprep.subr.bf16.mxu1 %v8706_v12 }
 0x46a   : > { %8151 = vmatpush3.bf16.msra.mxu1 %v8706_v12  ;;  %v5809_v23 = vld [vmem:[#allocation3 + $0x70] sm:$0xff] }
 0x46b   : > { %8156 = vmatprep.subr.bf16.mxu1 %v8707_v41  ;;  %v5811_v4 = vpack.c.bf16 %v5809_v23, %v5808_v35  ;;  %v5907_v13 = vld [vmem:[#allocation3 + $0x71] sm:$0xff] }
 0x46c   : > { %v5909_v60 = vpack.c.bf16 %v5907_v13, %v5906_v19 }
 0x46d   : > { %8153 = vmatmul.mubr.msk.bf16.vlgmr.msra.gmra.mrb[64].mxu1 %vm5435_vm8, %v5641_v42 }
 0x46e   : > { %8157 = vmatpush3.bf16.msra.mxu1 %v8707_v41  ;;  %8164 = vmatprep.mubr.msk.bf16.mxu1 %vm5435_vm8, %v5810_v24 }
 0x46f   : > { %8158 = vmatprep.subr.bf16.mxu1 %v8708_v55 }
 0x471   : > { %v5610_v59 = vpop.permute.xlu1 %5609 }
 0x472   : > { %8159 = vmatpush3.bf16.msra.mxu1 %v8708_v55  ;;  %5619 = vst.msk [vmem:[#allocation3 + $0x80] sm:$0xff] %vm5526_vm10, %v5610_v59  ;;  %v8738_v59 = vld [vmem:[%s10949_s7 + $0x78] sm:$0xff]  }
 0x473   : > { %5635 = vst.msk [vmem:[#allocation3 + $0x81] sm:$0xff] %vm5473_vm7, %v5631_v49  ;;  %8160 = vmatprep.subr.bf16.mxu1 %v8709_v37  ;;  %v8737_v49 = vld [vmem:[%s10949_s7 + $0x70] sm:$0xff]  }
 0x476   : > { %8161 = vmatpush3.bf16.msra.mxu1 %v8709_v37 }
 0x477   : > { %8162 = vmatprep.subr.bf16.mxu1 %v8710_v40 }
 0x47a   : > { %8163 = vmatpush3.bf16.msra.mxu1 %v8710_v40  ;;  %v5989_v47 = vld [vmem:[#allocation3 + $0x80] sm:$0xff] }
 0x47b   : > { %8168 = vmatprep.subr.bf16.mxu1 %v8711_v63  ;;  %v5991_v9 = vpack.c.bf16 %v5989_v47, %v10634_v52  ;;  %v6087_v17 = vld [vmem:[#allocation3 + $0x81] sm:$0xff] }
 0x47c   : > { %v6089_v61 = vpack.c.bf16 %v6087_v17, %v10609_v21  ;;  %v8734_v21 = vld [vmem:[%s10949_s7 + $0x58] sm:$0xff]   ;;  %v8741_v17 = vld [vmem:[%s10950_s8 + $0x30] sm:$0xff]  }
 0x47d   : > { %8165 = vmatmul.mubr.msk.bf16.vlgmr.msra.gmra.mrb[64].mxu1 %vm5435_vm8, %v5811_v4 }
 0x47e   : > { %8169 = vmatpush3.bf16.msra.mxu1 %v8711_v63  ;;  %8172 = vmatprep.mubr.msk.bf16.mxu1 %vm5473_vm7, %v5908_v30 }
 0x47f   : > { %8170 = vmatprep.subr.bf16.mxu1 %v8712_v7 }
 0x482   : > { %8171 = vmatpush3.bf16.msra.mxu1 %v8712_v7 }
 0x483   : > { %8176 = vmatprep.subr.bf16.mxu1 %v8713_v2 }
 0x489   : > { %8173 = vmatmul.mubr.msk.bf16.vlgmr.msra.gmra.mrb[64].mxu1 %vm5473_vm7, %v5909_v60 }
 0x48a   : > { %8177 = vmatpush3.bf16.msra.mxu1 %v8713_v2  ;;  %8184 = vmatprep.mubr.msk.bf16.mxu1 %vm5435_vm8, %v5990_v45 }
 0x48b   : > { %8178 = vmatprep.subr.bf16.mxu1 %v8714_v28 }
 0x48e   : > { %8179 = vmatpush3.bf16.msra.mxu1 %v8714_v28 }
 0x48f   : > { %8180 = vmatprep.subr.bf16.mxu1 %v8715_v16 }
 0x492   : > { %8181 = vmatpush3.bf16.msra.mxu1 %v8715_v16 }
 0x493   : > { %8182 = vmatprep.subr.bf16.mxu1 %v8716_v20 }
 0x496   : > { %8183 = vmatpush3.bf16.msra.mxu1 %v8716_v20 }
 0x497   : > { %8188 = vmatprep.subr.bf16.mxu1 %v8717_v48 }
 0x499   : > { %8185 = vmatmul.mubr.msk.bf16.vlgmr.msra.gmra.mrb[64].mxu1 %vm5435_vm8, %v5991_v9  ;;  %v8739_v9 = vld [vmem:[%s10950_s8 + $0x20] sm:$0xff]  }
 0x49a   : > { %8189 = vmatpush3.bf16.msra.mxu1 %v8717_v48  ;;  %8192 = vmatprep.mubr.msk.bf16.mxu1 %vm5473_vm7, %v6088_v50  ;;  %v8740_v50 = vld [vmem:[%s10950_s8 + $0x28] sm:$0xff]  }
 0x49b   : > { %8190 = vmatprep.subr.bf16.mxu1 %v8718_v54 }
 0x49e   : > { %8191 = vmatpush3.bf16.msra.mxu1 %v8718_v54 }
 0x49f   : > { %8196 = vmatprep.subr.bf16.mxu1 %v8829_v0 }
 0x4a5   : > { %8193 = vmatmul.mubr.msk.bf16.vlgmr.msra.gmra.mrb[64].mxu1 %vm5473_vm7, %v6089_v61  ;;  %v8742_v61 = vld [vmem:[%s10950_s8 + $0x38] sm:$0xff]  }
 0x4a6   : > { %8204 = vmatprep.mubr.msk.bf16.mxu1 %vm8834_vm11, %v8829_v0  ;;  %8197 = vmatpush3.bf16.msra.mxu1 %v8719_v3 }
 0x4a7   : > { %8198 = vmatprep.subr.bf16.mxu1 %v8829_v0 }
 0x4aa   : > { %8199 = vmatpush3.bf16.msra.mxu1 %v8720_v5  ;;  %v8743_v5 = vld [vmem:[%s10949_s7 + $0x80] sm:$0xff]  }
 0x4ab   : > { %8200 = vmatprep.subr.bf16.mxu1 %v8829_v0 }
 0x4ae   : > { %8201 = vmatpush3.bf16.msra.mxu1 %v8721_v26 }
 0x4af   : > { %8202 = vmatprep.subr.bf16.mxu1 %v8829_v0 }
 0x4b2   : > { %8203 = vmatpush3.bf16.msra.mxu1 %v8722_v34 }
 0x4b3   : > { %8208 = vmatprep.subr.bf16.mxu1 %v8829_v0 }
 0x4b5   : > { %8205 = vmatmul.mubr.msk.bf16.vlgmr.msra.gmra.mrb[68].mxu1 %vm5435_vm8, %v6239_v27 }
 0x4b6   : > { %8209 = vmatpush3.bf16.msra.mxu1 %v8723_v53  ;;  %8224 = vmatprep.mubr.msk.bf16.mxu1 %vm8834_vm11, %v8829_v0  ;;  %v8744_v53 = vld [vmem:[%s10949_s7 + $0x88] sm:$0xff]  }
 0x4b7   : > { %8210 = vmatprep.subr.bf16.mxu1 %v8829_v0 }
 0x4ba   : > { %8211 = vmatpush3.bf16.msra.mxu1 %v8724_v44 }
 0x4bb   : > { %8212 = vmatprep.subr.bf16.mxu1 %v8829_v0 }
 0x4be   : > { %8213 = vmatpush3.bf16.msra.mxu1 %v8725_v58 }
 0x4bf   : > { %8214 = vmatprep.subr.bf16.mxu1 %v8829_v0 }
 0x4c2   : > { %8215 = vmatpush3.bf16.msra.mxu1 %v8726_v32  ;;  %v8745_v32 = vld [vmem:[%s10949_s7 + $0x90] sm:$0xff]  }
 0x4c3   : > { %8216 = vmatprep.subr.bf16.mxu1 %v8829_v0 }
 0x4c6   : > { %8217 = vmatpush3.bf16.msra.mxu1 %v8727_v57  ;;  %v8746_v57 = vld [vmem:[%s10949_s7 + $0x98] sm:$0xff]  }
 0x4c7   : > { %8218 = vmatprep.subr.bf16.mxu1 %v8829_v0 }
 0x4ca   : > { %8219 = vmatpush3.bf16.msra.mxu1 %v8728_v1  ;;  %v8747_v1 = vld [vmem:[%s10949_s7 + $0xa0] sm:$0xff]  }
 0x4cb   : > { %8220 = vmatprep.subr.bf16.mxu1 %v8829_v0 }
 0x4ce   : > { %8221 = vmatpush3.bf16.msra.mxu1 %v8729_v25  ;;  %v8748_v25 = vld [vmem:[%s10949_s7 + $0xa8] sm:$0xff]  }
 0x4cf   : > { %8222 = vmatprep.subr.bf16.mxu1 %v8829_v0 }
 0x4d2   : > { %8223 = vmatpush3.bf16.msra.mxu1 %v8730_v18  ;;  %v8749_v18 = vld [vmem:[%s10949_s7 + $0xb0] sm:$0xff]  }
 0x4d3   : > { %8228 = vmatprep.subr.bf16.mxu1 %v8829_v0 }
 0x4d5   : > { %8225 = vmatmul.mubr.bf16.vlgmr.msra.gmra.mrb[72].mxu1 %v6221_v6 }
 0x4d6   : > { %8229 = vmatpush3.bf16.msra.mxu1 %v8731_v46  ;;  %8244 = vmatprep.mubr.msk.bf16.mxu1 %vm8834_vm11, %v8829_v0  ;;  %v8751_v46 = vld [vmem:[%s10950_s8 + $0x40] sm:$0xff]  }
 0x4d7   : > { %8230 = vmatprep.subr.bf16.mxu1 %v8829_v0 }
 0x4da   : > { %8231 = vmatpush3.bf16.msra.mxu1 %v8732_v11 }
 0x4db   : > { %8232 = vmatprep.subr.bf16.mxu1 %v8829_v0 }
 0x4de   : > { %8233 = vmatpush3.bf16.msra.mxu1 %v8733_v15  ;;  %v8752_v15 = vld [vmem:[%s10950_s8 + $0x48] sm:$0xff]  }
 0x4df   : > { %8234 = vmatprep.subr.bf16.mxu1 %v8829_v0 }
 0x4e2   : > { %8235 = vmatpush3.bf16.msra.mxu1 %v8734_v21  ;;  %v8753_v21 = vld [vmem:[%s10950_s8 + $0x50] sm:$0xff]  }
 0x4e3   : > { %8236 = vmatprep.subr.bf16.mxu1 %v8829_v0 }
 0x4e6   : > { %8237 = vmatpush3.bf16.msra.mxu1 %v8735_v36  ;;  %v8754_v36 = vld [vmem:[%s10950_s8 + $0x58] sm:$0xff]  }
 0x4e7   : > { %8238 = vmatprep.subr.bf16.mxu1 %v8829_v0 }
 0x4ea   : > { %8239 = vmatpush3.bf16.msra.mxu1 %v8736_v22 }
 0x4eb   : > { %8240 = vmatprep.subr.bf16.mxu1 %v8829_v0 }
 0x4ee   : > { %8241 = vmatpush3.bf16.msra.mxu1 %v8737_v49 }
 0x4ef   : > { %8242 = vmatprep.subr.bf16.mxu1 %v8829_v0 }
 0x4f2   : > { %8243 = vmatpush3.bf16.msra.mxu1 %v8738_v59 }
 0x4f3   : > { %8248 = vmatprep.subr.bf16.mxu1 %v8829_v0 }
 0x578   : > { %v8194_v51 = vpop.f32.mrb[64].mxu1 }
 0x579   : > { %v6175_v38 = vadd.f32 %v8194_v51, %v7360_v56  ;;  %v6147_v12 = vpop.f32.mrb[65].mxu1  ;;  %v8755_v51 = vld [vmem:[%s10952_s10] sm:$0xff]  }
 0x57a   : > { %v6173_v41 = vadd.f32 %v7360_v56, %v6147_v12  ;;  %v8195_v52 = vpop.f32.mrb[66].mxu1  ;;  %v8757_v12 = vld [vmem:[%s10952_s10 + $0x10] sm:$0xff]  }
 0x57b   : > { %v6176_v31 = vadd.f32 %v8195_v52, %v7360_v56  ;;  %v6150_v62 = vpop.f32.mrb[67].mxu1  ;;  %v6179_v10 = vmax.f32 %v6175_v38, 0.0  ;;  %v8756_v38 = vld [vmem:[%s10952_s10 + $0x8] sm:$0xff]   ;;  %v8759_v52 = vld [vmem:[%s10952_s10 + $0x20] sm:$0xff]  }
 0x57c   : > { %v6174_v42 = vadd.f32 %v7360_v56, %v6150_v62  ;;  %v6177_v24 = vmax.f32 %v6173_v41, 0.0  ;;  %v8758_v41 = vld [vmem:[%s10952_s10 + $0x18] sm:$0xff]   ;;  %v8761_v62 = vld [vmem:[%s10952_s10 + $0x30] sm:$0xff]  }
 0x57d   : > { %v6180_v55 = vmax.f32 %v6176_v31, 0.0  ;;  %v8760_v31 = vld [vmem:[%s10952_s10 + $0x28] sm:$0xff]  }
 0x57e   : > { %v6178_v43 = vmax.f32 %v6174_v42, 0.0  ;;  %v8762_v42 = vld [vmem:[%s10952_s10 + $0x38] sm:$0xff]  }
 0x57f   : > { %v6205_v29 = vmax.f32 %v6179_v10, %v6180_v55 }
 0x580   : > { %v6185_v37 = vmax.f32 %v6177_v24, %v6178_v43 }
 0x582   : > { %6186 = vst.msk [vmem:[#allocation6] sm:$0xff] %vm5435_vm8, %v6185_v37 }
 0x588   : > { %v6309_v2 = vpop.f32.mrb[68].mxu1 }
 0x589   : > { %v6187_v40 = vld [vmem:[#allocation6] ss:$4 sm:$0x3]  ;;  %v6189_v63 = vld [vmem:[#allocation6 + $0x1] ss:$4 sm:$0x3] }
 0x58a   : > { %v6190_v23 = vmax.f32 %v6187_v40, %v6189_v63  ;;  %v6199_v33 = vld [vmem:[#allocation6 + $0x2] ss:$4 sm:$0x3]  ;;  %v6201_v35 = vld [vmem:[#allocation6 + $0x3] ss:$4 sm:$0x3] }
 0x58b   : > { %6206 = vst.msk [vmem:[#allocation6] sm:$0xff] %vm5435_vm8, %v6205_v29  ;;  %v6202_v4 = vmax.f32 %v6199_v33, %v6201_v35  ;;  %v8206_v13 = vpop.f32.mrb[69].mxu1 }
 0x58c   : > { %6192 = vrot.lane.b32.xlu0 %v6190_v23, %s8835_s19  ;;  %v6312_v19 = vpop.f32.mrb[70].mxu1 }
 0x58d   : > { %v8207_v60 = vpop.f32.mrb[71].mxu1 }
 0x592   : > { %v6207_v39 = vld [vmem:[#allocation6] ss:$4 sm:$0x3]  ;;  %v6208_v7 = vld [vmem:[#allocation6 + $0x1] ss:$4 sm:$0x3] }
 0x593   : > { %v6209_v30 = vmax.f32 %v6207_v39, %v6208_v7  ;;  %v6216_v45 = vld [vmem:[#allocation6 + $0x2] ss:$4 sm:$0x3]  ;;  %v6217_v16 = vld [vmem:[#allocation6 + $0x3] ss:$4 sm:$0x3] }
 0x594   : > { %v6218_v20 = vmax.f32 %v6216_v45, %v6217_v16 }
 0x595   : > { %6211 = vrot.lane.b32.xlu1 %v6209_v30, %s8835_s19  ;;  %s7457_s19 = sshll.u32 %s8923_s25, 4  ;;  %s8836_s25 = smov [#allocation7]  }
 0x596   : > { %s10900_s15 = scalar_lea.hbm %s10954_s12, %s7457_s19  ;;  %s8769_s0 = sshll.u32 %s8836_s25, 4  ;;  %s8770_s0 = int_to_ptr.vmem [resolvable:$false] %s8769_s0 }
 0x597   : > { %s8771_s1 = scalar_lea.vmem %s8770_s0, 32  ;;  %p8772_p0 = scmp.lt.s32.totalorder %s10902_s26, %s8770_s0 }
 0x598   : > { %p8773_p1 = scmp.lt.s32.totalorder %s8771_s1, %s8765_s17 }
 0x59a   : > { %p8774_p2 = por %p8773_p1, %p8772_p0 }
 0x59c   : > { %p8775_p3 = pnand %p8774_p2, %p8768_p13 }
 0x5a8   : > { %v6397_v34 = vpop.f32.mrb[72].mxu1 }
 0x5a9   : > { %v10801_v14 = vadd.f32 %v6397_v34, %v6309_v2  ;;  %v8226_v27 = vpop.f32.mrb[73].mxu1 }
 0x5aa   : > { %v6400_v44 = vpop.f32.mrb[74].mxu1 }
 0x5ab   : > { %v8227_v58 = vpop.f32.mrb[75].mxu1 }
 0x5fe   : > { %v6193_v28 = vpop.permute.xlu0 %6192 }
 0x5ff   : > { %6197 = vst.msk [vmem:[#allocation4 + $0x4] sm:$0x3] %vm6196_vm12, %v6193_v28 }
 0x600   : > { %6204 = vst.msk [vmem:[#allocation4 + $0x5] sm:$0x3] %vm6203_vm13, %v6202_v4 }
 0x607   : > { %v6212_v48 = vpop.permute.xlu1 %6211  ;;  %v6403_v47 = vld [vmem:[#allocation4 + $0x4] sm:$0x3] }
 0x608   : > { %6215 = vst.msk [vmem:[#allocation4 + $0x8] sm:$0x3] %vm6196_vm12, %v6212_v48  ;;  %v6404_v54 = vpack.c.bf16 %v6403_v47, %v6403_v47  ;;  %v6511_v3 = vld [vmem:[#allocation4 + $0x5] sm:$0x3] }
 0x609   : > { %6219 = vst.msk [vmem:[#allocation4 + $0x9] sm:$0x3] %vm6203_vm13, %v6218_v20  ;;  %v6512_v26 = vpack.c.bf16 %v6511_v3, %v6511_v3 }
 0x60a   : > { %8245 = vmatmul.mubr.bf16.vlgmr.msra.gmra.mrb[76].mxu1 %v6404_v54 }
 0x60b   : > { %8249 = vmatpush3.bf16.msra.mxu1 %v8739_v9  ;;  %8256 = vmatprep.mubr.msk.bf16.mxu1 %vm8834_vm11, %v8829_v0 }
 0x60c   : > { %8250 = vmatprep.subr.bf16.mxu1 %v8829_v0 }
 0x60f   : > { %8251 = vmatpush3.bf16.msra.mxu1 %v8740_v50 }
 0x610   : > { %8252 = vmatprep.subr.bf16.mxu1 %v8829_v0  ;;  %v6590_v6 = vld [vmem:[#allocation4 + $0x8] sm:$0x3] }
 0x611   : > { %v6591_v11 = vpack.c.bf16 %v6590_v6, %v6590_v6  ;;  %v6698_v22 = vld [vmem:[#allocation4 + $0x9] sm:$0x3] }
 0x612   : > { %v6699_v56 = vpack.c.bf16 %v6698_v22, %v6698_v22 }
 0x613   : > { %8253 = vmatpush3.bf16.msra.mxu1 %v8741_v17  ;;  %v6810_v17 = vld [vmem:[%s10953_s11] sm:$0x1] }
 0x614   : > { %8254 = vmatprep.subr.bf16.mxu1 %v8829_v0 }
 0x617   : > { %8255 = vmatpush3.bf16.msra.mxu1 %v8742_v61 }
 0x618   : > { %8260 = vmatprep.subr.bf16.mxu1 %v8829_v0 }
 0x61a   : > { %8257 = vmatmul.mubr.msk.bf16.vlgmr.msra.gmra.mrb[80].mxu1 %vm5435_vm8, %v6512_v26 }
 0x61b   : > { %8261 = vmatpush3.bf16.msra.mxu1 %v8743_v5  ;;  %8276 = vmatprep.mubr.msk.bf16.mxu1 %vm8834_vm11, %v8829_v0 }
 0x61c   : > { %8262 = vmatprep.subr.bf16.mxu1 %v8829_v0 }
 0x61f   : > { %8263 = vmatpush3.bf16.msra.mxu1 %v8744_v53 }
 0x620   : > { %8264 = vmatprep.subr.bf16.mxu1 %v8829_v0 }
 0x623   : > { %8265 = vmatpush3.bf16.msra.mxu1 %v8745_v32 }
 0x624   : > { %8266 = vmatprep.subr.bf16.mxu1 %v8829_v0 }
 0x627   : > { %8267 = vmatpush3.bf16.msra.mxu1 %v8746_v57 }
 0x628   : > { %8268 = vmatprep.subr.bf16.mxu1 %v8829_v0 }
 0x62b   : > { %8269 = vmatpush3.bf16.msra.mxu1 %v8747_v1 }
 0x62c   : > { %8270 = vmatprep.subr.bf16.mxu1 %v8829_v0 }
 0x62f   : > { %8271 = vmatpush3.bf16.msra.mxu1 %v8748_v25 }
 0x630   : > { %8272 = vmatprep.subr.bf16.mxu1 %v8829_v0 }
 0x633   : > { %8273 = vmatpush3.bf16.msra.mxu1 %v8749_v18 }
 0x634   : > { %8274 = vmatprep.subr.bf16.mxu1 %v8829_v0 }
 0x637   : > { %8275 = vmatpush3.bf16.msra.mxu1 %v8750_v8 }
 0x638   : > { %8280 = vmatprep.subr.bf16.mxu1 %v8829_v0 }
 0x63a   : > { %8277 = vmatmul.mubr.bf16.vlgmr.msra.gmra.mrb[84].mxu1 %v6591_v11 }
 0x63b   : > { %8281 = vmatpush3.bf16.msra.mxu1 %v8751_v46  ;;  %8288 = vmatprep.mubr.msk.bf16.mxu1 %vm8834_vm11, %v8829_v0 }
 0x63c   : > { %8282 = vmatprep.subr.bf16.mxu1 %v8829_v0 }
 0x63f   : > { %8283 = vmatpush3.bf16.msra.mxu1 %v8752_v15 }
 0x640   : > { %8284 = vmatprep.subr.bf16.mxu1 %v8829_v0 }
 0x643   : > { %8285 = vmatpush3.bf16.msra.mxu1 %v8753_v21 }
 0x644   : > { %8286 = vmatprep.subr.bf16.mxu1 %v8829_v0 }
 0x647   : > { %8287 = vmatpush3.bf16.msra.mxu1 %v8754_v36 }
 0x648   : > { %8292 = vmatprep.subr.bf16.mxu1 %v8829_v0 }
 0x64a   : > { %8289 = vmatmul.mubr.msk.bf16.vlgmr.msra.gmra.mrb[88].mxu1 %vm5435_vm8, %v6699_v56 }
 0x64b   : > { %8308 = vmatprep.mubr.msk.bf16.mxu1 %vm8834_vm11, %v8829_v0  ;;  %8293 = vmatpush3.bf16.msra.mxu1 %v8755_v51 }
 0x64c   : > { %8294 = vmatprep.subr.bf16.mxu1 %v8829_v0 }
 0x64f   : > { %8295 = vmatpush3.bf16.msra.mxu1 %v8756_v38 }
 0x650   : > { %8296 = vmatprep.subr.bf16.mxu1 %v8829_v0 }
 0x653   : > { %8297 = vmatpush3.bf16.msra.mxu1 %v8757_v12 }
 0x654   : > { %8298 = vmatprep.subr.bf16.mxu1 %v8829_v0 }
 0x657   : > { %8299 = vmatpush3.bf16.msra.mxu1 %v8758_v41 }
 0x658   : > { %8300 = vmatprep.subr.bf16.mxu1 %v8829_v0 }
 0x65b   : > { %8301 = vmatpush3.bf16.msra.mxu1 %v8759_v52 }
 0x65c   : > { %8302 = vmatprep.subr.bf16.mxu1 %v8829_v0 }
 0x65f   : > { %8303 = vmatpush3.bf16.msra.mxu1 %v8760_v31 }
 0x660   : > { %8304 = vmatprep.subr.bf16.mxu1 %v8829_v0 }
 0x663   : > { %8305 = vmatpush3.bf16.msra.mxu1 %v8761_v62 }
 0x664   : > { %8306 = vmatprep.subr.bf16.mxu1 %v8829_v0  ;;  %v7448_v0 = vld [vmem:[%s10951_s9] ss:$0 sm:$0xff] }
 0x667   : > { %8307 = vmatpush3.bf16.msra.mxu1 %v8762_v42 }
 0x6dd   : > { %v6504_v10 = vpop.f32.mrb[76].mxu1 }
 0x6de   : > { %v6510_v55 = vadd.f32 %v6504_v10, %v10801_v14  ;;  %v8246_v24 = vpop.f32.mrb[77].mxu1 }
 0x6df   : > { %v6507_v43 = vpop.f32.mrb[78].mxu1 }
 0x6e0   : > { %v8247_v29 = vpop.f32.mrb[79].mxu1 }
 0x6ed   : > { %v6583_v37 = vpop.f32.mrb[80].mxu1 }
 0x6ee   : > { %v6589_v49 = vadd.f32 %v6583_v37, %v6510_v55  ;;  %v8258_v59 = vpop.f32.mrb[81].mxu1 }
 0x6ef   : > { %v6586_v40 = vpop.f32.mrb[82].mxu1 }
 0x6f0   : > { %v8259_v63 = vpop.f32.mrb[83].mxu1 }
 0x70d   : > { %v6691_v23 = vpop.f32.mrb[84].mxu1 }
 0x70e   : > { %v6697_v33 = vadd.f32 %v6691_v23, %v6589_v49  ;;  %v8278_v35 = vpop.f32.mrb[85].mxu1 }
 0x70f   : > { %v6694_v4 = vpop.f32.mrb[86].mxu1 }
 0x710   : > { %v8279_v39 = vpop.f32.mrb[87].mxu1 }
 0x71d   : > { %v6770_v7 = vpop.f32.mrb[88].mxu1 }
 0x71e   : > { %v6776_v30 = vadd.f32 %v6770_v7, %v6697_v33  ;;  %v8290_v2 = vpop.f32.mrb[89].mxu1 }
 0x71f   : > { %v6773_v13 = vpop.f32.mrb[90].mxu1 }
 0x720   : > { %v6784_v19 = vadd.f32 %v7448_v0, %v6776_v30  ;;  %v8291_v60 = vpop.f32.mrb[91].mxu1 }
 0x722   : > { %v6785_v28 = vmax.f32 %v6784_v19, 0.0 }
 0x724   : > { %v6786_v45 = vsel %vm2416_vm6, %v6785_v28, 0.0 }
 0x725   : > { %v6787_v16 = vrot.slane %v6786_v45, 4 }
 0x727   : > { %v6788_v20 = vadd.f32 %v6787_v16, %v6786_v45 }
 0x729   : > { %v6789_v48 = vrot.slane %v6788_v20, 2 }
 0x72b   : > { %v6790_v47 = vadd.f32 %v6789_v48, %v6788_v20 }
 0x72d   : > { %v6791_v9 = vrot.slane %v6790_v47, 1 }
 0x72f   : > { %v6792_v54 = vadd.f32 %v6791_v9, %v6790_v47 }
 0x731   : > { %v6793_v50 = vpack.c.bf16 %v6792_v54, %v6792_v54 }
 0x733   : > { %8309 = vmatmul.mubr.bf16.vlgmr.msra.gmra.mrb[92].mxu1 %v6793_v50 }
 0x806   : > { %v6893_v61 = vpop.f32.mrb[92].mxu1 }
 0x807   : > { %v6894_v3 = vadd.f32 %v6893_v61, %v6810_v17  ;;  %v8310_v5 = vpop.f32.mrb[93].mxu1 }
 0x808   : > { %v6896_v26 = vpop.f32.mrb[94].mxu1 }
 0x809   : > { %v6899_v34 = vmul.f32 %v6894_v3, %v6894_v3  ;;  %v8311_v14 = vpop.f32.mrb[95].mxu1 }
 0x80b   : > { %v6900_v27 = vsel %vm2415_vm5, %v6899_v34, 0.0 }
 0x80c   : > { %6901 = vadd.xlane.f32.xlu0 %v6900_v27 }
 0x899   : > { %v6902_v53 = vpop.xlane.xlu0 %6901 }
 0x89a   : > { %v6903_v44 = vmax.f32 %v6902_v53, 1e-24 }
 0x89c   : > { %8763 = vrsqrt.f32 %v6903_v44 }
 0x8a6   : > { %v8764_v58 = vpop.eup %8763 }
 0x8a7   : > { %v6905_v32 = vmul.f32 %v8764_v58, %v6894_v3 }
 0x8a9   : > { %6906 = vst [vmem:[%s405_s20] sm:$0x1] %v6905_v32 }
 0x8aa   : > { %8778 = shalt.err (!%p8775_p3)
}
 0x8ab   : > { %s8779_s18 = scalar_lea.hbm %s10900_s15, 16  ;;  %s8783_s28 = scalar_lea.hbm %s10954_s12, 32 }
 0x8ac   : > { %p8780_p4 = scmp.ne.s32.totalorder %s10900_s15, %s8779_s18  ;;  %p8784_p9 = scmp.lt.u32.totalorder %s10900_s15, %s10954_s12 }
 0x8ad   : > { %p8785_p10 = scmp.lt.u32.totalorder %s8783_s28, %s8779_s18  ;;  %p8787_p12 = scmp.lt.u32.totalorder %s8779_s18, %s10900_s15 }
 0x8ae   : > { %p8781_p7 = pnand %p8780_p4, %p8940_p5 }
 0x8af   : > { %p8786_p11 = por %p8785_p10, %p8784_p9 }
 0x8b0   : > { %p8782_p8 = pneg %p8781_p7 }
 0x8b1   : > { %p8788_p13 = por %p8787_p12, %p8786_p11 }
 0x8b3   : > { %p8789_p0 = pnand %p8788_p13, %p8782_p8 }
 0x8b5   : > { %8792 = shalt.err (!%p8789_p0)
}
 0x8b6   : > { %8655 = dma.vmem_to_hbm [thread:$0]  (%p8940_p5), %s10902_s26, 16, %s10900_s15, %s6908_s16  }
 0x8b7 PF: > { %p8661_p1 = scmp.ge.s32.totalorder %s8827_s24, 2  ;;  %s6932_s1 = sand.u32 1, %s8815_s21  }
 0x8b8   : > { %s6933_s17 = scalar_lea.sflag [#allocation8], %s6932_s1 }
 0x8b9   : > { %p8658_p2 = pnand %p8661_p1, %p8944_p6 }
 0x8bb   : > { %8810 = dma.done.wait (!%p8658_p2), %s6933_s17, 16  }
 0x8bc   : > { %8812 = vsyncadd (!%p8658_p2), %s6933_s17, 4294967280  ;;  %p22_p3 = scmp.ge.s32.totalorder %s8927_s27, 4   ;;  %s10961_s21 = smov %s8819_s22 }
 0x8bd   : > { %s10962_s22 = smov %s8823_s23  ;;  %s10963_s23 = smov %s8938_s30 }
 0x8be   : > { %s10964_s24 = smov %s8927_s27  ;;  %24 = sbr.rel (!%p22_p3) target bundleno = 6 (0x6), region = 140 }
 0x8c5   :  { %6937 = vsyncpa [#allocation8], 1 }
 0x8c6   :  { %6939 = vsyncpa [#allocation8 + $0x1], 1 }

</bundles_post_ra>
